<compile_context>
chip_gen: v5e
topology: v5e:2x2
jax: 0.10.0
libtpu: 0.0.40
codegen_flags: <defaults>
</compile_context>

<pallas_src>
import functools

import jax
import jax.numpy as jnp
from jax.experimental import pallas as pl
from jax.experimental.pallas import tpu as pltpu


# ---------------------------------------------------------------------------
# Fused whole-network kernel (one grid step == one block of B images)
# ---------------------------------------------------------------------------
def _autoencoder_kernel(
    x_ref,                       # (B*H*W, 16) bf16   conv1 tap-packed (im2col) LHS
    w1_ref, b1_ref,              # (16, 32) bf16 / (1, 32) f32
    w2_ref, b2_ref,              # (3, 96, 64) bf16 / (1, 64) f32
    w3_ref, b3_ref,              # (3, 192, 128) bf16 / (1, 128) f32
    wd1_ref, bd1_ref,            # (128, 256) bf16 / (1, 256) f32
    wd2_ref, bd2_ref,            # (256, 512) bf16 / (1, 512) f32
    wd3_ref, bd3_ref,            # (512, 64)  bf16 / (1, 64)  f32
    o_ref,                       # (B, latent_hw, 64) bf16
    act1_ref, frame2_ref, rep2_ref, act2_ref,
    frame3_ref, rep3_ref, act3_ref, lat_ref,
    *, B, H, W):

  H2, W2, H3, W3 = H // 2, W // 2, H // 4, W // 4
  Ho3, Wo3 = H // 8, W // 8
  Wp2, Wp3 = W2 + 2, W3 + 2                    # padded row widths (frame strides)
  R2, R3 = (H2 + 2) * Wp2, (H3 + 2) * Wp3      # per-image rep-frame rows
  M1 = B * H * W
  M2 = B * R2 - 2 * Wp2
  M3 = B * R3 - 2 * Wp3
  LHW = Ho3 * Wo3                              # latent pixels per image

  # ---- 3x3 conv (+bias+ReLU) as tap-packed matmuls, chunked along M --------
  def conv(src_ref, w_ref, b_ref, dst_ref, m_total, row_step, cout):
    taps = w_ref.shape[0] if len(w_ref.shape) == 3 else 1
    chunk = max(128, 16384 // cout)            # keep the f32 accumulator in vregs
    for c0 in range(0, m_total, chunk):
      m = min(chunk, m_total - c0)
      acc = None
      for t in range(taps):
        wt = w_ref[t] if taps > 1 else w_ref[...]
        d = jnp.dot(src_ref[pl.ds(c0 + t * row_step, m), :], wt,
                    preferred_element_type=jnp.float32)
        acc = d if acc is None else acc + d
      dst_ref[pl.ds(c0, m), :] = jnp.maximum(
          acc + b_ref[...], 0.0).astype(dst_ref.dtype)

  # ---- MaxPool2d(2,2) of one image's conv output (row-flattened, stride Wrow)
  # 4 stride-2 reads pick all window corners; pooled row ho then sits at
  # contiguous rows [ho*Wrow, ho*Wrow + Wo) of the 4-way max.
  def pool(src_ref, base, Wrow, Ho, Wo, emit):
    n_sel = (Ho - 1) * Wrow + Wo
    m00 = src_ref[pl.ds(base,            n_sel, stride=2), :]
    m01 = src_ref[pl.ds(base + 1,        n_sel, stride=2), :]
    m10 = src_ref[pl.ds(base + Wrow,     n_sel, stride=2), :]
    m11 = src_ref[pl.ds(base + Wrow + 1, n_sel, stride=2), :]
    mx = jnp.maximum(jnp.maximum(m00, m01), jnp.maximum(m10, m11))
    for ho in range(Ho):
      emit(ho, mx[ho * Wrow:ho * Wrow + Wo, :].astype(jnp.bfloat16))

  def to_frame(frame_ref, img_base, wp_next):
    def emit(ho, row):
      frame_ref[pl.ds(img_base + (ho + 1) * wp_next + 1, row.shape[0]), :] = row
    return emit

  def build_rep(frame_ref, rep_ref, rows, cin):
    # rep[r, kw*cin:(kw+1)*cin] = frame[r + kw]  ->  3x3 conv needs only 3 matmuls
    for g in range(3):
      rep_ref[:, g * cin:(g + 1) * cin] = frame_ref[pl.ds(g, rows), :]

  # zero-padded frames: pad rows/cols must read 0 (rep/act/lat are fully written)
  frame2_ref[...] = jnp.zeros_like(frame2_ref)
  frame3_ref[...] = jnp.zeros_like(frame3_ref)

  # ------------------------------ encoder -----------------------------------
  conv(x_ref, w1_ref, b1_ref, act1_ref, M1, 0, 32)
  for b in range(B):
    pool(act1_ref, b * H * W, W, H2, W2, to_frame(frame2_ref, b * R2, Wp2))
  build_rep(frame2_ref, rep2_ref, B * R2, 32)

  conv(rep2_ref, w2_ref, b2_ref, act2_ref, M2, Wp2, 64)
  for b in range(B):
    pool(act2_ref, b * R2, Wp2, H3, W3, to_frame(frame3_ref, b * R3, Wp3))
  build_rep(frame3_ref, rep3_ref, B * R3, 64)

  conv(rep3_ref, w3_ref, b3_ref, act3_ref, M3, Wp3, 128)
  for b in range(B):
    def to_lat(ho, row, _b=b):
      lat_ref[pl.ds(_b * LHW + ho * Wo3, row.shape[0]), :] = row
    pool(act3_ref, b * R3, Wp3, Ho3, Wo3, to_lat)

  # ----- decoder: 3x ConvTranspose2d(k=2,s=2) == per-pixel block-diag matmuls,
  # run once over the whole image block (M = B * latent_hw) --------------------
  h = jnp.dot(lat_ref[...], wd1_ref[...], preferred_element_type=jnp.float32)
  h = jnp.maximum(h + bd1_ref[...], 0.0)
  h = jnp.dot(h.astype(jnp.bfloat16), wd2_ref[...],
              preferred_element_type=jnp.float32)
  h = jnp.maximum(h + bd2_ref[...], 0.0)
  h = jnp.dot(h.astype(jnp.bfloat16), wd3_ref[...],
              preferred_element_type=jnp.float32)
  y = jax.nn.sigmoid(h + bd3_ref[...]).astype(o_ref.dtype)
  for b in range(B):
    o_ref[b] = y[b * LHW:(b + 1) * LHW, :]


# ---------------------------------------------------------------------------
# Parameter packing (trace-time glue, all tiny)
# ---------------------------------------------------------------------------
def _pack_conv1(w, b):
  """(32,1,3,3) -> (16, 32) bf16 tap-packed weight (rows ordered kh*3+kw)."""
  wm = jnp.transpose(w, (2, 3, 1, 0)).reshape(9, 32)
  wm = jnp.pad(wm, ((0, 7), (0, 0)))
  return wm.astype(jnp.bfloat16), b.reshape(1, 32).astype(jnp.float32)


def _pack_conv(w, b):
  """(Cout,Cin,3,3) -> (3, 3*Cin, Cout) bf16: one K=3*Cin matmul per kh row."""
  cout, cin = w.shape[0], w.shape[1]
  wm = jnp.transpose(w, (2, 3, 1, 0)).reshape(3, 3 * cin, cout)
  return wm.astype(jnp.bfloat16), b.reshape(1, cout).astype(jnp.float32)


def _pack_tconv(w, b, groups):
  """(Cin,Cout,2,2) tconv -> block-diagonal per-pixel matmul weight."""
  cin, cout = w.shape[0], w.shape[1]
  wm = jnp.transpose(w, (0, 2, 3, 1)).reshape(cin, 4 * cout)   # cols = (kh, kw, co)
  wbd = jnp.kron(jnp.eye(groups, dtype=wm.dtype), wm)
  bb = jnp.tile(jnp.tile(b, 4), groups)
  return wbd.astype(jnp.bfloat16), bb.reshape(1, -1).astype(jnp.float32)


# ---------------------------------------------------------------------------
# Forward pass (NCHW in / NCHW out, matches DeepConvAutoencoder.forward)
# ---------------------------------------------------------------------------
@jax.jit
def forward(params, x_nchw):
  N, cin, H, W = x_nchw.shape
  assert cin == 1 and H % 8 == 0 and W % 8 == 0

  # images per grid step (keep the grid length >= 2 so both v7x cores get work)
  B = 4 if N >= 8 else max(1, N // 2)
  n_pad = -(-N // B) * B

  H2, W2, H3, W3 = H // 2, W // 2, H // 4, W // 4
  Wp2, Wp3 = W2 + 2, W3 + 2
  R2, R3 = (H2 + 2) * Wp2, (H3 + 2) * Wp3
  LHW = (H // 8) * (W // 8)
  M2 = B * R2 - 2 * Wp2
  M3 = B * R3 - 2 * Wp3

  # conv1 LHS: pad + im2col with Cin=1 -> 9 tap lanes (compact HBM layout)
  x = jnp.pad(x_nchw[:, 0], ((0, n_pad - N), (1, 1), (1, 1)))
  patches = jnp.stack([x[:, kh:kh + H, kw:kw + W]
                       for kh in range(3) for kw in range(3)], axis=-1)
  patches = jnp.pad(patches, ((0, 0), (0, 0), (0, 0), (0, 7)))
  x_lhs = patches.reshape(n_pad * H * W, 16).astype(jnp.bfloat16)

  w1, b1 = _pack_conv1(params["conv1_w"], params["conv1_b"])
  w2, b2 = _pack_conv(params["conv2_w"], params["conv2_b"])
  w3, b3 = _pack_conv(params["conv3_w"], params["conv3_b"])
  wd1, bd1 = _pack_tconv(params["tconv1_w"], params["tconv1_b"], groups=1)
  wd2, bd2 = _pack_tconv(params["tconv2_w"], params["tconv2_b"], groups=4)
  wd3, bd3 = _pack_tconv(params["tconv3_w"], params["tconv3_b"], groups=16)

  def const_spec(a):
    nd = a.ndim
    return pl.BlockSpec(a.shape, lambda n, _nd=nd: (0,) * _nd)

  out = pl.pallas_call(
      functools.partial(_autoencoder_kernel, B=B, H=H, W=W),
      out_shape=jax.ShapeDtypeStruct((n_pad, LHW, 64), jnp.bfloat16),
      grid=(n_pad // B,),
      in_specs=[
          pl.BlockSpec((B * H * W, 16), lambda n: (n, 0)),
          const_spec(w1), const_spec(b1),
          const_spec(w2), const_spec(b2),
          const_spec(w3), const_spec(b3),
          const_spec(wd1), const_spec(bd1),
          const_spec(wd2), const_spec(bd2),
          const_spec(wd3), const_spec(bd3),
      ],
      out_specs=pl.BlockSpec((B, LHW, 64), lambda n: (n, 0, 0)),
      scratch_shapes=[
          pltpu.VMEM((B * H * W, 32), jnp.float32),       # act1 (conv1+ReLU)
          pltpu.VMEM((B * R2 + 8, 32), jnp.bfloat16),     # frame2 (zero-padded)
          pltpu.VMEM((B * R2, 96), jnp.bfloat16),         # rep2  (3 shifted copies)
          pltpu.VMEM((M2, 64), jnp.float32),              # act2
          pltpu.VMEM((B * R3 + 8, 64), jnp.bfloat16),     # frame3
          pltpu.VMEM((B * R3, 192), jnp.bfloat16),        # rep3
          pltpu.VMEM((M3, 128), jnp.float32),             # act3
          pltpu.VMEM((B * LHW, 128), jnp.bfloat16),       # latent
      ],
      compiler_params=pltpu.CompilerParams(
          dimension_semantics=("parallel",),
          vmem_limit_bytes=32 * 1024 * 1024),
  )(x_lhs, w1, b1, w2, b2, w3, b3, wd1, bd1, wd2, bd2, wd3, bd3)

  # de-interleave decoder lanes (k1h,k1w,k2h,k2w,k3h,k3w) -> pixels (tiny reshape)
  d = out[:N].reshape(N, H // 8, W // 8, 2, 2, 2, 2, 2, 2)
  d = jnp.transpose(d, (0, 1, 3, 5, 7, 2, 4, 6, 8)).reshape(N, H, W)
  return d[:, None, :, :].astype(jnp.float32)


# ---------------------------------------------------------------------------
# Deterministic synthetic parameters (PyTorch layouts)
# ---------------------------------------------------------------------------
def init_params(key):
  def u(k, shape, fan_in):
    bound = 1.0 / jnp.sqrt(jnp.float32(fan_in))
    return jax.random.uniform(k, shape, jnp.float32, -bound, bound)

  keys = jax.random.split(key, 12)
  p = {}
  p["conv1_w"] = u(keys[0], (32, 1, 3, 3), 1 * 9)
  p["conv1_b"] = u(keys[1], (32,), 1 * 9)
  p["conv2_w"] = u(keys[2], (64, 32, 3, 3), 32 * 9)
  p["conv2_b"] = u(keys[3], (64,), 32 * 9)
  p["conv3_w"] = u(keys[4], (128, 64, 3, 3), 64 * 9)
  p["conv3_b"] = u(keys[5], (128,), 64 * 9)
  p["tconv1_w"] = u(keys[6], (128, 64, 2, 2), 64 * 4)
  p["tconv1_b"] = u(keys[7], (64,), 64 * 4)
  p["tconv2_w"] = u(keys[8], (64, 32, 2, 2), 32 * 4)
  p["tconv2_b"] = u(keys[9], (32,), 32 * 4)
  p["tconv3_w"] = u(keys[10], (32, 1, 2, 2), 1 * 4)
  p["tconv3_b"] = u(keys[11], (1,), 1 * 4)
  return p


# ---------------------------------------------------------------------------
# Pure-JAX f32 reference (mirrors the PyTorch module semantics)
# ---------------------------------------------------------------------------
def _reference_forward(params, x_nchw):
  def conv_relu(x, w, b):
    N, H, W, Cin = x.shape
    Cout = w.shape[0]
    xp = jnp.pad(x, ((0, 0), (1, 1), (1, 1), (0, 0)))
    patches = jnp.stack(
        [xp[:, kh:kh + H, kw:kw + W, :] for kh in range(3) for kw in range(3)],
        axis=3).reshape(N * H * W, 9 * Cin)
    wmat = jnp.transpose(w, (2, 3, 1, 0)).reshape(9 * Cin, Cout)
    return jnp.maximum(patches @ wmat + b, 0.0).reshape(N, H, W, Cout)

  def pool(x):
    N, H, W, C = x.shape
    return x.reshape(N, H // 2, 2, W // 2, 2, C).max(axis=(2, 4))

  def tconv(x, w, b, act):
    N, H, W, Cin = x.shape
    Cout = w.shape[1]
    wmat = jnp.transpose(w, (0, 2, 3, 1)).reshape(Cin, 4 * Cout)
    y = x.reshape(N * H * W, Cin) @ wmat + jnp.tile(b, 4)
    y = jnp.maximum(y, 0.0) if act == "relu" else jax.nn.sigmoid(y)
    return (y.reshape(N, H, W, 2, 2, Cout).transpose(0, 1, 3, 2, 4, 5)
            .reshape(N, 2 * H, 2 * W, Cout))

  x = jnp.transpose(x_nchw, (0, 2, 3, 1)).astype(jnp.float32)
  x = pool(conv_relu(x, params["conv1_w"], params["conv1_b"]))
  x = pool(conv_relu(x, params["conv2_w"], params["conv2_b"]))
  x = pool(conv_relu(x, params["conv3_w"], params["conv3_b"]))
  x = tconv(x, params["tconv1_w"], params["tconv1_b"], "relu")
  x = tconv(x, params["tconv2_w"], params["tconv2_b"], "relu")
  x = tconv(x, params["tconv3_w"], params["tconv3_b"], "sigmoid")
  return jnp.transpose(x, (0, 3, 1, 2))


if __name__ == "__main__":
  key = jax.random.PRNGKey(0)
  pkey, xkey = jax.random.split(key)
  params = init_params(pkey)
  x = jax.random.normal(xkey, (2, 1, 16, 16), jnp.float32)

  y = jax.block_until_ready(forward(params, x))
  assert y.shape == (2, 1, 16, 16), y.shape
  assert bool(jnp.all((y >= 0.0) & (y <= 1.0))), "sigmoid output out of range"

  y_ref = _reference_forward(params, x)
  err = float(jnp.max(jnp.abs(y - y_ref)))
  assert err < 5e-2, f"mismatch vs f32 reference: {err}"
  print("KERNEL_OK")
</pallas_src>

<mosaic_0001>
module attributes {stable_mosaic.version = 11 : i64} {
  func.func @_autoencoder_kernel(%arg0: i32, %arg1: memref<256x16xbf16, #tpu.memory_space<vmem>>, %arg2: memref<16x32xbf16, #tpu.memory_space<vmem>>, %arg3: memref<1x32xf32, #tpu.memory_space<vmem>>, %arg4: memref<3x96x64xbf16, #tpu.memory_space<vmem>>, %arg5: memref<1x64xf32, #tpu.memory_space<vmem>>, %arg6: memref<3x192x128xbf16, #tpu.memory_space<vmem>>, %arg7: memref<1x128xf32, #tpu.memory_space<vmem>>, %arg8: memref<128x256xbf16, #tpu.memory_space<vmem>>, %arg9: memref<1x256xf32, #tpu.memory_space<vmem>>, %arg10: memref<256x512xbf16, #tpu.memory_space<vmem>>, %arg11: memref<1x512xf32, #tpu.memory_space<vmem>>, %arg12: memref<512x64xbf16, #tpu.memory_space<vmem>>, %arg13: memref<1x64xf32, #tpu.memory_space<vmem>>, %arg14: memref<1x4x64xbf16, #tpu.memory_space<vmem>>, %arg15: memref<256x32xf32, #tpu.memory_space<vmem>>, %arg16: memref<108x32xbf16, #tpu.memory_space<vmem>>, %arg17: memref<100x96xbf16, #tpu.memory_space<vmem>>, %arg18: memref<80x64xf32, #tpu.memory_space<vmem>>, %arg19: memref<44x64xbf16, #tpu.memory_space<vmem>>, %arg20: memref<36x192xbf16, #tpu.memory_space<vmem>>, %arg21: memref<24x128xf32, #tpu.memory_space<vmem>>, %arg22: memref<4x128xbf16, #tpu.memory_space<vmem>>) attributes {dimension_semantics = [#tpu.dimension_semantics<parallel>], iteration_bounds = array<i64: 2>, scalar_prefetch = 0 : i64, scratch_operands = 8 : i64, tpu.core_type = #tpu.core_type<tc>, window_params = [{transform_indices = @transform_0, window_bounds = array<i64: 256, 16>}, {pipeline_mode = #tpu.pipeline_mode<synchronous>, transform_indices = @transform_1, window_bounds = array<i64: 16, 32>}, {pipeline_mode = #tpu.pipeline_mode<synchronous>, transform_indices = @transform_2, window_bounds = array<i64: 1, 32>}, {pipeline_mode = #tpu.pipeline_mode<synchronous>, transform_indices = @transform_3, window_bounds = array<i64: 3, 96, 64>}, {pipeline_mode = #tpu.pipeline_mode<synchronous>, transform_indices = @transform_4, window_bounds = array<i64: 1, 64>}, {pipeline_mode = #tpu.pipeline_mode<synchronous>, transform_indices = @transform_5, window_bounds = array<i64: 3, 192, 128>}, {pipeline_mode = #tpu.pipeline_mode<synchronous>, transform_indices = @transform_6, window_bounds = array<i64: 1, 128>}, {pipeline_mode = #tpu.pipeline_mode<synchronous>, transform_indices = @transform_7, window_bounds = array<i64: 128, 256>}, {pipeline_mode = #tpu.pipeline_mode<synchronous>, transform_indices = @transform_8, window_bounds = array<i64: 1, 256>}, {pipeline_mode = #tpu.pipeline_mode<synchronous>, transform_indices = @transform_9, window_bounds = array<i64: 256, 512>}, {pipeline_mode = #tpu.pipeline_mode<synchronous>, transform_indices = @transform_10, window_bounds = array<i64: 1, 512>}, {pipeline_mode = #tpu.pipeline_mode<synchronous>, transform_indices = @transform_11, window_bounds = array<i64: 512, 64>}, {pipeline_mode = #tpu.pipeline_mode<synchronous>, transform_indices = @transform_12, window_bounds = array<i64: 1, 64>}, {transform_indices = @transform_13, window_bounds = array<i64: 1, 4, 64>}]} {
    %cst = arith.constant 0.000000e+00 : bf16
    %0 = vector.broadcast %cst : bf16 to vector<108x32xbf16>
    %c0 = arith.constant 0 : index
    %c0_0 = arith.constant 0 : index
    %1 = vector.load %arg16[%c0, %c0_0] : memref<108x32xbf16, #tpu.memory_space<vmem>>, vector<108x32xbf16>
    tpu.vector_store %arg16[%c0, %c0_0], %0 {strides = array<i32>} : memref<108x32xbf16, #tpu.memory_space<vmem>>, vector<108x32xbf16>,
    %cst_1 = arith.constant 0.000000e+00 : bf16
    %2 = vector.broadcast %cst_1 : bf16 to vector<44x64xbf16>
    %c0_2 = arith.constant 0 : index
    %c0_3 = arith.constant 0 : index
    %3 = vector.load %arg19[%c0_2, %c0_3] : memref<44x64xbf16, #tpu.memory_space<vmem>>, vector<44x64xbf16>
    tpu.vector_store %arg19[%c0_2, %c0_3], %2 {strides = array<i32>} : memref<44x64xbf16, #tpu.memory_space<vmem>>, vector<44x64xbf16>,
    %c0_4 = arith.constant 0 : index
    %c0_5 = arith.constant 0 : index
    %4 = vector.load %arg2[%c0_4, %c0_5] : memref<16x32xbf16, #tpu.memory_space<vmem>>, vector<16x32xbf16>
    %c0_6 = arith.constant 0 : index
    %c0_7 = arith.constant 0 : index
    %5 = vector.load %arg1[%c0_6, %c0_7] : memref<256x16xbf16, #tpu.memory_space<vmem>>, vector<256x16xbf16>
    %cst_8 = arith.constant dense<0.000000e+00> : vector<256x32xf32>
    %6 = tpu.matmul %5, %4, %cst_8 {dimension_numbers = #tpu.dot_dimension_numbers<[1], [0], [0], [1], [0, 0, 1, 1], [], []>} : vector<256x16xbf16>, vector<16x32xbf16>, vector<256x32xf32> -> vector<256x32xf32>
    %c0_9 = arith.constant 0 : index
    %c0_10 = arith.constant 0 : index
    %7 = vector.load %arg3[%c0_9, %c0_10] : memref<1x32xf32, #tpu.memory_space<vmem>>, vector<1x32xf32>
    %8 = vector.broadcast %7 : vector<1x32xf32> to vector<256x32xf32>
    %9 = arith.addf %6, %8 : vector<256x32xf32>
    %cst_11 = arith.constant 0.000000e+00 : f32
    %10 = vector.broadcast %cst_11 : f32 to vector<256x32xf32>
    %11 = arith.maximumf %9, %10 : vector<256x32xf32>
    %c0_12 = arith.constant 0 : index
    %c0_13 = arith.constant 0 : index
    %12 = vector.load %arg15[%c0_12, %c0_13] : memref<256x32xf32, #tpu.memory_space<vmem>>, vector<256x32xf32>
    tpu.vector_store %arg15[%c0_12, %c0_13], %11 {strides = array<i32>} : memref<256x32xf32, #tpu.memory_space<vmem>>, vector<256x32xf32>,
    %c0_14 = arith.constant 0 : index
    %c0_15 = arith.constant 0 : index
    %13 = tpu.strided_load %arg15[%c0_14, %c0_15] {strides = array<i32: 2, 1>} : memref<256x32xf32, #tpu.memory_space<vmem>>, vector<120x32xf32>
    %c1 = arith.constant 1 : index
    %c0_16 = arith.constant 0 : index
    %14 = tpu.strided_load %arg15[%c1, %c0_16] {strides = array<i32: 2, 1>} : memref<256x32xf32, #tpu.memory_space<vmem>>, vector<120x32xf32>
    %c16 = arith.constant 16 : index
    %c0_17 = arith.constant 0 : index
    %15 = tpu.strided_load %arg15[%c16, %c0_17] {strides = array<i32: 2, 1>} : memref<256x32xf32, #tpu.memory_space<vmem>>, vector<120x32xf32>
    %c17 = arith.constant 17 : index
    %c0_18 = arith.constant 0 : index
    %16 = tpu.strided_load %arg15[%c17, %c0_18] {strides = array<i32: 2, 1>} : memref<256x32xf32, #tpu.memory_space<vmem>>, vector<120x32xf32>
    %17 = arith.maximumf %13, %14 : vector<120x32xf32>
    %18 = arith.maximumf %15, %16 : vector<120x32xf32>
    %19 = arith.maximumf %17, %18 : vector<120x32xf32>
    %20 = vector.extract_strided_slice %19 {offsets = [0, 0], sizes = [8, 32], strides = [1, 1]} : vector<120x32xf32> to vector<8x32xf32>
    %21 = arith.truncf %20 : vector<8x32xf32> to vector<8x32xbf16>
    %c11 = arith.constant 11 : index
    %c0_19 = arith.constant 0 : index
    %22 = vector.load %arg16[%c11, %c0_19] : memref<108x32xbf16, #tpu.memory_space<vmem>>, vector<8x32xbf16>
    tpu.vector_store %arg16[%c11, %c0_19], %21 {strides = array<i32>} : memref<108x32xbf16, #tpu.memory_space<vmem>>, vector<8x32xbf16>,
    %23 = vector.extract_strided_slice %19 {offsets = [16, 0], sizes = [8, 32], strides = [1, 1]} : vector<120x32xf32> to vector<8x32xf32>
    %24 = arith.truncf %23 : vector<8x32xf32> to vector<8x32xbf16>
    %c21 = arith.constant 21 : index
    %c0_20 = arith.constant 0 : index
    %25 = vector.load %arg16[%c21, %c0_20] : memref<108x32xbf16, #tpu.memory_space<vmem>>, vector<8x32xbf16>
    tpu.vector_store %arg16[%c21, %c0_20], %24 {strides = array<i32>} : memref<108x32xbf16, #tpu.memory_space<vmem>>, vector<8x32xbf16>,
    %26 = vector.extract_strided_slice %19 {offsets = [32, 0], sizes = [8, 32], strides = [1, 1]} : vector<120x32xf32> to vector<8x32xf32>
    %27 = arith.truncf %26 : vector<8x32xf32> to vector<8x32xbf16>
    %c31 = arith.constant 31 : index
    %c0_21 = arith.constant 0 : index
    %28 = vector.load %arg16[%c31, %c0_21] : memref<108x32xbf16, #tpu.memory_space<vmem>>, vector<8x32xbf16>
    tpu.vector_store %arg16[%c31, %c0_21], %27 {strides = array<i32>} : memref<108x32xbf16, #tpu.memory_space<vmem>>, vector<8x32xbf16>,
    %29 = vector.extract_strided_slice %19 {offsets = [48, 0], sizes = [8, 32], strides = [1, 1]} : vector<120x32xf32> to vector<8x32xf32>
    %30 = arith.truncf %29 : vector<8x32xf32> to vector<8x32xbf16>
    %c41 = arith.constant 41 : index
    %c0_22 = arith.constant 0 : index
    %31 = vector.load %arg16[%c41, %c0_22] : memref<108x32xbf16, #tpu.memory_space<vmem>>, vector<8x32xbf16>
    tpu.vector_store %arg16[%c41, %c0_22], %30 {strides = array<i32>} : memref<108x32xbf16, #tpu.memory_space<vmem>>, vector<8x32xbf16>,
    %32 = vector.extract_strided_slice %19 {offsets = [64, 0], sizes = [8, 32], strides = [1, 1]} : vector<120x32xf32> to vector<8x32xf32>
    %33 = arith.truncf %32 : vector<8x32xf32> to vector<8x32xbf16>
    %c51 = arith.constant 51 : index
    %c0_23 = arith.constant 0 : index
    %34 = vector.load %arg16[%c51, %c0_23] : memref<108x32xbf16, #tpu.memory_space<vmem>>, vector<8x32xbf16>
    tpu.vector_store %arg16[%c51, %c0_23], %33 {strides = array<i32>} : memref<108x32xbf16, #tpu.memory_space<vmem>>, vector<8x32xbf16>,
    %35 = vector.extract_strided_slice %19 {offsets = [80, 0], sizes = [8, 32], strides = [1, 1]} : vector<120x32xf32> to vector<8x32xf32>
    %36 = arith.truncf %35 : vector<8x32xf32> to vector<8x32xbf16>
    %c61 = arith.constant 61 : index
    %c0_24 = arith.constant 0 : index
    %37 = vector.load %arg16[%c61, %c0_24] : memref<108x32xbf16, #tpu.memory_space<vmem>>, vector<8x32xbf16>
    tpu.vector_store %arg16[%c61, %c0_24], %36 {strides = array<i32>} : memref<108x32xbf16, #tpu.memory_space<vmem>>, vector<8x32xbf16>,
    %38 = vector.extract_strided_slice %19 {offsets = [96, 0], sizes = [8, 32], strides = [1, 1]} : vector<120x32xf32> to vector<8x32xf32>
    %39 = arith.truncf %38 : vector<8x32xf32> to vector<8x32xbf16>
    %c71 = arith.constant 71 : index
    %c0_25 = arith.constant 0 : index
    %40 = vector.load %arg16[%c71, %c0_25] : memref<108x32xbf16, #tpu.memory_space<vmem>>, vector<8x32xbf16>
    tpu.vector_store %arg16[%c71, %c0_25], %39 {strides = array<i32>} : memref<108x32xbf16, #tpu.memory_space<vmem>>, vector<8x32xbf16>,
    %41 = vector.extract_strided_slice %19 {offsets = [112, 0], sizes = [8, 32], strides = [1, 1]} : vector<120x32xf32> to vector<8x32xf32>
    %42 = arith.truncf %41 : vector<8x32xf32> to vector<8x32xbf16>
    %c81 = arith.constant 81 : index
    %c0_26 = arith.constant 0 : index
    %43 = vector.load %arg16[%c81, %c0_26] : memref<108x32xbf16, #tpu.memory_space<vmem>>, vector<8x32xbf16>
    tpu.vector_store %arg16[%c81, %c0_26], %42 {strides = array<i32>} : memref<108x32xbf16, #tpu.memory_space<vmem>>, vector<8x32xbf16>,
    %c0_27 = arith.constant 0 : index
    %c0_28 = arith.constant 0 : index
    %44 = vector.load %arg16[%c0_27, %c0_28] : memref<108x32xbf16, #tpu.memory_space<vmem>>, vector<100x32xbf16>
    %c0_29 = arith.constant 0 : index
    %c0_30 = arith.constant 0 : index
    %45 = vector.load %arg17[%c0_29, %c0_30] : memref<100x96xbf16, #tpu.memory_space<vmem>>, vector<100x32xbf16>
    tpu.vector_store %arg17[%c0_29, %c0_30], %44 {strides = array<i32>} : memref<100x96xbf16, #tpu.memory_space<vmem>>, vector<100x32xbf16>,
    %c1_31 = arith.constant 1 : index
    %c0_32 = arith.constant 0 : index
    %46 = vector.load %arg16[%c1_31, %c0_32] : memref<108x32xbf16, #tpu.memory_space<vmem>>, vector<100x32xbf16>
    %c0_33 = arith.constant 0 : index
    %c32 = arith.constant 32 : index
    %47 = vector.load %arg17[%c0_33, %c32] : memref<100x96xbf16, #tpu.memory_space<vmem>>, vector<100x32xbf16>
    tpu.vector_store %arg17[%c0_33, %c32], %46 {strides = array<i32>} : memref<100x96xbf16, #tpu.memory_space<vmem>>, vector<100x32xbf16>,
    %c2 = arith.constant 2 : index
    %c0_34 = arith.constant 0 : index
    %48 = vector.load %arg16[%c2, %c0_34] : memref<108x32xbf16, #tpu.memory_space<vmem>>, vector<100x32xbf16>
    %c0_35 = arith.constant 0 : index
    %c64 = arith.constant 64 : index
    %49 = vector.load %arg17[%c0_35, %c64] : memref<100x96xbf16, #tpu.memory_space<vmem>>, vector<100x32xbf16>
    tpu.vector_store %arg17[%c0_35, %c64], %48 {strides = array<i32>} : memref<100x96xbf16, #tpu.memory_space<vmem>>, vector<100x32xbf16>,
    %c0_36 = arith.constant 0 : index
    %c0_37 = arith.constant 0 : index
    %c0_38 = arith.constant 0 : index
    %50 = vector.load %arg4[%c0_36, %c0_37, %c0_38] : memref<3x96x64xbf16, #tpu.memory_space<vmem>>, vector<1x96x64xbf16>
    %51 = vector.shape_cast %50 : vector<1x96x64xbf16> to vector<96x64xbf16>
    %c0_39 = arith.constant 0 : index
    %c0_40 = arith.constant 0 : index
    %52 = vector.load %arg17[%c0_39, %c0_40] : memref<100x96xbf16, #tpu.memory_space<vmem>>, vector<80x96xbf16>
    %cst_41 = arith.constant dense<0.000000e+00> : vector<80x64xf32>
    %53 = tpu.matmul %52, %51, %cst_41 {dimension_numbers = #tpu.dot_dimension_numbers<[1], [0], [0], [1], [0, 0, 1, 1], [], []>} : vector<80x96xbf16>, vector<96x64xbf16>, vector<80x64xf32> -> vector<80x64xf32>
    %c1_42 = arith.constant 1 : index
    %c0_43 = arith.constant 0 : index
    %c0_44 = arith.constant 0 : index
    %54 = vector.load %arg4[%c1_42, %c0_43, %c0_44] : memref<3x96x64xbf16, #tpu.memory_space<vmem>>, vector<1x96x64xbf16>
    %55 = vector.shape_cast %54 : vector<1x96x64xbf16> to vector<96x64xbf16>
    %c10 = arith.constant 10 : index
    %c0_45 = arith.constant 0 : index
    %56 = vector.load %arg17[%c10, %c0_45] : memref<100x96xbf16, #tpu.memory_space<vmem>>, vector<80x96xbf16>
    %cst_46 = arith.constant dense<0.000000e+00> : vector<80x64xf32>
    %57 = tpu.matmul %56, %55, %cst_46 {dimension_numbers = #tpu.dot_dimension_numbers<[1], [0], [0], [1], [0, 0, 1, 1], [], []>} : vector<80x96xbf16>, vector<96x64xbf16>, vector<80x64xf32> -> vector<80x64xf32>
    %58 = arith.addf %53, %57 : vector<80x64xf32>
    %c2_47 = arith.constant 2 : index
    %c0_48 = arith.constant 0 : index
    %c0_49 = arith.constant 0 : index
    %59 = vector.load %arg4[%c2_47, %c0_48, %c0_49] : memref<3x96x64xbf16, #tpu.memory_space<vmem>>, vector<1x96x64xbf16>
    %60 = vector.shape_cast %59 : vector<1x96x64xbf16> to vector<96x64xbf16>
    %c20 = arith.constant 20 : index
    %c0_50 = arith.constant 0 : index
    %61 = vector.load %arg17[%c20, %c0_50] : memref<100x96xbf16, #tpu.memory_space<vmem>>, vector<80x96xbf16>
    %cst_51 = arith.constant dense<0.000000e+00> : vector<80x64xf32>
    %62 = tpu.matmul %61, %60, %cst_51 {dimension_numbers = #tpu.dot_dimension_numbers<[1], [0], [0], [1], [0, 0, 1, 1], [], []>} : vector<80x96xbf16>, vector<96x64xbf16>, vector<80x64xf32> -> vector<80x64xf32>
    %63 = arith.addf %58, %62 : vector<80x64xf32>
    %c0_52 = arith.constant 0 : index
    %c0_53 = arith.constant 0 : index
    %64 = vector.load %arg5[%c0_52, %c0_53] : memref<1x64xf32, #tpu.memory_space<vmem>>, vector<1x64xf32>
    %65 = vector.broadcast %64 : vector<1x64xf32> to vector<80x64xf32>
    %66 = arith.addf %63, %65 : vector<80x64xf32>
    %cst_54 = arith.constant 0.000000e+00 : f32
    %67 = vector.broadcast %cst_54 : f32 to vector<80x64xf32>
    %68 = arith.maximumf %66, %67 : vector<80x64xf32>
    %c0_55 = arith.constant 0 : index
    %c0_56 = arith.constant 0 : index
    %69 = vector.load %arg18[%c0_55, %c0_56] : memref<80x64xf32, #tpu.memory_space<vmem>>, vector<80x64xf32>
    tpu.vector_store %arg18[%c0_55, %c0_56], %68 {strides = array<i32>} : memref<80x64xf32, #tpu.memory_space<vmem>>, vector<80x64xf32>,
    %c0_57 = arith.constant 0 : index
    %c0_58 = arith.constant 0 : index
    %70 = tpu.strided_load %arg18[%c0_57, %c0_58] {strides = array<i32: 2, 1>} : memref<80x64xf32, #tpu.memory_space<vmem>>, vector<34x64xf32>
    %c1_59 = arith.constant 1 : index
    %c0_60 = arith.constant 0 : index
    %71 = tpu.strided_load %arg18[%c1_59, %c0_60] {strides = array<i32: 2, 1>} : memref<80x64xf32, #tpu.memory_space<vmem>>, vector<34x64xf32>
    %c10_61 = arith.constant 10 : index
    %c0_62 = arith.constant 0 : index
    %72 = tpu.strided_load %arg18[%c10_61, %c0_62] {strides = array<i32: 2, 1>} : memref<80x64xf32, #tpu.memory_space<vmem>>, vector<34x64xf32>
    %c11_63 = arith.constant 11 : index
    %c0_64 = arith.constant 0 : index
    %73 = tpu.strided_load %arg18[%c11_63, %c0_64] {strides = array<i32: 2, 1>} : memref<80x64xf32, #tpu.memory_space<vmem>>, vector<34x64xf32>
    %74 = arith.maximumf %70, %71 : vector<34x64xf32>
    %75 = arith.maximumf %72, %73 : vector<34x64xf32>
    %76 = arith.maximumf %74, %75 : vector<34x64xf32>
    %77 = vector.extract_strided_slice %76 {offsets = [0, 0], sizes = [4, 64], strides = [1, 1]} : vector<34x64xf32> to vector<4x64xf32>
    %78 = arith.truncf %77 : vector<4x64xf32> to vector<4x64xbf16>
    %c7 = arith.constant 7 : index
    %c0_65 = arith.constant 0 : index
    %79 = vector.load %arg19[%c7, %c0_65] : memref<44x64xbf16, #tpu.memory_space<vmem>>, vector<4x64xbf16>
    tpu.vector_store %arg19[%c7, %c0_65], %78 {strides = array<i32>} : memref<44x64xbf16, #tpu.memory_space<vmem>>, vector<4x64xbf16>,
    %80 = vector.extract_strided_slice %76 {offsets = [10, 0], sizes = [4, 64], strides = [1, 1]} : vector<34x64xf32> to vector<4x64xf32>
    %81 = arith.truncf %80 : vector<4x64xf32> to vector<4x64xbf16>
    %c13 = arith.constant 13 : index
    %c0_66 = arith.constant 0 : index
    %82 = vector.load %arg19[%c13, %c0_66] : memref<44x64xbf16, #tpu.memory_space<vmem>>, vector<4x64xbf16>
    tpu.vector_store %arg19[%c13, %c0_66], %81 {strides = array<i32>} : memref<44x64xbf16, #tpu.memory_space<vmem>>, vector<4x64xbf16>,
    %83 = vector.extract_strided_slice %76 {offsets = [20, 0], sizes = [4, 64], strides = [1, 1]} : vector<34x64xf32> to vector<4x64xf32>
    %84 = arith.truncf %83 : vector<4x64xf32> to vector<4x64xbf16>
    %c19 = arith.constant 19 : index
    %c0_67 = arith.constant 0 : index
    %85 = vector.load %arg19[%c19, %c0_67] : memref<44x64xbf16, #tpu.memory_space<vmem>>, vector<4x64xbf16>
    tpu.vector_store %arg19[%c19, %c0_67], %84 {strides = array<i32>} : memref<44x64xbf16, #tpu.memory_space<vmem>>, vector<4x64xbf16>,
    %86 = vector.extract_strided_slice %76 {offsets = [30, 0], sizes = [4, 64], strides = [1, 1]} : vector<34x64xf32> to vector<4x64xf32>
    %87 = arith.truncf %86 : vector<4x64xf32> to vector<4x64xbf16>
    %c25 = arith.constant 25 : index
    %c0_68 = arith.constant 0 : index
    %88 = vector.load %arg19[%c25, %c0_68] : memref<44x64xbf16, #tpu.memory_space<vmem>>, vector<4x64xbf16>
    tpu.vector_store %arg19[%c25, %c0_68], %87 {strides = array<i32>} : memref<44x64xbf16, #tpu.memory_space<vmem>>, vector<4x64xbf16>,
    %c0_69 = arith.constant 0 : index
    %c0_70 = arith.constant 0 : index
    %89 = vector.load %arg19[%c0_69, %c0_70] : memref<44x64xbf16, #tpu.memory_space<vmem>>, vector<36x64xbf16>
    %c0_71 = arith.constant 0 : index
    %c0_72 = arith.constant 0 : index
    %90 = vector.load %arg20[%c0_71, %c0_72] : memref<36x192xbf16, #tpu.memory_space<vmem>>, vector<36x64xbf16>
    tpu.vector_store %arg20[%c0_71, %c0_72], %89 {strides = array<i32>} : memref<36x192xbf16, #tpu.memory_space<vmem>>, vector<36x64xbf16>,
    %c1_73 = arith.constant 1 : index
    %c0_74 = arith.constant 0 : index
    %91 = vector.load %arg19[%c1_73, %c0_74] : memref<44x64xbf16, #tpu.memory_space<vmem>>, vector<36x64xbf16>
    %c0_75 = arith.constant 0 : index
    %c64_76 = arith.constant 64 : index
    %92 = vector.load %arg20[%c0_75, %c64_76] : memref<36x192xbf16, #tpu.memory_space<vmem>>, vector<36x64xbf16>
    tpu.vector_store %arg20[%c0_75, %c64_76], %91 {strides = array<i32>} : memref<36x192xbf16, #tpu.memory_space<vmem>>, vector<36x64xbf16>,
    %c2_77 = arith.constant 2 : index
    %c0_78 = arith.constant 0 : index
    %93 = vector.load %arg19[%c2_77, %c0_78] : memref<44x64xbf16, #tpu.memory_space<vmem>>, vector<36x64xbf16>
    %c0_79 = arith.constant 0 : index
    %c128 = arith.constant 128 : index
    %94 = vector.load %arg20[%c0_79, %c128] : memref<36x192xbf16, #tpu.memory_space<vmem>>, vector<36x64xbf16>
    tpu.vector_store %arg20[%c0_79, %c128], %93 {strides = array<i32>} : memref<36x192xbf16, #tpu.memory_space<vmem>>, vector<36x64xbf16>,
    %c0_80 = arith.constant 0 : index
    %c0_81 = arith.constant 0 : index
    %c0_82 = arith.constant 0 : index
    %95 = vector.load %arg6[%c0_80, %c0_81, %c0_82] : memref<3x192x128xbf16, #tpu.memory_space<vmem>>, vector<1x192x128xbf16>
    %96 = vector.shape_cast %95 : vector<1x192x128xbf16> to vector<192x128xbf16>
    %c0_83 = arith.constant 0 : index
    %c0_84 = arith.constant 0 : index
    %97 = vector.load %arg20[%c0_83, %c0_84] : memref<36x192xbf16, #tpu.memory_space<vmem>>, vector<24x192xbf16>
    %cst_85 = arith.constant dense<0.000000e+00> : vector<24x128xf32>
    %98 = tpu.matmul %97, %96, %cst_85 {dimension_numbers = #tpu.dot_dimension_numbers<[1], [0], [0], [1], [0, 0, 1, 1], [], []>} : vector<24x192xbf16>, vector<192x128xbf16>, vector<24x128xf32> -> vector<24x128xf32>
    %c1_86 = arith.constant 1 : index
    %c0_87 = arith.constant 0 : index
    %c0_88 = arith.constant 0 : index
    %99 = vector.load %arg6[%c1_86, %c0_87, %c0_88] : memref<3x192x128xbf16, #tpu.memory_space<vmem>>, vector<1x192x128xbf16>
    %100 = vector.shape_cast %99 : vector<1x192x128xbf16> to vector<192x128xbf16>
    %c6 = arith.constant 6 : index
    %c0_89 = arith.constant 0 : index
    %101 = vector.load %arg20[%c6, %c0_89] : memref<36x192xbf16, #tpu.memory_space<vmem>>, vector<24x192xbf16>
    %cst_90 = arith.constant dense<0.000000e+00> : vector<24x128xf32>
    %102 = tpu.matmul %101, %100, %cst_90 {dimension_numbers = #tpu.dot_dimension_numbers<[1], [0], [0], [1], [0, 0, 1, 1], [], []>} : vector<24x192xbf16>, vector<192x128xbf16>, vector<24x128xf32> -> vector<24x128xf32>
    %103 = arith.addf %98, %102 : vector<24x128xf32>
    %c2_91 = arith.constant 2 : index
    %c0_92 = arith.constant 0 : index
    %c0_93 = arith.constant 0 : index
    %104 = vector.load %arg6[%c2_91, %c0_92, %c0_93] : memref<3x192x128xbf16, #tpu.memory_space<vmem>>, vector<1x192x128xbf16>
    %105 = vector.shape_cast %104 : vector<1x192x128xbf16> to vector<192x128xbf16>
    %c12 = arith.constant 12 : index
    %c0_94 = arith.constant 0 : index
    %106 = vector.load %arg20[%c12, %c0_94] : memref<36x192xbf16, #tpu.memory_space<vmem>>, vector<24x192xbf16>
    %cst_95 = arith.constant dense<0.000000e+00> : vector<24x128xf32>
    %107 = tpu.matmul %106, %105, %cst_95 {dimension_numbers = #tpu.dot_dimension_numbers<[1], [0], [0], [1], [0, 0, 1, 1], [], []>} : vector<24x192xbf16>, vector<192x128xbf16>, vector<24x128xf32> -> vector<24x128xf32>
    %108 = arith.addf %103, %107 : vector<24x128xf32>
    %c0_96 = arith.constant 0 : index
    %c0_97 = arith.constant 0 : index
    %109 = vector.load %arg7[%c0_96, %c0_97] : memref<1x128xf32, #tpu.memory_space<vmem>>, vector<1x128xf32>
    %110 = vector.broadcast %109 : vector<1x128xf32> to vector<24x128xf32>
    %111 = arith.addf %108, %110 : vector<24x128xf32>
    %cst_98 = arith.constant 0.000000e+00 : f32
    %112 = vector.broadcast %cst_98 : f32 to vector<24x128xf32>
    %113 = arith.maximumf %111, %112 : vector<24x128xf32>
    %c0_99 = arith.constant 0 : index
    %c0_100 = arith.constant 0 : index
    %114 = vector.load %arg21[%c0_99, %c0_100] : memref<24x128xf32, #tpu.memory_space<vmem>>, vector<24x128xf32>
    tpu.vector_store %arg21[%c0_99, %c0_100], %113 {strides = array<i32>} : memref<24x128xf32, #tpu.memory_space<vmem>>, vector<24x128xf32>,
    %c0_101 = arith.constant 0 : index
    %c0_102 = arith.constant 0 : index
    %115 = tpu.strided_load %arg21[%c0_101, %c0_102] {strides = array<i32: 2, 1>} : memref<24x128xf32, #tpu.memory_space<vmem>>, vector<8x128xf32>
    %c1_103 = arith.constant 1 : index
    %c0_104 = arith.constant 0 : index
    %116 = tpu.strided_load %arg21[%c1_103, %c0_104] {strides = array<i32: 2, 1>} : memref<24x128xf32, #tpu.memory_space<vmem>>, vector<8x128xf32>
    %c6_105 = arith.constant 6 : index
    %c0_106 = arith.constant 0 : index
    %117 = tpu.strided_load %arg21[%c6_105, %c0_106] {strides = array<i32: 2, 1>} : memref<24x128xf32, #tpu.memory_space<vmem>>, vector<8x128xf32>
    %c7_107 = arith.constant 7 : index
    %c0_108 = arith.constant 0 : index
    %118 = tpu.strided_load %arg21[%c7_107, %c0_108] {strides = array<i32: 2, 1>} : memref<24x128xf32, #tpu.memory_space<vmem>>, vector<8x128xf32>
    %119 = arith.maximumf %115, %116 : vector<8x128xf32>
    %120 = arith.maximumf %117, %118 : vector<8x128xf32>
    %121 = arith.maximumf %119, %120 : vector<8x128xf32>
    %122 = vector.extract_strided_slice %121 {offsets = [0, 0], sizes = [2, 128], strides = [1, 1]} : vector<8x128xf32> to vector<2x128xf32>
    %123 = arith.truncf %122 : vector<2x128xf32> to vector<2x128xbf16>
    %c0_109 = arith.constant 0 : index
    %c0_110 = arith.constant 0 : index
    %124 = vector.load %arg22[%c0_109, %c0_110] : memref<4x128xbf16, #tpu.memory_space<vmem>>, vector<2x128xbf16>
    tpu.vector_store %arg22[%c0_109, %c0_110], %123 {strides = array<i32>} : memref<4x128xbf16, #tpu.memory_space<vmem>>, vector<2x128xbf16>,
    %125 = vector.extract_strided_slice %121 {offsets = [6, 0], sizes = [2, 128], strides = [1, 1]} : vector<8x128xf32> to vector<2x128xf32>
    %126 = arith.truncf %125 : vector<2x128xf32> to vector<2x128xbf16>
    %c2_111 = arith.constant 2 : index
    %c0_112 = arith.constant 0 : index
    %127 = vector.load %arg22[%c2_111, %c0_112] : memref<4x128xbf16, #tpu.memory_space<vmem>>, vector<2x128xbf16>
    tpu.vector_store %arg22[%c2_111, %c0_112], %126 {strides = array<i32>} : memref<4x128xbf16, #tpu.memory_space<vmem>>, vector<2x128xbf16>,
    %c0_113 = arith.constant 0 : index
    %c0_114 = arith.constant 0 : index
    %128 = vector.load %arg22[%c0_113, %c0_114] : memref<4x128xbf16, #tpu.memory_space<vmem>>, vector<4x128xbf16>
    %c0_115 = arith.constant 0 : index
    %c0_116 = arith.constant 0 : index
    %129 = vector.load %arg8[%c0_115, %c0_116] : memref<128x256xbf16, #tpu.memory_space<vmem>>, vector<128x256xbf16>
    %cst_117 = arith.constant dense<0.000000e+00> : vector<4x256xf32>
    %130 = tpu.matmul %128, %129, %cst_117 {dimension_numbers = #tpu.dot_dimension_numbers<[1], [0], [0], [1], [0, 0, 1, 1], [], []>} : vector<4x128xbf16>, vector<128x256xbf16>, vector<4x256xf32> -> vector<4x256xf32>
    %c0_118 = arith.constant 0 : index
    %c0_119 = arith.constant 0 : index
    %131 = vector.load %arg9[%c0_118, %c0_119] : memref<1x256xf32, #tpu.memory_space<vmem>>, vector<1x256xf32>
    %132 = vector.broadcast %131 : vector<1x256xf32> to vector<4x256xf32>
    %133 = arith.addf %130, %132 : vector<4x256xf32>
    %cst_120 = arith.constant 0.000000e+00 : f32
    %134 = vector.broadcast %cst_120 : f32 to vector<4x256xf32>
    %135 = arith.maximumf %133, %134 : vector<4x256xf32>
    %136 = arith.truncf %135 : vector<4x256xf32> to vector<4x256xbf16>
    %c0_121 = arith.constant 0 : index
    %c0_122 = arith.constant 0 : index
    %137 = vector.load %arg10[%c0_121, %c0_122] : memref<256x512xbf16, #tpu.memory_space<vmem>>, vector<256x512xbf16>
    %cst_123 = arith.constant dense<0.000000e+00> : vector<4x512xf32>
    %138 = tpu.matmul %136, %137, %cst_123 {dimension_numbers = #tpu.dot_dimension_numbers<[1], [0], [0], [1], [0, 0, 1, 1], [], []>} : vector<4x256xbf16>, vector<256x512xbf16>, vector<4x512xf32> -> vector<4x512xf32>
    %c0_124 = arith.constant 0 : index
    %c0_125 = arith.constant 0 : index
    %139 = vector.load %arg11[%c0_124, %c0_125] : memref<1x512xf32, #tpu.memory_space<vmem>>, vector<1x512xf32>
    %140 = vector.broadcast %139 : vector<1x512xf32> to vector<4x512xf32>
    %141 = arith.addf %138, %140 : vector<4x512xf32>
    %cst_126 = arith.constant 0.000000e+00 : f32
    %142 = vector.broadcast %cst_126 : f32 to vector<4x512xf32>
    %143 = arith.maximumf %141, %142 : vector<4x512xf32>
    %144 = arith.truncf %143 : vector<4x512xf32> to vector<4x512xbf16>
    %c0_127 = arith.constant 0 : index
    %c0_128 = arith.constant 0 : index
    %145 = vector.load %arg12[%c0_127, %c0_128] : memref<512x64xbf16, #tpu.memory_space<vmem>>, vector<512x64xbf16>
    %cst_129 = arith.constant dense<0.000000e+00> : vector<4x64xf32>
    %146 = tpu.matmul %144, %145, %cst_129 {dimension_numbers = #tpu.dot_dimension_numbers<[1], [0], [0], [1], [0, 0, 1, 1], [], []>} : vector<4x512xbf16>, vector<512x64xbf16>, vector<4x64xf32> -> vector<4x64xf32>
    %c0_130 = arith.constant 0 : index
    %c0_131 = arith.constant 0 : index
    %147 = vector.load %arg13[%c0_130, %c0_131] : memref<1x64xf32, #tpu.memory_space<vmem>>, vector<1x64xf32>
    %148 = vector.broadcast %147 : vector<1x64xf32> to vector<4x64xf32>
    %149 = arith.addf %146, %148 : vector<4x64xf32>
    %150 = arith.negf %149 : vector<4x64xf32>
    %151 = math.exp %150 : vector<4x64xf32>
    %cst_132 = arith.constant 1.000000e+00 : f32
    %152 = vector.broadcast %cst_132 : f32 to vector<4x64xf32>
    %153 = arith.addf %152, %151 : vector<4x64xf32>
    %154 = arith.divf %152, %153 : vector<4x64xf32>
    %155 = arith.truncf %154 : vector<4x64xf32> to vector<4x64xbf16>
    %c0_133 = arith.constant 0 : index
    %c0_134 = arith.constant 0 : index
    %c0_135 = arith.constant 0 : index
    %156 = vector.load %arg14[%c0_133, %c0_134, %c0_135] : memref<1x4x64xbf16, #tpu.memory_space<vmem>>, vector<1x4x64xbf16>
    %157 = vector.shape_cast %156 : vector<1x4x64xbf16> to vector<4x64xbf16>
    %158 = vector.shape_cast %155 : vector<4x64xbf16> to vector<1x4x64xbf16>
    tpu.vector_store %arg14[%c0_133, %c0_134, %c0_135], %158 {strides = array<i32>} : memref<1x4x64xbf16, #tpu.memory_space<vmem>>, vector<1x4x64xbf16>,
    return
  }
  func.func @transform_0(%arg0: i32) -> (i32, i32) {
    %c0_i32 = arith.constant 0 : i32
    %c0_i32_0 = arith.constant 0 : i32
    return %arg0, %c0_i32 : i32, i32
  }
  func.func @transform_1(%arg0: i32) -> (i32, i32) {
    %c0_i32 = arith.constant 0 : i32
    %c0_i32_0 = arith.constant 0 : i32
    %c0_i32_1 = arith.constant 0 : i32
    return %c0_i32, %c0_i32_0 : i32, i32
  }
  func.func @transform_2(%arg0: i32) -> (i32, i32) {
    %c0_i32 = arith.constant 0 : i32
    %c0_i32_0 = arith.constant 0 : i32
    %c0_i32_1 = arith.constant 0 : i32
    return %c0_i32, %c0_i32_0 : i32, i32
  }
  func.func @transform_3(%arg0: i32) -> (i32, i32, i32) {
    %c0_i32 = arith.constant 0 : i32
    %c0_i32_0 = arith.constant 0 : i32
    %c0_i32_1 = arith.constant 0 : i32
    %c0_i32_2 = arith.constant 0 : i32
    return %c0_i32, %c0_i32_0, %c0_i32_1 : i32, i32, i32
  }
  func.func @transform_4(%arg0: i32) -> (i32, i32) {
    %c0_i32 = arith.constant 0 : i32
    %c0_i32_0 = arith.constant 0 : i32
    %c0_i32_1 = arith.constant 0 : i32
    return %c0_i32, %c0_i32_0 : i32, i32
  }
  func.func @transform_5(%arg0: i32) -> (i32, i32, i32) {
    %c0_i32 = arith.constant 0 : i32
    %c0_i32_0 = arith.constant 0 : i32
    %c0_i32_1 = arith.constant 0 : i32
    %c0_i32_2 = arith.constant 0 : i32
    return %c0_i32, %c0_i32_0, %c0_i32_1 : i32, i32, i32
  }
  func.func @transform_6(%arg0: i32) -> (i32, i32) {
    %c0_i32 = arith.constant 0 : i32
    %c0_i32_0 = arith.constant 0 : i32
    %c0_i32_1 = arith.constant 0 : i32
    return %c0_i32, %c0_i32_0 : i32, i32
  }
  func.func @transform_7(%arg0: i32) -> (i32, i32) {
    %c0_i32 = arith.constant 0 : i32
    %c0_i32_0 = arith.constant 0 : i32
    %c0_i32_1 = arith.constant 0 : i32
    return %c0_i32, %c0_i32_0 : i32, i32
  }
  func.func @transform_8(%arg0: i32) -> (i32, i32) {
    %c0_i32 = arith.constant 0 : i32
    %c0_i32_0 = arith.constant 0 : i32
    %c0_i32_1 = arith.constant 0 : i32
    return %c0_i32, %c0_i32_0 : i32, i32
  }
  func.func @transform_9(%arg0: i32) -> (i32, i32) {
    %c0_i32 = arith.constant 0 : i32
    %c0_i32_0 = arith.constant 0 : i32
    %c0_i32_1 = arith.constant 0 : i32
    return %c0_i32, %c0_i32_0 : i32, i32
  }
  func.func @transform_10(%arg0: i32) -> (i32, i32) {
    %c0_i32 = arith.constant 0 : i32
    %c0_i32_0 = arith.constant 0 : i32
    %c0_i32_1 = arith.constant 0 : i32
    return %c0_i32, %c0_i32_0 : i32, i32
  }
  func.func @transform_11(%arg0: i32) -> (i32, i32) {
    %c0_i32 = arith.constant 0 : i32
    %c0_i32_0 = arith.constant 0 : i32
    %c0_i32_1 = arith.constant 0 : i32
    return %c0_i32, %c0_i32_0 : i32, i32
  }
  func.func @transform_12(%arg0: i32) -> (i32, i32) {
    %c0_i32 = arith.constant 0 : i32
    %c0_i32_0 = arith.constant 0 : i32
    %c0_i32_1 = arith.constant 0 : i32
    return %c0_i32, %c0_i32_0 : i32, i32
  }
  func.func @transform_13(%arg0: i32) -> (i32, i32, i32) {
    %c0_i32 = arith.constant 0 : i32
    %c0_i32_0 = arith.constant 0 : i32
    %c0_i32_1 = arith.constant 0 : i32
    return %arg0, %c0_i32, %c0_i32_0 : i32, i32, i32
  }
}

</mosaic_0001>

<bundles_post_ra>
// kernel: tile.31
= control target key start
LH: loop header
LB: loop body
LE: loop exit
PB: predicated region body
PF: predicated region fallthrough
CT: control target
= control target key end

     0   :  { %s22_s0 = inlined_call_operand.vmem [shape: f32[32], index: 0, kind: input, shape index: {}]   ;;  %s23_s1 = inlined_call_operand.vmem [shape: f32[4,32], index: 1, kind: output, shape index: {}]  }
   0x1   :  { %v4_v0 = vld [vmem:[%s22_s0] ss:$0 sm:$0xff] }
   0x2   :  { %5 = vst [vmem:[%s23_s1] sm:$0xf] %v4_v0 }

// kernel: tile.34
= control target key start
LH: loop header
LB: loop body
LE: loop exit
PB: predicated region body
PF: predicated region fallthrough
CT: control target
= control target key end

     0   :  { %s37_s8 = smov 32   ;;  %s38_s9 = smov 64   ;;  %vm7_vm0 = vcmask 261120   ;;  %vm13_vm1 = vcmask 1048320   ;;  %vm19_vm2 = vcmask 785920   ;;  %vm25_vm3 = vcmask 523520   ;;  %s55_s0 = inlined_call_operand.vmem [shape: f32[4,32], index: 0, kind: input, shape index: {}]   ;;  %s56_s1 = inlined_call_operand.vmem [shape: f32[128], index: 1, kind: output, shape index: {}]  }
   0x1   :  { %v4_v0 = vld [vmem:[%s55_s0] sm:$0xf]  ;;  %s36_s0 = smov 96  }
   0x2   :  { %5 = vst [vmem:[#allocation1] sm:$0xf] %v4_v0 }
   0x9   :  { %v10_v1 = vld [vmem:[#allocation1 + $0x3] sm:$0x1]   ;;  %v22_v2 = vld [vmem:[#allocation1 + $0x1] sm:$0x1]   ;;  %v16_v3 = vld [vmem:[#allocation1 + $0x2] sm:$0x1]  }
   0xa   :  { %11 = vrot.lane.b32.xlu0 %v10_v1, %s36_s0  ;;  %23 = vrot.lane.b32.xlu1 %v22_v2, %s37_s8  ;;  %v6_v4 = vld [vmem:[#allocation1] sm:$0x1]  }
   0xb   :  { %8 = vst.msk [vmem:[#allocation0] sm:$0x1] %vm7_vm0, %v6_v4  }
  0x12   :  { %17 = vrot.lane.b32.xlu0 %v16_v3, %s38_s9 }
  0x7c   :  { %v12_v5 = vpop.permute.xlu0 %11   ;;  %v24_v6 = vpop.permute.xlu1 %23  }
  0x7d   :  { %14 = vst.msk [vmem:[#allocation0] sm:$0x1] %vm13_vm1, %v12_v5  }
  0x84   :  { %v18_v7 = vpop.permute.xlu0 %17  }
  0x85   :  { %20 = vst.msk [vmem:[#allocation0] sm:$0x1] %vm19_vm2, %v18_v7  }
  0x86   :  { %26 = vst.msk [vmem:[#allocation0] sm:$0x1] %vm25_vm3, %v24_v6  }
  0x8d   :  { %v29_v8 = vld [vmem:[#allocation0] sm:$0x1] }
  0x8e   :  { %32 = vst [vmem:[%s56_s1] sm:$0x1] %v29_v8 }

// kernel: tile.35
= control target key start
LH: loop header
LB: loop body
LE: loop exit
PB: predicated region body
PF: predicated region fallthrough
CT: control target
= control target key end

     0   :  { %s22_s0 = inlined_call_operand.vmem [shape: f32[128], index: 0, kind: input, shape index: {}]   ;;  %s23_s1 = inlined_call_operand.vmem [shape: f32[4,128], index: 1, kind: output, shape index: {}]  }
   0x1   :  { %v4_v0 = vld [vmem:[%s22_s0] ss:$0 sm:$0xff] }
   0x2   :  { %5 = vst [vmem:[%s23_s1] sm:$0xf] %v4_v0 }

// kernel: tile.26
= control target key start
LH: loop header
LB: loop body
LE: loop exit
PB: predicated region body
PF: predicated region fallthrough
CT: control target
= control target key end

     0   :  { %s22_s0 = inlined_call_operand.vmem [shape: f32[64], index: 0, kind: input, shape index: {}]   ;;  %s23_s1 = inlined_call_operand.vmem [shape: f32[4,64], index: 1, kind: output, shape index: {}]  }
   0x1   :  { %v4_v0 = vld [vmem:[%s22_s0] ss:$0 sm:$0xff] }
   0x2   :  { %5 = vst [vmem:[%s23_s1] sm:$0xf] %v4_v0 }

// kernel: tile.27
= control target key start
LH: loop header
LB: loop body
LE: loop exit
PB: predicated region body
PF: predicated region fallthrough
CT: control target
= control target key end

     0   :  { %s6_s8 = smov 3  ;;  %vm8_vm0 = vcmask 523264   ;;  %s31_s9 = smov 64   ;;  %vm15_vm1 = vcmask 1048064   ;;  %s51_s0 = inlined_call_operand.vmem [shape: f32[4,64], index: 0, kind: input, shape index: {}]   ;;  %s52_s1 = inlined_call_operand.vmem [shape: f32[1,256], index: 1, kind: output, shape index: {}]  }
   0x1   :  { %v4_v0 = vld [vmem:[%s51_s0] sm:$0xf]  ;;  %s11_s0 = smov 3 }
   0x2   :  { %5 = vst [vmem:[#allocation1] sm:$0xf] %v4_v0 }
   0x9   :  { %v12_v1 = vld [vmem:[#allocation1 + $0x1] ss:$2 sm:%s11_s0]   ;;  %v7_v2 = vld [vmem:[#allocation1] ss:$2 sm:%s6_s8]  }
   0xa   :  { %13 = vrot.lane.b32.xlu0 %v12_v1, %s31_s9  ;;  %9 = vst.msk [vmem:[#allocation0] ss:$8 sm:$0x3] %vm8_vm0, %v7_v2  }
  0x7c   :  { %v14_v3 = vpop.permute.xlu0 %13  }
  0x7d   :  { %16 = vst.msk [vmem:[#allocation0] ss:$8 sm:$0x3] %vm15_vm1, %v14_v3  }
  0x84   :  { %v19_v4 = vld [vmem:[#allocation0] sm:$0x1]  ;;  %v24_v5 = vld [vmem:[#allocation0 + $0x8] sm:$0x1] }
  0x85   :  { %22 = vst [vmem:[%s52_s1] sm:$0x1] %v19_v4 }
  0x86   :  { %29 = vst [vmem:[%s52_s1 + $0x1] sm:$0x1] %v24_v5 }

// kernel: forward.1
= control target key start
LH: loop header
LB: loop body
LE: loop exit
PB: predicated region body
PF: predicated region fallthrough
CT: control target
= control target key end

     0   :  { %s4889_s25 = smov 0   ;;  %s6201_s0 = inlined_call_operand.vmem [shape: bf16[512,16], index: 0, kind: input, shape index: {}]   ;;  %s6202_s1 = inlined_call_operand.vmem [shape: bf16[16,32], index: 1, kind: input, shape index: {}]   ;;  %s6203_s2 = inlined_call_operand.vmem [shape: f32[1,32], index: 2, kind: input, shape index: {}]   ;;  %s6204_s3 = inlined_call_operand.vmem [shape: bf16[3,96,64], index: 3, kind: input, shape index: {}]   ;;  %s6205_s4 = inlined_call_operand.vmem [shape: f32[1,64], index: 4, kind: input, shape index: {}]   ;;  %s6206_s5 = inlined_call_operand.vmem [shape: bf16[3,192,128], index: 5, kind: input, shape index: {}]   ;;  %s6207_s6 = inlined_call_operand.vmem [shape: f32[1,128], index: 6, kind: input, shape index: {}]   ;;  %s6208_s7 = inlined_call_operand.vmem [shape: bf16[128,256], index: 7, kind: input, shape index: {}]   ;;  %s6209_s8 = inlined_call_operand.vmem [shape: f32[1,256], index: 8, kind: input, shape index: {}]   ;;  %s6210_s9 = inlined_call_operand.vmem [shape: bf16[256,512], index: 9, kind: input, shape index: {}]   ;;  %s6211_s10 = inlined_call_operand.vmem [shape: f32[1,512], index: 10, kind: input, shape index: {}]   ;;  %s6212_s11 = inlined_call_operand.vmem [shape: bf16[512,64], index: 11, kind: input, shape index: {}]   ;;  %s6213_s12 = inlined_call_operand.vmem [shape: f32[1,64], index: 12, kind: input, shape index: {}]   ;;  %s6214_s13 = inlined_call_operand.vmem [shape: bf16[2,4,64], index: 13, kind: output, shape index: {}]  }
   0x1 LB: > { %s4895_s26 = sadd.s32 4294967295, %s4814_s25   ;;  %p3652_p0 = scmp.ge.s32.totalorder %s4814_s25, 1  ;;  %s4814_s25 = sphi %s4889_s25, %s23_s25  }
   0x2   : > { %p388_p1 = scmp.lt.s32.totalorder %s4814_s25, 3 }
   0x4   : > { %p389_p2 = pnand %p3652_p0, %p388_p1 }
   0x5   : > { %s3653_s29 = sshll.u32 (!%p389_p2), %s4895_s26, 5  ;;  %s4817_s19 = smov (!%p389_p2), 32  }
   0x6   : > { %392 = sbr.rel (%p389_p2) target bundleno = 1566 (0x61e), region = 72  ;;  %p432_p3 = scmp.lt.s32.totalorder (!%p389_p2), %s3653_s29, 63 }
   0x7   : > { %s4818_s20 = smov (!%p389_p2), 64   ;;  %p437_p4 = scmp.lt.s32.totalorder (!%p389_p2), %s4895_s26, 1 }
   0xb   : > { %v4542_v0 = vld [vmem:[%s6202_s1] sm:$0xff]  ;;  %s6245_s29 = smov (!%p432_p3, %s3653_s29), 63  ;;  %vm590_vm0 = vcmask 130048   ;;  %vm760_vm1 = vcmask 261120   ;;  %vm442_vm2 = vcmask 257024   ;;  %v4816_v16 = vmov 0  }
   0xc   : > { %646 = vmatpush.bf16.msra.mxu0 %v4542_v0  ;;  %4779 = vmatpush.bf16.msra.mxu1 %v4542_v0  ;;  %s3654_s30 = sshll.u32 %s6245_s29, 2  ;;  %v4927_v9 = vld [vmem:[%s6203_s2] ss:$0 sm:$0xff]  ;;  %443 = vst.msk [vmem:[#allocation3] sm:$0xf] %vm442_vm2, %v4816_v16  ;;  %vm456_vm3 = vcmask 254976  }
   0xd   : > { %s4906_s16 = scalar_lea.vmem %s6201_s0, %s3654_s30  ;;  %444 = vst.msk [vmem:[#allocation3 + $0x4] sm:$0xf] %vm442_vm2, %v4816_v16  ;;  %vm893_vm4 = vsmask.f32 7942  ;;  %vm892_vm5 = vcmask 257025   ;;  %vm916_vm12 = vcmask 257026  }
   0xe   : > { %v4543_v1 = vld [vmem:[%s4906_s16] sm:$0xff]  ;;  %v4544_v2 = vld [vmem:[%s4906_s16 + $0x8] sm:$0xff]  ;;  %v4545_v3 = vld [vmem:[%s4906_s16 + $0x10] sm:$0xff]  ;;  %445 = vst.msk [vmem:[#allocation3 + $0x8] sm:$0xf] %vm442_vm2, %v4816_v16  ;;  %vm922_vm14 = vcmask 256000  }
   0xf   : > { %3724 = vmatmul.msk.bf16.vlgmr.msra.gmra.mxu0 %vm590_vm0, %v4543_v1  ;;  %v4546_v4 = vld [vmem:[%s4906_s16 + $0x18] sm:$0xff]  ;;  %v4547_v5 = vld [vmem:[%s4906_s16 + $0x20] sm:$0xff]  ;;  %v4548_v6 = vld [vmem:[%s4906_s16 + $0x28] sm:$0xff]  ;;  %446 = vst.msk [vmem:[#allocation3 + $0xc] sm:$0xf] %vm442_vm2, %v4816_v16  ;;  %s6247_s26 = smov (!%p437_p4, %s4895_s26), 1 }
  0x10   : > { %v4549_v7 = vld [vmem:[%s4906_s16 + $0x30] sm:$0xff]  ;;  %v4550_v8 = vld [vmem:[%s4906_s16 + $0x38] sm:$0xff]  ;;  %v4551_v10 = vld [vmem:[%s4906_s16 + $0x40] sm:$0xff]  ;;  %447 = vst.msk [vmem:[#allocation3 + $0x10] sm:$0xf] %vm442_vm2, %v4816_v16 }
  0x11   : > { %v4552_v18 = vld [vmem:[%s4906_s16 + $0x48] sm:$0xff]  ;;  %448 = vst.msk [vmem:[#allocation3 + $0x14] sm:$0xf] %vm442_vm2, %v4816_v16  ;;  %v4553_v25 = vld [vmem:[%s4906_s16 + $0x50] sm:$0xff]  ;;  %vm6216_vm6 = vsmask.f32 1280  ;;  %vm4973_vm7 = vmand %vm892_vm5, %vm893_vm4 }
  0x12   : > { %449 = vst.msk [vmem:[#allocation3 + $0x18] sm:$0xf] %vm442_vm2, %v4816_v16  ;;  %v4554_v50 = vld [vmem:[%s4906_s16 + $0x58] sm:$0xff]  ;;  %vm4980_vm8 = vmand %vm456_vm3, %vm6216_vm6  ;;  %vm947_vm9 = vsmask.f32 3328 }
  0x13   : > { %450 = vst.msk [vmem:[#allocation3 + $0x1c] sm:$0xf] %vm442_vm2, %v4816_v16  ;;  %v1071_v42 = vld [vmem:[#allocation3] sm:$0xf]  ;;  %vm1084_vm10 = vsmask.f32 7440 }
  0x14   : > { %451 = vst.msk [vmem:[#allocation3 + $0x20] sm:$0xf] %vm442_vm2, %v4816_v16  ;;  %v895_v46 = vld [vmem:[#allocation3 + $0x4] sm:$0xe]  ;;  %v1087_v47 = vshrl.u32 %v1071_v42, 16  ;;  %v1090_v48 = vshll.u32 %v1071_v42, 16  ;;  %vm4995_vm11 = vmor %vm947_vm9, %vm1084_vm10 }
  0x15   : > { %452 = vst.msk [vmem:[#allocation3 + $0x24] sm:$0xf] %vm442_vm2, %v4816_v16  ;;  %v901_v53 = vld [vmem:[#allocation3 + $0x8] sm:$0x3]  ;;  %vm6215_vm13 = vsmask.f32 7946 }
  0x16   : > { %453 = vst.msk [vmem:[#allocation3 + $0x28] sm:$0xf] %vm442_vm2, %v4816_v16  ;;  %v1089_v57 = vrot.slane %v1087_v47, 4  ;;  %v1092_v58 = vrot.slane %v1090_v48, 5  ;;  %vm923_vm15 = vsmask.f32 2304  ;;  %vm5011_vm4 = vmand %vm916_vm12, %vm6215_vm13 }
  0x17   : > { %454 = vst.msk [vmem:[#allocation3 + $0x2c] sm:$0xf] %vm442_vm2, %v4816_v16  ;;  %vm5016_vm5 = vmand %vm922_vm14, %vm923_vm15  ;;  %vm940_vm10 = vcmask 257027   ;;  %vm6217_vm12 = vsmask.f32 7950  ;;  %vm1296_vm15 = vcmask 1046532  }
  0x18   : > { %455 = vst.msk [vmem:[#allocation3 + $0x30] sm:$0xf] %vm442_vm2, %v4816_v16  ;;  %v1093_v61 = vor.u32 %v1092_v58, %v1089_v57  ;;  %vm5042_vm14 = vmand %vm940_vm10, %vm6217_vm12  ;;  %vm969_vm13 = vsmask.f32 256 }
  0x1f   : > { %3725 = vmatmul.msk.bf16.gmra.mxu0 %vm590_vm0, %v4544_v2  ;;  %v1094_v2 = vrot.slane %v1093_v61, 4 }
  0x2f   : > { %3726 = vmatmul.msk.bf16.gmra.mxu0 %vm590_vm0, %v4545_v3 }
  0x3f   : > { %3727 = vmatmul.msk.bf16.gmra.mxu0 %vm590_vm0, %v4546_v4  ;;  %v4558_v4 = vld [vmem:[%s4906_s16 + $0x78] sm:$0xff] }
  0x40   : > { %3739 = vmatmul.msk.bf16.vlgmr.msra.gmra.mxu1 %vm590_vm0, %v4558_v4 }
  0x4f   : > { %3728 = vmatmul.msk.bf16.gmra.mxu0 %vm590_vm0, %v4547_v5 }
  0x5f   : > { %3729 = vmatmul.msk.bf16.gmra.mxu0 %vm590_vm0, %v4548_v6  ;;  %v4601_v6 = vld [vmem:[%s6206_s5 + $0x90] sm:$0xff] }
  0x6f   : > { %3730 = vmatmul.msk.bf16.gmra.mxu0 %vm590_vm0, %v4549_v7 }
  0x7f   : > { %3731 = vmatmul.msk.bf16.gmra.mxu0 %vm590_vm0, %v4550_v8 }
  0x8c   : > { %v648_v11 = vpop.f32.mrf.mxu0 }
  0x8d   : > { %v649_v12 = vadd.f32 %v4927_v9, %v648_v11 }
  0x8f   : > { %v728_v13 = vmax.f32 %v649_v12, 0.0  ;;  %3732 = vmatmul.msk.bf16.gmra.mxu0 %vm590_vm0, %v4551_v10  ;;  %v4555_v10 = vld [vmem:[%s4906_s16 + $0x60] sm:$0xff] }
  0x91   : > { %761 = vst.msk [vmem:[#allocation2] sm:$0xff] %vm760_vm1, %v728_v13 }
  0x94   : > { %v650_v14 = vpop.f32.mrf.mxu0 }
  0x95   : > { %v651_v15 = vadd.f32 %v4927_v9, %v650_v14 }
  0x97   : > { %v729_v17 = vmax.f32 %v651_v15, 0.0 }
  0x99   : > { %762 = vst.msk [vmem:[#allocation2 + $0x8] sm:$0xff] %vm760_vm1, %v729_v17 }
  0x9c   : > { %v653_v19 = vpop.f32.mrf.mxu0 }
  0x9d   : > { %v654_v20 = vadd.f32 %v4927_v9, %v653_v19 }
  0x9f   : > { %v730_v21 = vmax.f32 %v654_v20, 0.0  ;;  %3733 = vmatmul.msk.bf16.gmra.mxu0 %vm590_vm0, %v4552_v18 }
  0xa0   : > { %v793_v28 = vld [vmem:[#allocation2] ss:$2 sm:$0xff]  ;;  %v809_v29 = vld [vmem:[#allocation2 + $0x1] ss:$2 sm:$0xff] }
  0xa1   : > { %763 = vst.msk [vmem:[#allocation2 + $0x10] sm:$0xff] %vm760_vm1, %v730_v21  ;;  %v856_v33 = vmax.f32 %v793_v28, %v809_v29 }
  0xa4   : > { %v655_v22 = vpop.f32.mrf.mxu0 }
  0xa5   : > { %v656_v23 = vadd.f32 %v4927_v9, %v655_v22 }
  0xa7   : > { %v731_v24 = vmax.f32 %v656_v23, 0.0 }
  0xa9   : > { %764 = vst.msk [vmem:[#allocation2 + $0x18] sm:$0xff] %vm760_vm1, %v731_v24 }
  0xac   : > { %v658_v26 = vpop.f32.mrf.mxu0 }
  0xad   : > { %v659_v27 = vadd.f32 %v4927_v9, %v658_v26 }
  0xaf   : > { %v732_v30 = vmax.f32 %v659_v27, 0.0  ;;  %3734 = vmatmul.msk.bf16.gmra.mxu0 %vm590_vm0, %v4553_v25 }
  0xb0   : > { %v825_v31 = vld [vmem:[#allocation2 + $0x10] ss:$2 sm:$0xff]  ;;  %v841_v32 = vld [vmem:[#allocation2 + $0x11] ss:$2 sm:$0xff] }
  0xb1   : > { %v864_v34 = vmax.f32 %v825_v31, %v841_v32  ;;  %765 = vst.msk [vmem:[#allocation2 + $0x20] sm:$0xff] %vm760_vm1, %v732_v30  ;;  %v919_v31 = vld [vmem:[#allocation3 + $0x8] sm:$0xc] }
  0xb3   : > { %v872_v35 = vmax.f32 %v856_v33, %v864_v34  ;;  %v4556_v33 = vld [vmem:[%s4906_s16 + $0x68] sm:$0xff] }
  0xb4   : > { %v660_v36 = vpop.f32.mrf.mxu0 }
  0xb5   : > { %v880_v37 = vpack.c.bf16 %v872_v35, %v872_v35  ;;  %v661_v38 = vadd.f32 %v4927_v9, %v660_v36 }
  0xb7   : > { %v882_v39 = vshrl.u32 %v880_v37, 16  ;;  %v885_v40 = vshll.u32 %v880_v37, 16  ;;  %v733_v41 = vmax.f32 %v661_v38, 0.0  ;;  %v925_v37 = vld [vmem:[#allocation3 + $0xc] sm:$0x7] }
  0xb9   : > { %v884_v43 = vrot.slane %v882_v39, 6  ;;  %v887_v44 = vrot.slane %v885_v40, 7  ;;  %766 = vst.msk [vmem:[#allocation2 + $0x28] sm:$0xff] %vm760_vm1, %v733_v41 }
  0xbb   : > { %v888_v49 = vor.u32 %v887_v44, %v884_v43 }
  0xbc   : > { %v663_v51 = vpop.f32.mrf.mxu0 }
  0xbd   : > { %v889_v54 = vrot.slane %v888_v49, 4  ;;  %v664_v55 = vadd.f32 %v4927_v9, %v663_v51  ;;  %v896_v56 = vsel %vm4973_vm7, %v888_v49, %v895_v46 }
  0xbe   : > { %897 = vst [vmem:[#allocation3 + $0x4] sm:$0xe] %v896_v56  ;;  %v4557_v56 = vld [vmem:[%s4906_s16 + $0x70] sm:$0xff]  ;;  %s3655_s16 = sshll.u32 %s6247_s26, 1 }
  0xbf   : > { %v734_v59 = vmax.f32 %v664_v55, 0.0  ;;  %3735 = vmatmul.msk.bf16.gmra.mxu0 %vm590_vm0, %v4554_v50  ;;  %v902_v60 = vsel %vm4980_vm8, %v889_v54, %v901_v53  ;;  %s440_s21 = scalar_lea.vmem %s6214_s13, %s3655_s16 }
  0xc0   : > { %903 = vst [vmem:[#allocation3 + $0x8] sm:$0x3] %v902_v60  ;;  %v795_v13 = vld [vmem:[#allocation2 + $0x20] ss:$2 sm:$0xff]  ;;  %v811_v14 = vld [vmem:[#allocation2 + $0x21] ss:$2 sm:$0xff] }
  0xc1   : > { %767 = vst.msk [vmem:[#allocation2 + $0x30] sm:$0xff] %vm760_vm1, %v734_v59  ;;  %v857_v19 = vmax.f32 %v795_v13, %v811_v14 }
  0xc4   : > { %v665_v62 = vpop.f32.mrf.mxu0 }
  0xc5   : > { %v666_v63 = vadd.f32 %v4927_v9, %v665_v62  ;;  %v1072_v0 = vld [vmem:[#allocation3 + $0x4] sm:$0xf] }
  0xc6   : > { %v1046_v1 = vld [vmem:[#allocation3 + $0x4] sm:$0xf]  ;;  %v1096_v3 = vshll.u32 %v1072_v0, 16  ;;  %v1100_v34 = vshrl.u32 %v1072_v0, 16 }
  0xc7   : > { %1059 = vst.msk [vmem:[#allocation4 + $0x4] sm:$0xf] %vm442_vm2, %v1046_v1  ;;  %v735_v5 = vmax.f32 %v666_v63, 0.0 }
  0xc8   : > { %v1098_v7 = vrot.slane %v1096_v3, 5  ;;  %v1102_v43 = vrot.slane %v1100_v34, 4 }
  0xc9   : > { %768 = vst.msk [vmem:[#allocation2 + $0x38] sm:$0xff] %vm760_vm1, %v735_v5 }
  0xca   : > { %v1099_v8 = vsel %vm4995_vm11, %v1094_v2, %v1098_v7  ;;  %v1103_v46 = vor.u32 %v1102_v43, %v1098_v7 }
  0xcb   : > { %1215 = vrot.lane.b32.xlu2 %v1099_v8, %s4817_s19 }
  0xcc   : > { %v668_v11 = vpop.f32.mrf.mxu0  ;;  %v1104_v53 = vrot.slane %v1103_v46, 4 }
  0xcd   : > { %v669_v12 = vadd.f32 %v4927_v9, %v668_v11 }
  0xcf   : > { %v736_v15 = vmax.f32 %v669_v12, 0.0  ;;  %3736 = vmatmul.msk.bf16.gmra.mxu0 %vm590_vm0, %v4555_v10  ;;  %v943_v12 = vld [vmem:[#allocation3 + $0xc] sm:$0x8] }
  0xd0   : > { %v827_v17 = vld [vmem:[#allocation2 + $0x30] ss:$2 sm:$0xff]  ;;  %v843_v18 = vld [vmem:[#allocation2 + $0x31] ss:$2 sm:$0xff] }
  0xd1   : > { %v865_v20 = vmax.f32 %v827_v17, %v843_v18  ;;  %769 = vst.msk [vmem:[#allocation2 + $0x40] sm:$0xff] %vm760_vm1, %v736_v15 }
  0xd3   : > { %v873_v21 = vmax.f32 %v857_v19, %v865_v20  ;;  %v949_v20 = vld [vmem:[#allocation3 + $0x10] sm:$0xf] }
  0xd4   : > { %v670_v22 = vpop.f32.mrf.mxu0 }
  0xd5   : > { %v904_v23 = vpack.c.bf16 %v873_v21, %v873_v21  ;;  %v671_v24 = vadd.f32 %v4927_v9, %v670_v22 }
  0xd7   : > { %v906_v25 = vshrl.u32 %v904_v23, 16  ;;  %v909_v26 = vshll.u32 %v904_v23, 16  ;;  %v737_v27 = vmax.f32 %v671_v24, 0.0 }
  0xd9   : > { %v908_v28 = vrot.slane %v906_v25, 5  ;;  %v911_v29 = vrot.slane %v909_v26, 6  ;;  %770 = vst.msk [vmem:[#allocation2 + $0x48] sm:$0xff] %vm760_vm1, %v737_v27 }
  0xdb   : > { %v912_v32 = vor.u32 %v911_v29, %v908_v28 }
  0xdc   : > { %v673_v35 = vpop.f32.mrf.mxu0 }
  0xdd   : > { %v674_v38 = vadd.f32 %v4927_v9, %v673_v35  ;;  %v920_v39 = vsel %vm5011_vm4, %v912_v32, %v919_v31  ;;  %v913_v40 = vrot.slane %v912_v32, 4 }
  0xde   : > { %921 = vst [vmem:[#allocation3 + $0x8] sm:$0xc] %v920_v39  ;;  %v1045_v39 = vld [vmem:[#allocation3] sm:$0xf] }
  0xdf   : > { %v738_v41 = vmax.f32 %v674_v38, 0.0  ;;  %3737 = vmatmul.msk.bf16.gmra.mxu0 %vm590_vm0, %v4556_v33  ;;  %v926_v42 = vsel %vm5016_vm5, %v913_v40, %v925_v37  ;;  %1058 = vst.msk [vmem:[#allocation4] sm:$0xf] %vm442_vm2, %v1045_v39  ;;  %v4605_v38 = vld [vmem:[%s6206_s5 + $0xb0] sm:$0xff] }
  0xe0   : > { %927 = vst [vmem:[#allocation3 + $0xc] sm:$0x7] %v926_v42  ;;  %v797_v59 = vld [vmem:[#allocation2 + $0x40] ss:$2 sm:$0xff]  ;;  %v813_v60 = vld [vmem:[#allocation2 + $0x41] ss:$2 sm:$0xff] }
  0xe1   : > { %771 = vst.msk [vmem:[#allocation2 + $0x50] sm:$0xff] %vm760_vm1, %v738_v41  ;;  %v858_v0 = vmax.f32 %v797_v59, %v813_v60 }
  0xe4   : > { %v675_v44 = vpop.f32.mrf.mxu0 }
  0xe5   : > { %v676_v47 = vadd.f32 %v4927_v9, %v675_v44  ;;  %v1073_v48 = vld [vmem:[#allocation3 + $0x8] sm:$0xf] }
  0xe6   : > { %v1047_v49 = vld [vmem:[#allocation3 + $0x8] sm:$0xf]  ;;  %v1106_v50 = vshll.u32 %v1073_v48, 16  ;;  %v1110_v26 = vshrl.u32 %v1073_v48, 16 }
  0xe7   : > { %1060 = vst.msk [vmem:[#allocation4 + $0x8] sm:$0xf] %vm442_vm2, %v1047_v49  ;;  %v739_v51 = vmax.f32 %v676_v47, 0.0  ;;  %v5056_v23 = vld [vmem:[#allocation3 + $0x8] sm:$0xf] }
  0xe8   : > { %v5029_v54 = vrot.slane %v1106_v50, 5  ;;  %v1303_v27 = vrot.slane %v5056_v23, 5  ;;  %v1112_v35 = vrot.slane %v1110_v26, 4  ;;  %v986_v23 = vld [vmem:[#allocation3 + $0x18] sm:$0xe] }
  0xe9   : > { %772 = vst.msk [vmem:[#allocation2 + $0x58] sm:$0xff] %vm760_vm1, %v739_v51 }
  0xea   : > { %v1109_v55 = vsel %vm4995_vm11, %v1104_v53, %v5029_v54  ;;  %v1305_v33 = vrot.slane %v1303_v27, 4  ;;  %v1113_v48 = vor.u32 %v1112_v35, %v5029_v54 }
  0xeb   : > { %1217 = vrot.lane.b32.xlu2 %v1109_v55, %s4817_s19 }
  0xec   : > { %v678_v57 = vpop.f32.mrf.mxu0 }
  0xed   : > { %v679_v58 = vadd.f32 %v4927_v9, %v678_v57  ;;  %v1114_v57 = vrot.slane %v1113_v48, 4 }
  0xef   : > { %v740_v61 = vmax.f32 %v679_v58, 0.0  ;;  %3738 = vmatmul.msk.bf16.gmra.mxu0 %vm590_vm0, %v4557_v56  ;;  %vm5051_vm0 = vmand %vm442_vm2, %vm947_vm9  ;;  %vm1295_vm9 = vcmask 1042432  }
  0xf0   : > { %v829_v62 = vld [vmem:[#allocation2 + $0x50] ss:$2 sm:$0xff]  ;;  %v845_v63 = vld [vmem:[#allocation2 + $0x51] ss:$2 sm:$0xff]  ;;  %vm5066_vm10 = vmor %vm1295_vm9, %vm1296_vm15  ;;  %vm963_vm9 = vsmask.f32 7938 }
  0xf1   : > { %v866_v1 = vmax.f32 %v829_v62, %v845_v63  ;;  %773 = vst.msk [vmem:[#allocation2 + $0x60] sm:$0xff] %vm760_vm1, %v740_v61  ;;  %vm968_vm15 = vcmask 253952   ;;  %vm5096_vm6 = vmand %vm442_vm2, %vm963_vm9  ;;  %vm1254_vm9 = vcmask 519424  }
  0xf2   : > { %vm5101_vm12 = vmand %vm968_vm15, %vm969_vm13 }
  0xf3   : > { %v874_v2 = vmax.f32 %v858_v0, %v866_v1 }
  0xf4   : > { %v680_v3 = vpop.f32.mrf.mxu0 }
  0xf5   : > { %v928_v4 = vpack.c.bf16 %v874_v2, %v874_v2  ;;  %v681_v5 = vadd.f32 %v4927_v9, %v680_v3 }
  0xf7   : > { %v930_v7 = vshll.u32 %v928_v4, 16  ;;  %v933_v8 = vshrl.u32 %v928_v4, 16  ;;  %v741_v10 = vmax.f32 %v681_v5, 0.0 }
  0xf9   : > { %v932_v13 = vrot.slane %v930_v7, 5  ;;  %v935_v14 = vrot.slane %v933_v8, 4  ;;  %774 = vst.msk [vmem:[#allocation2 + $0x68] sm:$0xff] %vm760_vm1, %v741_v10 }
  0xfb   : > { %v936_v15 = vor.u32 %v935_v14, %v932_v13  ;;  %v944_v17 = vsel %vm5042_vm14, %v932_v13, %v943_v12 }
  0xfc   : > { %v683_v18 = vpop.f32.mrf.mxu0  ;;  %945 = vst [vmem:[#allocation3 + $0xc] sm:$0x8] %v944_v17 }
  0xfd   : > { %v937_v21 = vrot.slane %v936_v15, 4  ;;  %v684_v22 = vadd.f32 %v4927_v9, %v683_v18 }
  0xff   : > { %v742_v24 = vmax.f32 %v684_v22, 0.0  ;;  %v950_v25 = vsel %vm5051_vm0, %v937_v21, %v949_v20  ;;  %v965_v21 = vld [vmem:[#allocation3 + $0x14] sm:$0xf] }
 0x100   : > { %951 = vst [vmem:[#allocation3 + $0x10] sm:$0xf] %v950_v25  ;;  %v799_v54 = vld [vmem:[#allocation2 + $0x60] ss:$2 sm:$0xff]  ;;  %v815_v59 = vld [vmem:[#allocation2 + $0x61] ss:$2 sm:$0xff] }
 0x101   : > { %775 = vst.msk [vmem:[#allocation2 + $0x70] sm:$0xff] %vm760_vm1, %v742_v24  ;;  %v859_v2 = vmax.f32 %v799_v54, %v815_v59  ;;  %v971_v24 = vld [vmem:[#allocation3 + $0x18] sm:$0x1] }
 0x103   : > { %v1272_v28 = vld [vmem:[#allocation3 + $0xc] sm:$0xf] }
 0x104   : > { %v1074_v29 = vld [vmem:[#allocation3 + $0xc] sm:$0xf]  ;;  %v685_v32 = vpop.f32.mrf.mxu0  ;;  %v1306_v34 = vrot.slane %v1272_v28, 5 }
 0x105   : > { %v1048_v31 = vld [vmem:[#allocation3 + $0xc] sm:$0xf]  ;;  %v686_v37 = vadd.f32 %v4927_v9, %v685_v32  ;;  %v1116_v41 = vshll.u32 %v1074_v29, 16  ;;  %v1120_v42 = vshrl.u32 %v1074_v29, 16 }
 0x106   : > { %1061 = vst.msk [vmem:[#allocation4 + $0xc] sm:$0xf] %vm442_vm2, %v1048_v31  ;;  %v1307_v40 = vsel %vm5066_vm10, %v1305_v33, %v1306_v34  ;;  %v1308_v46 = vrot.slane %v1306_v34, 4 }
 0x107   : > { %v743_v43 = vmax.f32 %v686_v37, 0.0  ;;  %1340 = vrot.lane.b32.xlu0 %v1307_v40, %s4818_s20  ;;  %v5074_v44 = vld [vmem:[#allocation3 + $0x10] sm:$0xf]  ;;  %v1118_v51 = vrot.slane %v1116_v41, 5  ;;  %v1122_v53 = vrot.slane %v1120_v42, 4 }
 0x108   : > { %v1309_v47 = vrot.slane %v5074_v44, 5  ;;  %v1049_v49 = vld [vmem:[#allocation3 + $0x10] sm:$0xf] }
 0x109   : > { %776 = vst.msk [vmem:[#allocation2 + $0x78] sm:$0xff] %vm760_vm1, %v743_v43  ;;  %v1075_v55 = vld [vmem:[#allocation3 + $0x10] sm:$0xf]  ;;  %v1119_v60 = vsel %vm4995_vm11, %v1114_v57, %v1118_v51  ;;  %v1123_v61 = vor.u32 %v1122_v53, %v1118_v51  ;;  %v5118_v53 = vld [vmem:[#allocation3 + $0x4] sm:$0xf] }
 0x10a   : > { %v1310_v50 = vsel %vm5066_vm10, %v1308_v46, %v1309_v47  ;;  %1062 = vst.msk [vmem:[#allocation4 + $0x10] sm:$0xf] %vm442_vm2, %v1049_v49  ;;  %v1126_v62 = vshll.u32 %v1075_v55, 16  ;;  %v1130_v28 = vshrl.u32 %v1075_v55, 16  ;;  %v1311_v48 = vrot.slane %v1309_v47, 4 }
 0x10b   : > { %1342 = vrot.lane.b32.xlu1 %v1310_v50, %s4818_s20  ;;  %v1124_v4 = vrot.slane %v1123_v61, 4  ;;  %v1300_v47 = vrot.slane %v5118_v53, 5  ;;  %v1004_v53 = vld [vmem:[#allocation3 + $0x1c] sm:$0xc] }
 0x10c   : > { %v688_v56 = vpop.f32.mrf.mxu0  ;;  %v1128_v5 = vrot.slane %v1126_v62, 5  ;;  %v1132_v35 = vrot.slane %v1130_v28, 4 }
 0x10d   : > { %v689_v58 = vadd.f32 %v4927_v9, %v688_v56  ;;  %v1302_v61 = vrot.slane %v1300_v47, 4 }
 0x10e   : > { %v1129_v13 = vsel %vm4995_vm11, %v1124_v4, %v1128_v5  ;;  %v1133_v39 = vor.u32 %v1132_v35, %v1128_v5 }
 0x10f   : > { %v744_v63 = vmax.f32 %v689_v58, 0.0  ;;  %1219 = vrot.lane.b32.xlu0 %v1119_v60, %s4817_s19 }
 0x110   : > { %v831_v0 = vld [vmem:[#allocation2 + $0x70] ss:$2 sm:$0xff]  ;;  %v847_v1 = vld [vmem:[#allocation2 + $0x71] ss:$2 sm:$0xff]  ;;  %v1134_v56 = vrot.slane %v1133_v39, 4 }
 0x111   : > { %v867_v3 = vmax.f32 %v831_v0, %v847_v1  ;;  %777 = vst.msk [vmem:[#allocation2 + $0x80] sm:$0xff] %vm760_vm1, %v744_v63  ;;  %v1304_v1 = vsel %vm5066_vm10, %v1302_v61, %v1303_v27 }
 0x113   : > { %v875_v7 = vmax.f32 %v859_v2, %v867_v3 }
 0x114   : > { %v690_v8 = vpop.f32.mrf.mxu0 }
 0x115   : > { %v952_v10 = vpack.c.bf16 %v875_v7, %v875_v7  ;;  %v691_v12 = vadd.f32 %v4927_v9, %v690_v8 }
 0x117   : > { %v954_v14 = vshrl.u32 %v952_v10, 16  ;;  %v745_v15 = vmax.f32 %v691_v12, 0.0  ;;  %1221 = vrot.lane.b32.xlu0 %v1129_v13, %s4817_s19  ;;  %v957_v18 = vshll.u32 %v952_v10, 16 }
 0x119   : > { %v956_v17 = vrot.slane %v954_v14, 7  ;;  %778 = vst.msk [vmem:[#allocation2 + $0x88] sm:$0xff] %vm760_vm1, %v745_v15 }
 0x11b   : > { %v959_v25 = vor.u32 %v957_v18, %v956_v17  ;;  %v960_v26 = vrot.slane %v956_v17, 4 }
 0x11c   : > { %v693_v29 = vpop.f32.mrf.mxu0 }
 0x11d   : > { %v694_v31 = vadd.f32 %v4927_v9, %v693_v29  ;;  %v966_v32 = vsel %vm5096_vm6, %v959_v25, %v965_v21  ;;  %v972_v33 = vsel %vm5101_vm12, %v960_v26, %v971_v24  ;;  %v989_v21 = vld [vmem:[#allocation3 + $0x1c] sm:$0x3] }
 0x11e   : > { %967 = vst [vmem:[#allocation3 + $0x14] sm:$0xf] %v966_v32 }
 0x11f   : > { %v746_v34 = vmax.f32 %v694_v31, 0.0  ;;  %973 = vst [vmem:[#allocation3 + $0x18] sm:$0x1] %v972_v33 }
 0x120   : > { %v801_v59 = vld [vmem:[#allocation2 + $0x80] ss:$2 sm:$0xff]  ;;  %v817_v60 = vld [vmem:[#allocation2 + $0x81] ss:$2 sm:$0xff] }
 0x121   : > { %779 = vst.msk [vmem:[#allocation2 + $0x90] sm:$0xff] %vm760_vm1, %v746_v34  ;;  %v860_v2 = vmax.f32 %v801_v59, %v817_v60 }
 0x124   : > { %v695_v37 = vpop.f32.mrf.mxu0 }
 0x125   : > { %v696_v40 = vadd.f32 %v4927_v9, %v695_v37  ;;  %v1216_v41 = vpop.permute.xlu2 %1215  ;;  %v5112_v42 = vld [vmem:[#allocation3 + $0x14] sm:$0xf] }
 0x126   : > { %v1076_v43 = vld [vmem:[#allocation3 + $0x14] sm:$0xf]  ;;  %1255 = vst.msk [vmem:[#allocation4] sm:$0xf] %vm1254_vm9, %v1216_v41  ;;  %v1312_v49 = vrot.slane %v5112_v42, 5  ;;  %v723_v42 = vpop.f32.mrf.mxu1 }
 0x127   : > { %v1050_v46 = vld [vmem:[#allocation3 + $0x14] sm:$0xf]  ;;  %v1136_v50 = vshll.u32 %v1076_v43, 16  ;;  %v747_v51 = vmax.f32 %v696_v40, 0.0  ;;  %v1140_v17 = vshrl.u32 %v1076_v43, 16  ;;  %v724_v60 = vadd.f32 %v4927_v9, %v723_v42 }
 0x128   : > { %1063 = vst.msk [vmem:[#allocation4 + $0x14] sm:$0xf] %vm442_vm2, %v1050_v46  ;;  %v1313_v55 = vsel %vm5066_vm10, %v1311_v48, %v1312_v49  ;;  %v1314_v45 = vrot.slane %v1312_v49, 4 }
 0x129   : > { %v1138_v57 = vrot.slane %v1136_v50, 5  ;;  %780 = vst.msk [vmem:[#allocation2 + $0x98] sm:$0xff] %vm760_vm1, %v747_v51  ;;  %1344 = vrot.lane.b32.xlu2 %v1313_v55, %s4818_s20  ;;  %v1142_v31 = vrot.slane %v1140_v17, 4  ;;  %v1269_v51 = vld [vmem:[#allocation3] sm:$0xe] }
 0x12b   : > { %v1139_v44 = vsel %vm4995_vm11, %v1134_v56, %v1138_v57  ;;  %v1143_v33 = vor.u32 %v1142_v31, %v1138_v57 }
 0x12c   : > { %1223 = vrot.lane.b32.xlu1 %v1139_v44, %s4817_s19  ;;  %v698_v58 = vpop.f32.mrf.mxu0 }
 0x12d   : > { %v699_v54 = vadd.f32 %v4927_v9, %v698_v58  ;;  %v1144_v48 = vrot.slane %v1143_v33, 4  ;;  %v3740_v58 = vrot.slane %v1269_v51, 9 }
 0x12f   : > { %v748_v62 = vmax.f32 %v699_v54, 0.0  ;;  %v725_v54 = vpop.f32.mrf.mxu1 }
 0x130   : > { %v833_v63 = vld [vmem:[#allocation2 + $0x90] ss:$2 sm:$0xff]  ;;  %v849_v0 = vld [vmem:[#allocation2 + $0x91] ss:$2 sm:$0xff]  ;;  %v726_v61 = vadd.f32 %v4927_v9, %v725_v54  ;;  %v4570_v54 = vld [vmem:[%s6204_s3 + $0x50] sm:$0xff] }
 0x131   : > { %v868_v3 = vmax.f32 %v833_v63, %v849_v0  ;;  %781 = vst.msk [vmem:[#allocation2 + $0xa0] sm:$0xff] %vm760_vm1, %v748_v62  ;;  %1338 = vrot.lane.b32.xlu2 %v1304_v1, %s4818_s20 }
 0x133   : > { %v876_v4 = vmax.f32 %v860_v2, %v868_v3  ;;  %v758_v2 = vmax.f32 %v724_v60, 0.0  ;;  %v759_v3 = vmax.f32 %v726_v61, 0.0 }
 0x134   : > { %v700_v5 = vpop.f32.mrf.mxu0 }
 0x135   : > { %v974_v7 = vpack.c.bf16 %v876_v4, %v876_v4  ;;  %v701_v8 = vadd.f32 %v4927_v9, %v700_v5  ;;  %v1301_v4 = vsel %vm5066_vm10, %v3740_v58, %v1300_v47  ;;  %791 = vst.msk [vmem:[#allocation2 + $0xf0] sm:$0xff] %vm760_vm1, %v758_v2 }
 0x136   : > { %792 = vst.msk [vmem:[#allocation2 + $0xf8] sm:$0xff] %vm760_vm1, %v759_v3 }
 0x137   : > { %v976_v10 = vshrl.u32 %v974_v7, 16  ;;  %v979_v12 = vshll.u32 %v974_v7, 16  ;;  %v749_v13 = vmax.f32 %v701_v8, 0.0 }
 0x139   : > { %v978_v14 = vrot.slane %v976_v10, 6  ;;  %v981_v15 = vrot.slane %v979_v12, 7  ;;  %782 = vst.msk [vmem:[#allocation2 + $0xa8] sm:$0xff] %vm760_vm1, %v749_v13 }
 0x13b   : > { %v982_v27 = vor.u32 %v981_v15, %v978_v14 }
 0x13c   : > { %v703_v18 = vpop.f32.mrf.mxu0 }
 0x13d   : > { %v983_v24 = vrot.slane %v982_v27, 4  ;;  %v704_v25 = vadd.f32 %v4927_v9, %v703_v18  ;;  %v987_v26 = vsel %vm4973_vm7, %v982_v27, %v986_v23  ;;  %v1007_v18 = vld [vmem:[#allocation3 + $0x20] sm:$0x7]  ;;  %vm1375_vm7 = vcmask 781824  }
 0x13e   : > { %988 = vst [vmem:[#allocation3 + $0x18] sm:$0xe] %v987_v26 }
 0x13f   : > { %v750_v28 = vmax.f32 %v704_v25, 0.0  ;;  %v990_v29 = vsel %vm4980_vm8, %v983_v24, %v989_v21  ;;  %vm1388_vm8 = vcmask 779776  }
 0x140   : > { %991 = vst [vmem:[#allocation3 + $0x1c] sm:$0x3] %v990_v29  ;;  %v803_v57 = vld [vmem:[#allocation2 + $0xa0] ss:$2 sm:$0xff]  ;;  %v819_v44 = vld [vmem:[#allocation2 + $0xa1] ss:$2 sm:$0xff] }
 0x141   : > { %783 = vst.msk [vmem:[#allocation2 + $0xb0] sm:$0xff] %vm760_vm1, %v750_v28  ;;  %v861_v0 = vmax.f32 %v803_v57, %v819_v44  ;;  %v4571_v44 = vld [vmem:[%s6204_s3 + $0x58] sm:$0xff] }
 0x142   : > { %1522 = vmatpush.bf16.msrb.mxu1 %v4571_v44  ;;  %v1042_v44 = vld [vmem:[#allocation3 + $0x2c] sm:$0x1] }
 0x144   : > { %v705_v32 = vpop.f32.mrf.mxu0 }
 0x145   : > { %v706_v34 = vadd.f32 %v4927_v9, %v705_v32  ;;  %v1218_v35 = vpop.permute.xlu2 %1217  ;;  %v5147_v37 = vld [vmem:[#allocation3 + $0x18] sm:$0xf] }
 0x146   : > { %v1077_v39 = vld [vmem:[#allocation3 + $0x18] sm:$0xf]  ;;  %1256 = vst.msk [vmem:[#allocation4 + $0x4] sm:$0xf] %vm1254_vm9, %v1218_v35  ;;  %v1315_v41 = vrot.slane %v5147_v37, 5  ;;  %1523 = vmatpush.bf16.msrb.mxu1 %v4570_v54 }
 0x147   : > { %v1051_v40 = vld [vmem:[#allocation3 + $0x18] sm:$0xf]  ;;  %v1146_v52 = vshll.u32 %v1077_v39, 16  ;;  %v751_v43 = vmax.f32 %v706_v34, 0.0  ;;  %v1150_v27 = vshrl.u32 %v1077_v39, 16 }
 0x148   : > { %1064 = vst.msk [vmem:[#allocation4 + $0x18] sm:$0xf] %vm442_vm2, %v1051_v40  ;;  %v1316_v46 = vsel %vm5066_vm10, %v1314_v45, %v1315_v41  ;;  %v1317_v30 = vrot.slane %v1315_v41, 4 }
 0x149   : > { %v5154_v50 = vrot.slane %v1146_v52, 5  ;;  %784 = vst.msk [vmem:[#allocation2 + $0xb8] sm:$0xff] %vm760_vm1, %v751_v43  ;;  %1346 = vrot.lane.b32.xlu0 %v1316_v46, %s4818_s20  ;;  %v1152_v29 = vrot.slane %v1150_v27, 4 }
 0x14b   : > { %v1149_v49 = vsel %vm4995_vm11, %v1144_v48, %v5154_v50  ;;  %v1153_v32 = vor.u32 %v1152_v29, %v5154_v50 }
 0x14c   : > { %1225 = vrot.lane.b32.xlu1 %v1149_v49, %s4817_s19  ;;  %v708_v55 = vpop.f32.mrf.mxu0 }
 0x14d   : > { %v709_v56 = vadd.f32 %v4927_v9, %v708_v55  ;;  %v1154_v52 = vrot.slane %v1153_v32, 4 }
 0x14f   : > { %v752_v59 = vmax.f32 %v709_v56, 0.0 }
 0x150   : > { %v835_v62 = vld [vmem:[#allocation2 + $0xb0] ss:$2 sm:$0xff]  ;;  %v851_v63 = vld [vmem:[#allocation2 + $0xb1] ss:$2 sm:$0xff] }
 0x151   : > { %v869_v1 = vmax.f32 %v835_v62, %v851_v63  ;;  %785 = vst.msk [vmem:[#allocation2 + $0xc0] sm:$0xff] %vm760_vm1, %v752_v59 }
 0x153   : > { %v877_v5 = vmax.f32 %v861_v0, %v869_v1  ;;  %v1022_v1 = vld [vmem:[#allocation3 + $0x20] sm:$0x8] }
 0x154   : > { %1336 = vrot.lane.b32.xlu1 %v1301_v4, %s4818_s20  ;;  %v710_v7 = vpop.f32.mrf.mxu0 }
 0x155   : > { %v992_v8 = vpack.c.bf16 %v877_v5, %v877_v5  ;;  %v711_v10 = vadd.f32 %v4927_v9, %v710_v7 }
 0x157   : > { %v994_v12 = vshrl.u32 %v992_v8, 16  ;;  %v997_v13 = vshll.u32 %v992_v8, 16  ;;  %v753_v14 = vmax.f32 %v711_v10, 0.0  ;;  %v4569_v10 = vld [vmem:[%s6204_s3 + $0x48] sm:$0xff] }
 0x158   : > { %1524 = vmatpush.bf16.msrb.mxu1 %v4569_v10 }
 0x159   : > { %v996_v15 = vrot.slane %v994_v12, 5  ;;  %v999_v23 = vrot.slane %v997_v13, 6  ;;  %786 = vst.msk [vmem:[#allocation2 + $0xc8] sm:$0xff] %vm760_vm1, %v753_v14  ;;  %v839_v13 = vld [vmem:[#allocation2 + $0xf0] ss:$2 sm:$0xff] }
 0x15a   : > { %v855_v14 = vld [vmem:[#allocation2 + $0xf1] ss:$2 sm:$0xff] }
 0x15b   : > { %v1000_v47 = vor.u32 %v999_v23, %v996_v15  ;;  %v871_v11 = vmax.f32 %v839_v13, %v855_v14 }
 0x15c   : > { %v713_v17 = vpop.f32.mrf.mxu0 }
 0x15d   : > { %v1001_v21 = vrot.slane %v1000_v47, 4  ;;  %v714_v24 = vadd.f32 %v4927_v9, %v713_v17  ;;  %v1005_v25 = vsel %vm5011_vm4, %v1000_v47, %v1004_v53  ;;  %vm1831_vm4 = vcmask 523264  }
 0x15e   : > { %1006 = vst [vmem:[#allocation3 + $0x1c] sm:$0xc] %v1005_v25 }
 0x15f   : > { %v754_v26 = vmax.f32 %v714_v24, 0.0  ;;  %v1008_v28 = vsel %vm5016_vm5, %v1001_v21, %v1007_v18  ;;  %v4568_v18 = vld [vmem:[%s6204_s3 + $0x40] sm:$0xff]  ;;  %vm458_vm5 = vcmask 519168  }
 0x160   : > { %1009 = vst [vmem:[#allocation3 + $0x20] sm:$0x7] %v1008_v28  ;;  %v805_v48 = vld [vmem:[#allocation2 + $0xc0] ss:$2 sm:$0xff]  ;;  %v821_v50 = vld [vmem:[#allocation2 + $0xc1] ss:$2 sm:$0xff]  ;;  %1525 = vmatpush.bf16.msrb.mxu1 %v4568_v18 }
 0x161   : > { %787 = vst.msk [vmem:[#allocation2 + $0xd0] sm:$0xff] %vm760_vm1, %v754_v26  ;;  %v862_v56 = vmax.f32 %v805_v48, %v821_v50 }
 0x162   : > { %459 = vst.msk [vmem:[#allocation6] sm:$0xf] %vm458_vm5, %v4816_v16 }
 0x163   : > { %460 = vst.msk [vmem:[#allocation6 + $0x4] sm:$0xf] %vm458_vm5, %v4816_v16 }
 0x164   : > { %v715_v31 = vpop.f32.mrf.mxu0  ;;  %461 = vst.msk [vmem:[#allocation6 + $0x8] sm:$0xf] %vm458_vm5, %v4816_v16 }
 0x165   : > { %v716_v33 = vadd.f32 %v4927_v9, %v715_v31  ;;  %v5183_v34 = vld [vmem:[#allocation3 + $0x1c] sm:$0xf]  ;;  %462 = vst.msk [vmem:[#allocation6 + $0xc] sm:$0xf] %vm458_vm5, %v4816_v16 }
 0x166   : > { %v1078_v35 = vld [vmem:[#allocation3 + $0x1c] sm:$0xf]  ;;  %v1318_v39 = vrot.slane %v5183_v34, 5  ;;  %463 = vst.msk [vmem:[#allocation6 + $0x10] sm:$0xf] %vm458_vm5, %v4816_v16 }
 0x167   : > { %v1052_v37 = vld [vmem:[#allocation3 + $0x1c] sm:$0xf]  ;;  %v1156_v40 = vshll.u32 %v1078_v35, 16  ;;  %v755_v36 = vmax.f32 %v716_v33, 0.0  ;;  %v1160_v5 = vshrl.u32 %v1078_v35, 16  ;;  %v4567_v33 = vld [vmem:[%s6204_s3 + $0x38] sm:$0xff] }
 0x168   : > { %1065 = vst.msk [vmem:[#allocation4 + $0x1c] sm:$0xf] %vm442_vm2, %v1052_v37  ;;  %v1319_v45 = vsel %vm5066_vm10, %v1317_v30, %v1318_v39  ;;  %v1320_v28 = vrot.slane %v1318_v39, 4  ;;  %1526 = vmatpush.bf16.msrb.mxu1 %v4567_v33 }
 0x169   : > { %v5191_v42 = vrot.slane %v1156_v40, 5  ;;  %788 = vst.msk [vmem:[#allocation2 + $0xd8] sm:$0xff] %vm760_vm1, %v755_v36  ;;  %1348 = vrot.lane.b32.xlu2 %v1319_v45, %s4818_s20  ;;  %v1162_v15 = vrot.slane %v1160_v5, 4  ;;  %v4576_v5 = vld [vmem:[%s6204_s3 + $0x80] sm:$0xff] }
 0x16b   : > { %v1159_v41 = vsel %vm4995_vm11, %v1154_v52, %v5191_v42  ;;  %v1163_v21 = vor.u32 %v1162_v15, %v5191_v42 }
 0x16c   : > { %1227 = vrot.lane.b32.xlu0 %v1159_v41, %s4817_s19  ;;  %v718_v43 = vpop.f32.mrf.mxu0 }
 0x16d   : > { %v719_v46 = vadd.f32 %v4927_v9, %v718_v43  ;;  %v1164_v40 = vrot.slane %v1163_v21, 4 }
 0x16f   : > { %v756_v49 = vmax.f32 %v719_v46, 0.0  ;;  %v4566_v46 = vld [vmem:[%s6204_s3 + $0x30] sm:$0xff] }
 0x170   : > { %v837_v51 = vld [vmem:[#allocation2 + $0xd0] ss:$2 sm:$0xff]  ;;  %v853_v55 = vld [vmem:[#allocation2 + $0xd1] ss:$2 sm:$0xff]  ;;  %1527 = vmatpush.bf16.msrb.mxu1 %v4566_v46  ;;  %v4574_v46 = vld [vmem:[%s6204_s3 + $0x70] sm:$0xff] }
 0x171   : > { %v870_v57 = vmax.f32 %v837_v51, %v853_v55  ;;  %789 = vst.msk [vmem:[#allocation2 + $0xe0] sm:$0xff] %vm760_vm1, %v756_v49  ;;  %v1039_v55 = vld [vmem:[#allocation3 + $0x28] sm:$0xf] }
 0x173   : > { %v878_v58 = vmax.f32 %v862_v56, %v870_v57 }
 0x174   : > { %v720_v59 = vpop.f32.mrf.mxu0 }
 0x175   : > { %v1010_v60 = vpack.c.bf16 %v878_v58, %v878_v58  ;;  %v721_v61 = vadd.f32 %v4927_v9, %v720_v59  ;;  %v1025_v9 = vld [vmem:[#allocation3 + $0x24] sm:$0xf] }
 0x177   : > { %v1012_v62 = vshll.u32 %v1010_v60, 16  ;;  %v1015_v63 = vshrl.u32 %v1010_v60, 16  ;;  %v757_v0 = vmax.f32 %v721_v61, 0.0 }
 0x179   : > { %v1014_v2 = vrot.slane %v1012_v62, 5  ;;  %v1017_v3 = vrot.slane %v1015_v63, 4  ;;  %790 = vst.msk [vmem:[#allocation2 + $0xe8] sm:$0xff] %vm760_vm1, %v757_v0  ;;  %v1341_v4 = vpop.permute.xlu0 %1340  ;;  %v4577_v0 = vld [vmem:[%s6204_s3 + $0x88] sm:$0xff]  ;;  %vm1456_vm1 = vcmask 1046528  }
 0x17a   : > { %1765 = vmatpush.bf16.msra.mxu3 %v4577_v0 }
 0x17b   : > { %v1018_v7 = vor.u32 %v1017_v3, %v1014_v2  ;;  %v1023_v8 = vsel %vm5042_vm14, %v1014_v2, %v1022_v1  ;;  %v4564_v1 = vld [vmem:[%s6204_s3 + $0x28] sm:$0xff]  ;;  %vm1908_vm14 = vcmask 519171  }
 0x17c   : > { %1024 = vst [vmem:[#allocation3 + $0x20] sm:$0x8] %v1023_v8  ;;  %1616 = vmatpush.bf16.msra.mxu2 %v4564_v1  ;;  %v1083_v8 = vld [vmem:[#allocation3 + $0x30] sm:$0x7] }
 0x17d   : > { %v1019_v12 = vrot.slane %v1018_v7, 4  ;;  %v1343_v56 = vpop.permute.xlu1 %1342 }
 0x17e   : > { %1766 = vmatpush.bf16.msra.mxu3 %v4576_v5 }
 0x17f   : > { %v1026_v23 = vsel %vm5051_vm0, %v1019_v12, %v1025_v9  ;;  %vm6238_vm0 = vsmask.f32 7950 }
 0x180   : > { %v807_v53 = vld [vmem:[#allocation2 + $0xe0] ss:$2 sm:$0xff]  ;;  %v823_v47 = vld [vmem:[#allocation2 + $0xe1] ss:$2 sm:$0xff]  ;;  %1027 = vst [vmem:[#allocation3 + $0x24] sm:$0xf] %v1026_v23  ;;  %vm1909_vm15 = vmand %vm1908_vm14, %vm6238_vm0 }
 0x181   : > { %v863_v27 = vmax.f32 %v807_v53, %v823_v47  ;;  %v1220_v17 = vpop.permute.xlu0 %1219  ;;  %vm1952_vm0 = vsmask.f32 3334 }
 0x182   : > { %1257 = vst.msk [vmem:[#allocation4 + $0x8] sm:$0xf] %vm1254_vm9, %v1220_v17 }
 0x183   : > { %v879_v24 = vmax.f32 %v863_v27, %v871_v11  ;;  %1378 = vst.msk [vmem:[#allocation4 + $0x8] sm:$0xf] %vm1375_vm7, %v1341_v4  ;;  %v5222_v25 = vpop.permute.xlu2 %1344  ;;  %v1277_v19 = vld [vmem:[#allocation3 + $0x20] sm:$0xf]  ;;  %v1206_v11 = vshll.u32 %v1083_v8, 16 }
 0x184   : > { %v1079_v26 = vld [vmem:[#allocation3 + $0x20] sm:$0xf]  ;;  %v1321_v29 = vrot.slane %v1277_v19, 5 }
 0x185   : > { %v1166_v31 = vshll.u32 %v1079_v26, 16  ;;  %v1170_v32 = vshrl.u32 %v1079_v26, 16  ;;  %v1028_v35 = vpack.c.bf16 %v879_v24, %v879_v24  ;;  %v1053_v37 = vld [vmem:[#allocation3 + $0x20] sm:$0xf]  ;;  %v1210_v24 = vshrl.u32 %v1083_v8, 16 }
 0x186   : > { %v1322_v30 = vsel %vm5066_vm10, %v1320_v28, %v1321_v29  ;;  %1066 = vst.msk [vmem:[#allocation4 + $0x20] sm:$0xf] %vm442_vm2, %v1053_v37  ;;  %v1323_v60 = vrot.slane %v1321_v29, 4  ;;  %v1208_v33 = vrot.slane %v1206_v11, 5 }
 0x187   : > { %v1168_v36 = vrot.slane %v1166_v31, 5  ;;  %v1172_v45 = vrot.slane %v1170_v32, 4  ;;  %v1030_v52 = vshrl.u32 %v1028_v35, 16  ;;  %1350 = vrot.lane.b32.xlu0 %v1322_v30, %s4818_s20  ;;  %v1278_v34 = vld [vmem:[#allocation3 + $0x24] sm:$0xf]  ;;  %v1033_v49 = vshll.u32 %v1028_v35, 16 }
 0x188   : > { %v1080_v39 = vld [vmem:[#allocation3 + $0x24] sm:$0xf]  ;;  %v1324_v57 = vrot.slane %v1278_v34, 5  ;;  %v4563_v30 = vld [vmem:[%s6204_s3 + $0x20] sm:$0xff] }
 0x189   : > { %v1169_v42 = vsel %vm4995_vm11, %v1164_v40, %v1168_v36  ;;  %v1173_v41 = vor.u32 %v1172_v45, %v1168_v36  ;;  %v1176_v43 = vshll.u32 %v1080_v39, 16  ;;  %v1054_v48 = vld [vmem:[#allocation3 + $0x24] sm:$0xf]  ;;  %v1032_v50 = vrot.slane %v1030_v52, 7  ;;  %v1222_v51 = vpop.permute.xlu0 %1221  ;;  %v4575_v40 = vld [vmem:[%s6204_s3 + $0x78] sm:$0xff]  ;;  %1617 = vmatpush.bf16.msra.mxu2 %v4563_v30 }
 0x18a   : > { %1229 = vrot.lane.b32.xlu1 %v1169_v42, %s4817_s19  ;;  %1067 = vst.msk [vmem:[#allocation4 + $0x24] sm:$0xf] %vm442_vm2, %v1054_v48  ;;  %v1180_v61 = vshrl.u32 %v1080_v39, 16  ;;  %v1325_v4 = vsel %vm5066_vm10, %v1323_v60, %v1324_v57  ;;  %v1326_v12 = vrot.slane %v1324_v57, 4  ;;  %v1212_v45 = vrot.slane %v1210_v24, 4  ;;  %1767 = vmatpush.bf16.msra.mxu3 %v4575_v40  ;;  %v4561_v57 = vld [vmem:[%s6204_s3 + $0x10] sm:$0xff] }
 0x18b   : > { %1258 = vst.msk [vmem:[#allocation4 + $0xc] sm:$0xf] %vm1254_vm9, %v1222_v51  ;;  %v1035_v58 = vor.u32 %v1033_v49, %v1032_v50  ;;  %v1036_v54 = vrot.slane %v1032_v50, 4  ;;  %v1339_v59 = vpop.permute.xlu2 %1338  ;;  %v1174_v62 = vrot.slane %v1173_v41, 4  ;;  %v1178_v63 = vrot.slane %v1176_v43, 5  ;;  %v4562_v43 = vld [vmem:[%s6204_s3 + $0x18] sm:$0xff] }
 0x18c   : > { %1379 = vst.msk [vmem:[#allocation4 + $0xc] sm:$0xf] %vm1375_vm7, %v1343_v56  ;;  %v1182_v7 = vrot.slane %v1180_v61, 4  ;;  %v1213_v50 = vor.u32 %v1212_v45, %v1208_v33  ;;  %v1281_v49 = vld [vmem:[#allocation3 + $0x30] sm:$0x7] }
 0x18d   : > { %1377 = vst.msk [vmem:[#allocation4 + $0x4] sm:$0xf] %vm1375_vm7, %v1339_v59  ;;  %v1040_v2 = vsel %vm5096_vm6, %v1035_v58, %v1039_v55  ;;  %v1043_v3 = vsel %vm5101_vm12, %v1036_v54, %v1042_v44  ;;  %v1179_v20 = vsel %vm4995_vm11, %v1174_v62, %v1178_v63  ;;  %1618 = vmatpush.bf16.msra.mxu2 %v4562_v43  ;;  %v1333_v55 = vrot.slane %v1281_v49, 5  ;;  %v4781_v56 = vld [vmem:[#allocation4 + $0x4] sm:$0xf0]  }
 0x18e   : > { %1041 = vst [vmem:[#allocation3 + $0x28] sm:$0xf] %v1040_v2  ;;  %v1183_v22 = vor.u32 %v1182_v7, %v1178_v63  ;;  %1768 = vmatpush.bf16.msra.mxu3 %v4574_v46  ;;  %v4573_v44 = vld [vmem:[%s6204_s3 + $0x68] sm:$0xff]  ;;  %v1214_v58 = vrot.slane %v1213_v50, 4  ;;  %v4572_v63 = vld [vmem:[%s6204_s3 + $0x60] sm:$0xff]  ;;  %vm1700_vm6 = vcmask 1045504  }
 0x18f   : > { %1352 = vrot.lane.b32.xlu0 %v1325_v4, %s4818_s20  ;;  %1044 = vst [vmem:[#allocation3 + $0x2c] sm:$0x1] %v1043_v3  ;;  %v1335_v59 = vrot.slane %v1333_v55, 4  ;;  %v4560_v62 = vld [vmem:[%s6204_s3 + $0x8] sm:$0xff]  ;;  %v4559_v4 = vld [vmem:[%s6204_s3] sm:$0xff]  ;;  %vm464_vm12 = vcmask 517120  }
 0x190   : > { %v1184_v18 = vrot.slane %v1183_v22, 4  ;;  %v3829_v22 = vld [vmem:[#allocation4 + $0x8] sm:$0xc]  ;;  %v1057_v24 = vld [vmem:[#allocation3 + $0x30] sm:$0x3] }
 0x191   : > { %1619 = vmatpush.bf16.msra.mxu2 %v4561_v57  ;;  %1070 = vst.msk [vmem:[#allocation4 + $0x30] sm:$0x3] %vm456_vm3, %v1057_v24  ;;  %vm1267_vm3 = vcmask 517376  }
 0x192   : > { %1231 = vrot.lane.b32.xlu1 %v1179_v20, %s4817_s19  ;;  %1769 = vmatpush.bf16.msra.mxu3 %v4573_v44 }
 0x193   : > { %v4578_v7 = vld [vmem:[#allocation4 + $0x8] sm:$0xf0] }
 0x194   : > { %v3830_v8 = vor.u32 %v4578_v7, %v3829_v22 }
 0x195   : > { %v1279_v10 = vld [vmem:[#allocation3 + $0x28] sm:$0xf]  ;;  %1620 = vmatpush.bf16.msra.mxu2 %v4560_v62 }
 0x196   : > { %v1081_v9 = vld [vmem:[#allocation3 + $0x28] sm:$0xf]  ;;  %v1327_v13 = vrot.slane %v1279_v10, 5  ;;  %v1082_v23 = vld [vmem:[#allocation3 + $0x2c] sm:$0xf]  ;;  %1770 = vmatpush.bf16.msra.mxu3 %v4572_v63 }
 0x197   : > { %v1186_v14 = vshll.u32 %v1081_v9, 16  ;;  %v1190_v15 = vshrl.u32 %v1081_v9, 16  ;;  %v1196_v53 = vshll.u32 %v1082_v23, 16  ;;  %v1200_v47 = vshrl.u32 %v1082_v23, 16  ;;  %v1055_v27 = vld [vmem:[#allocation3 + $0x28] sm:$0xf] }
 0x198   : > { %v1328_v17 = vsel %vm5066_vm10, %v1326_v12, %v1327_v13  ;;  %1068 = vst.msk [vmem:[#allocation4 + $0x28] sm:$0xf] %vm442_vm2, %v1055_v27  ;;  %v1056_v29 = vld [vmem:[#allocation3 + $0x2c] sm:$0xf]  ;;  %v1329_v36 = vrot.slane %v1327_v13, 4  ;;  %v1701_v12 = vrot.slane %v3830_v8, 2 }
 0x199   : > { %v1188_v21 = vrot.slane %v1186_v14, 5  ;;  %v1198_v19 = vrot.slane %v1196_v53, 5  ;;  %v1202_v26 = vrot.slane %v1200_v47, 4  ;;  %v1192_v28 = vrot.slane %v1190_v15, 4  ;;  %1069 = vst.msk [vmem:[#allocation4 + $0x2c] sm:$0xf] %vm442_vm2, %v1056_v29  ;;  %1621 = vmatpush.bf16.msra.mxu2 %v4559_v4 }
 0x19a   : > { %1354 = vrot.lane.b32.xlu1 %v1328_v17, %s4818_s20  ;;  %v1280_v35 = vld [vmem:[#allocation3 + $0x2c] sm:$0xf]  ;;  %vm1504_vm2 = vcmask 785408   ;;  %v4751_v47 = vld [vmem:[#allocation4 + $0x8] sm:$0xff]  }
 0x19b   : > { %v1189_v31 = vsel %vm4995_vm11, %v1184_v18, %v1188_v21  ;;  %v1203_v32 = vor.u32 %v1202_v26, %v1198_v19  ;;  %v1193_v37 = vor.u32 %v1192_v28, %v1188_v21  ;;  %v1330_v39 = vrot.slane %v1280_v35, 5 }
 0x19c   : > { %1233 = vrot.lane.b32.xlu2 %v1189_v31, %s4817_s19 }
 0x19d   : > { %v1204_v34 = vrot.slane %v1203_v32, 4  ;;  %v1194_v42 = vrot.slane %v1193_v37, 4  ;;  %v1331_v48 = vsel %vm5066_vm10, %v1329_v36, %v1330_v39  ;;  %v1332_v60 = vrot.slane %v1330_v39, 4 }
 0x19e   : > { %v1224_v52 = vpop.permute.xlu1 %1223 }
 0x19f   : > { %1259 = vst.msk [vmem:[#allocation4 + $0x10] sm:$0xf] %vm1254_vm9, %v1224_v52  ;;  %v1209_v41 = vsel %vm4995_vm11, %v1204_v34, %v1208_v33  ;;  %v1199_v51 = vsel %vm4995_vm11, %v1194_v42, %v1198_v19  ;;  %v1334_v2 = vsel %vm5066_vm10, %v1332_v60, %v1333_v55 }
 0x1a0   : > { %1380 = vst.msk [vmem:[#allocation4 + $0x10] sm:$0xf] %vm1375_vm7, %v5222_v25  ;;  %1237 = vrot.lane.b32.xlu0 %v1209_v41, %s4817_s19  ;;  %v4757_v25 = vld [vmem:[#allocation4 + $0x4] sm:$0xe] }
 0x1a1   : > { %v4758_v54 = vor.u32 %v4781_v56, %v4757_v25 }
 0x1a2   : > { %1356 = vrot.lane.b32.xlu1 %v1331_v48, %s4818_s20 }
 0x1a3   : > { %v1457_v0 = vrot.slane %v4758_v54, 1 }
 0x1a4   : > { %1235 = vrot.lane.b32.xlu2 %v1199_v51, %s4817_s19 }
 0x1a7   : > { %v4783_v61 = vld [vmem:[#allocation4 + $0xc] sm:$0xff]  }
 0x1a8   : > { %1239 = vrot.lane.b32.xlu0 %v1214_v58, %s4817_s19  ;;  %v1458_v1 = vrot.slane %v4783_v61, 1 }
 0x1aa   : > { %1360 = vrot.lane.b32.xlu1 %v1335_v59, %s4818_s20  ;;  %v1459_v3 = vsel %vm1456_vm1, %v1457_v0, %v1458_v1 }
 0x1ab   : > { %3777 = vmatmul.msk.bf16.vlgmr.msrb.gmra.mxu1 %vm1504_vm2, %v1459_v3 }
 0x1ac   : > { %1358 = vrot.lane.b32.xlu2 %v1334_v2, %s4818_s20 }
 0x1bb   : > { %v1347_v20 = vpop.permute.xlu0 %1346 }
 0x1be   : > { %v1226_v5 = vpop.permute.xlu1 %1225 }
 0x1bf   : > { %1260 = vst.msk [vmem:[#allocation4 + $0x14] sm:$0xf] %vm1254_vm9, %v1226_v5 }
 0x1c0   : > { %1381 = vst.msk [vmem:[#allocation4 + $0x14] sm:$0xf] %vm1375_vm7, %v1347_v20  ;;  %v5358_v20 = vld [vmem:[%s6205_s4] ss:$0 sm:$0xff] }
 0x1c3   : > { %v1349_v53 = vpop.permute.xlu2 %1348 }
 0x1c6   : > { %v1337_v10 = vpop.permute.xlu1 %1336 }
 0x1c7   : > { %1376 = vst.msk [vmem:[#allocation4] sm:$0xf] %vm1375_vm7, %v1337_v10  ;;  %v4579_v9 = vld [vmem:[#allocation4 + $0x10] sm:$0xff] }
 0x1c8   : > { %v1702_v13 = vrot.slane %v4579_v9, 2  ;;  %v4752_v18 = vld [vmem:[#allocation4 + $0x10] sm:$0xff]  }
 0x1ca   : > { %v1703_v14 = vsel %vm1700_vm6, %v1701_v12, %v1702_v13 }
 0x1cb   : > { %3871 = vmatmul.msk.bf16.vlgmr.msra.gmra.mxu3 %vm1504_vm2, %v1703_v14 }
 0x1ce   : > { %v4565_v15 = vld [vmem:[#allocation4] sm:$0xff] }
 0x1cf   : > { %3810 = vmatmul.msk.bf16.vlgmr.msra.gmra.mxu2 %vm1504_vm2, %v4565_v15 }
 0x1de   : > { %v1228_v23 = vpop.permute.xlu0 %1227 }
 0x1df   : > { %1261 = vst.msk [vmem:[#allocation4 + $0x18] sm:$0xf] %vm1254_vm9, %v1228_v23  ;;  %3811 = vmatmul.msk.bf16.gmra.mxu2 %vm1504_vm2, %v4751_v47 }
 0x1e0   : > { %1382 = vst.msk [vmem:[#allocation4 + $0x18] sm:$0xf] %vm1375_vm7, %v1349_v53 }
 0x1e7   : > { %v4785_v11 = vld [vmem:[#allocation4 + $0x14] sm:$0xff]  }
 0x1e8   : > { %v1460_v27 = vrot.slane %v4785_v11, 1 }
 0x1ea   : > { %v1461_v17 = vsel %vm1456_vm1, %v1458_v1, %v1460_v27 }
 0x1eb   : > { %3778 = vmatmul.msk.bf16.gmra.mxu1 %vm1504_vm2, %v1461_v17 }
 0x1ef   : > { %3812 = vmatmul.msk.bf16.gmra.mxu2 %vm1504_vm2, %v4752_v18 }
 0x1f6   : > { %v1234_v21 = vpop.permute.xlu2 %1233 }
 0x1f7   : > { %1264 = vst.msk [vmem:[#allocation4 + $0x24] sm:$0xf] %vm1254_vm9, %v1234_v21 }
 0x1f9   : > { %v1351_v19 = vpop.permute.xlu0 %1350 }
 0x1fc   : > { %v1230_v26 = vpop.permute.xlu1 %1229 }
 0x1fd   : > { %1262 = vst.msk [vmem:[#allocation4 + $0x1c] sm:$0xf] %vm1254_vm9, %v1230_v26 }
 0x1fe   : > { %1383 = vst.msk [vmem:[#allocation4 + $0x1c] sm:$0xf] %vm1375_vm7, %v1351_v19  ;;  %v1236_v28 = vpop.permute.xlu2 %1235 }
 0x1ff   : > { %1265 = vst.msk [vmem:[#allocation4 + $0x28] sm:$0xf] %vm1254_vm9, %v1236_v28 }
 0x201   : > { %v1353_v31 = vpop.permute.xlu0 %1352 }
 0x204   : > { %v1232_v29 = vpop.permute.xlu1 %1231 }
 0x205   : > { %1263 = vst.msk [vmem:[#allocation4 + $0x20] sm:$0xf] %vm1254_vm9, %v1232_v29  ;;  %v4753_v32 = vld [vmem:[#allocation4 + $0x18] sm:$0xff]  }
 0x206   : > { %v4580_v33 = vld [vmem:[#allocation4 + $0x18] sm:$0xff]  ;;  %1384 = vst.msk [vmem:[#allocation4 + $0x20] sm:$0xf] %vm1375_vm7, %v1353_v31  ;;  %3813 = vmatmul.msk.bf16.gmra.mxu2 %vm1504_vm2, %v4753_v32  ;;  %v1359_v34 = vpop.permute.xlu2 %1358 }
 0x207   : > { %v1704_v35 = vrot.slane %v4580_v33, 2 }
 0x209   : > { %v1705_v37 = vsel %vm1700_vm6, %v1702_v13, %v1704_v35 }
 0x20a   : > { %3872 = vmatmul.msk.bf16.gmra.mxu3 %vm1504_vm2, %v1705_v37 }
 0x20c   : > { %v1355_v30 = vpop.permute.xlu1 %1354 }
 0x20d   : > { %1385 = vst.msk [vmem:[#allocation4 + $0x24] sm:$0xf] %vm1375_vm7, %v1355_v30  ;;  %v4787_v40 = vld [vmem:[#allocation4 + $0x1c] sm:$0xff]  }
 0x20e   : > { %v1462_v36 = vrot.slane %v4787_v40, 1 }
 0x210   : > { %v1463_v45 = vsel %vm1456_vm1, %v1460_v27, %v1462_v36 }
 0x211   : > { %3779 = vmatmul.msk.bf16.gmra.mxu1 %vm1504_vm2, %v1463_v45 }
 0x212   : > { %v1238_v52 = vpop.permute.xlu0 %1237 }
 0x213   : > { %1266 = vst.msk [vmem:[#allocation4 + $0x2c] sm:$0xf] %vm1254_vm9, %v1238_v52  ;;  %vm6239_vm9 = vsmask.f32 1280 }
 0x214   : > { %v1357_v39 = vpop.permute.xlu1 %1356  ;;  %v4754_v42 = vld [vmem:[#allocation4 + $0x20] sm:$0xff]   ;;  %1387 = vst.msk [vmem:[#allocation4 + $0x2c] sm:$0xf] %vm1375_vm7, %v1359_v34 }
 0x215   : > { %v4581_v41 = vld [vmem:[#allocation4 + $0x20] sm:$0xff]  ;;  %1386 = vst.msk [vmem:[#allocation4 + $0x28] sm:$0xf] %vm1375_vm7, %v1357_v39  ;;  %vm1914_vm7 = vmand %vm464_vm12, %vm6239_vm9  ;;  %vm1959_vm9 = vsmask.f32 5392 }
 0x216   : > { %3814 = vmatmul.msk.bf16.gmra.mxu2 %vm1504_vm2, %v4754_v42  ;;  %v1706_v43 = vrot.slane %v4581_v41, 2 }
 0x218   : > { %v1707_v46 = vsel %vm1700_vm6, %v1704_v35, %v1706_v43 }
 0x21a   : > { %3873 = vmatmul.msk.bf16.gmra.mxu3 %vm1504_vm2, %v1707_v46  ;;  %v1240_v48 = vpop.permute.xlu0 %1239 }
 0x21b   : > { %1268 = vst.msk [vmem:[#allocation4 + $0x30] sm:$0x3] %vm1267_vm3, %v1240_v48  ;;  %v1427_v56 = vld [vmem:[#allocation4 + $0x2c] sm:$0x1]  ;;  %vm6240_vm3 = vsmask.f32 7946 }
 0x21c   : > { %v1361_v50 = vpop.permute.xlu1 %1360  ;;  %v4788_v49 = vld [vmem:[#allocation4 + $0x24] sm:$0xff]  ;;  %v1449_v44 = vunpack.c.l.b16 %v1427_v56 }
 0x21d   : > { %1389 = vst.msk [vmem:[#allocation4 + $0x30] sm:$0x3] %vm1388_vm8, %v1361_v50  ;;  %v1464_v25 = vrot.slane %v4788_v49, 1  ;;  %v4582_v55 = vld [vmem:[#allocation4 + $0x28] sm:$0xff] }
 0x21e   : > { %v1708_v57 = vrot.slane %v4582_v55, 2  ;;  %v1455_v54 = vpack.c.b16 %v1449_v44, %v1449_v44 }
 0x21f   : > { %v1465_v51 = vsel %vm1456_vm1, %v1462_v36, %v1464_v25 }
 0x220   : > { %v1709_v58 = vsel %vm1700_vm6, %v1706_v43, %v1708_v57  ;;  %v1466_v60 = vrot.slane %v1455_v54, 1 }
 0x221   : > { %3780 = vmatmul.msk.bf16.gmra.mxu1 %vm1504_vm2, %v1465_v51 }
 0x222   : > { %v1467_v62 = vsel %vm1456_vm1, %v1464_v25, %v1466_v60  ;;  %v1910_v60 = vld [vmem:[#allocation6] sm:$0x8]  ;;  %vm1930_vm1 = vcmask 519170  }
 0x223   : > { %vm1931_vm8 = vmand %vm1930_vm1, %vm6240_vm3  ;;  %vm1981_vm1 = vsmask.f32 2306 }
 0x224   : > { %v1671_v59 = vld [vmem:[#allocation4 + $0x30] sm:$0x3] }
 0x225   : > { %v1693_v61 = vunpack.c.l.b16 %v1671_v59 }
 0x227   : > { %v1699_v63 = vpack.c.b16 %v1693_v61, %v1693_v61 }
 0x228   : > { %v1529_v2 = vpop.f32.mrf.mxu1 }
 0x229   : > { %v1710_v0 = vrot.slane %v1699_v63, 2 }
 0x22a   : > { %3874 = vmatmul.msk.bf16.gmra.mxu3 %vm1504_vm2, %v1709_v58 }
 0x22b   : > { %v1711_v1 = vsel %vm1700_vm6, %v1708_v57, %v1710_v0 }
 0x230   : > { %v1531_v10 = vpop.f32.mrf.mxu1 }
 0x231   : > { %3781 = vmatmul.msk.bf16.gmra.mxu1 %vm1504_vm2, %v1467_v62 }
 0x23a   : > { %3875 = vmatmul.msk.bf16.gmra.mxu3 %vm1504_vm2, %v1711_v1  ;;  %vm1935_vm2 = vcmask 516096  }
 0x23b   : > { %vm1936_vm14 = vmand %vm1935_vm2, %vm969_vm13  ;;  %vm1951_vm13 = vcmask 519169   ;;  %vm6243_vm2 = vsmask.f32 1280 }
 0x23c   : > { %vm1960_vm3 = vmor %vm6243_vm2, %vm1959_vm9 }
 0x24e   : > { %v1772_v3 = vpop.f32.mrf.mxu3 }
 0x252   : > { %v1623_v4 = vpop.f32.mrf.mxu2 }
 0x253   : > { %v1624_v5 = vadd.f32 %v1623_v4, %v1529_v2 }
 0x255   : > { %v1797_v7 = vadd.f32 %v1772_v3, %v1624_v5 }
 0x256   : > { %v1774_v13 = vpop.f32.mrf.mxu3 }
 0x257   : > { %v1811_v22 = vadd.f32 %v5358_v20, %v1797_v7  ;;  %v1915_v7 = vld [vmem:[#allocation6 + $0x4] sm:$0x3] }
 0x259   : > { %v1821_v8 = vmax.f32 %v1811_v22, 0.0 }
 0x25a   : > { %v1625_v9 = vpop.f32.mrf.mxu2 }
 0x25b   : > { %1832 = vst.msk [vmem:[#allocation5] sm:$0xff] %vm1831_vm4, %v1821_v8  ;;  %v1626_v12 = vadd.f32 %v1625_v9, %v1531_v10 }
 0x25d   : > { %v1798_v14 = vadd.f32 %v1774_v13, %v1626_v12 }
 0x25f   : > { %v1812_v15 = vadd.f32 %v5358_v20, %v1798_v14 }
 0x261   : > { %v1822_v23 = vmax.f32 %v1812_v15, 0.0 }
 0x262   : > { %v1628_v47 = vpop.f32.mrf.mxu2 }
 0x263   : > { %1833 = vst.msk [vmem:[#allocation5 + $0x8] sm:$0xff] %vm1831_vm4, %v1822_v23 }
 0x268   : > { %v1534_v53 = vpop.f32.mrf.mxu1 }
 0x269   : > { %v1629_v17 = vadd.f32 %v1628_v47, %v1534_v53 }
 0x26a   : > { %v1630_v27 = vpop.f32.mrf.mxu2  ;;  %v1842_v52 = vld [vmem:[#allocation5] ss:$2 sm:$0xff]  ;;  %v1852_v34 = vld [vmem:[#allocation5 + $0x1] ss:$2 sm:$0xff] }
 0x26b   : > { %v1881_v48 = vmax.f32 %v1842_v52, %v1852_v34 }
 0x270   : > { %v1536_v11 = vpop.f32.mrf.mxu1 }
 0x271   : > { %v1631_v29 = vadd.f32 %v1630_v27, %v1536_v11 }
 0x272   : > { %v1633_v28 = vpop.f32.mrf.mxu2 }
 0x27a   : > { %v1635_v40 = vpop.f32.mrf.mxu2 }
 0x289   : > { %v1638_v50 = vpop.f32.mrf.mxu2 }
 0x28d   : > { %v1777_v18 = vpop.f32.mrf.mxu3 }
 0x28e   : > { %v1799_v21 = vadd.f32 %v1777_v18, %v1629_v17  ;;  %v1539_v24 = vpop.f32.mrf.mxu1 }
 0x28f   : > { %v1634_v30 = vadd.f32 %v1633_v28, %v1539_v24 }
 0x290   : > { %v1813_v19 = vadd.f32 %v5358_v20, %v1799_v21 }
 0x291   : > { %v1640_v2 = vpop.f32.mrf.mxu2 }
 0x292   : > { %v1823_v26 = vmax.f32 %v1813_v19, 0.0 }
 0x294   : > { %1834 = vst.msk [vmem:[#allocation5 + $0x10] sm:$0xff] %vm1831_vm4, %v1823_v26 }
 0x295   : > { %v1779_v31 = vpop.f32.mrf.mxu3 }
 0x296   : > { %v1800_v32 = vadd.f32 %v1779_v31, %v1631_v29  ;;  %v1541_v35 = vpop.f32.mrf.mxu1 }
 0x297   : > { %v1636_v46 = vadd.f32 %v1635_v40, %v1541_v35  ;;  %v1932_v40 = vld [vmem:[#allocation6 + $0x4] sm:$0xc] }
 0x298   : > { %v1814_v33 = vadd.f32 %v5358_v20, %v1800_v32 }
 0x299   : > { %v1643_v24 = vpop.f32.mrf.mxu2 }
 0x29a   : > { %v1824_v37 = vmax.f32 %v1814_v33, 0.0 }
 0x29c   : > { %1835 = vst.msk [vmem:[#allocation5 + $0x18] sm:$0xff] %vm1831_vm4, %v1824_v37 }
 0x29d   : > { %v1782_v16 = vpop.f32.mrf.mxu3 }
 0x29e   : > { %v1801_v36 = vadd.f32 %v1782_v16, %v1634_v30  ;;  %v1544_v41 = vpop.f32.mrf.mxu1 }
 0x29f   : > { %v1639_v59 = vadd.f32 %v1638_v50, %v1544_v41 }
 0x2a0   : > { %v1815_v45 = vadd.f32 %v5358_v20, %v1801_v36 }
 0x2a2   : > { %v1825_v39 = vmax.f32 %v1815_v45, 0.0  ;;  %v1937_v45 = vld [vmem:[#allocation6 + $0x8] sm:$0x1] }
 0x2a3   : > { %v1862_v42 = vld [vmem:[#allocation5 + $0xa] ss:$2 sm:$0xff]  ;;  %v1872_v43 = vld [vmem:[#allocation5 + $0xb] ss:$2 sm:$0xff] }
 0x2a4   : > { %1836 = vst.msk [vmem:[#allocation5 + $0x20] sm:$0xff] %vm1831_vm4, %v1825_v39  ;;  %v1886_v49 = vmax.f32 %v1862_v42, %v1872_v43  ;;  %v1844_v8 = vld [vmem:[#allocation5 + $0x10] ss:$2 sm:$0xff]  ;;  %v1854_v10 = vld [vmem:[#allocation5 + $0x11] ss:$2 sm:$0xff] }
 0x2a5   : > { %v1784_v25 = vpop.f32.mrf.mxu3  ;;  %v1882_v23 = vmax.f32 %v1844_v8, %v1854_v10 }
 0x2a6   : > { %v1802_v51 = vadd.f32 %v1784_v25, %v1636_v46  ;;  %v1891_v55 = vmax.f32 %v1881_v48, %v1886_v49  ;;  %v1546_v63 = vpop.f32.mrf.mxu1  ;;  %v1645_v49 = vpop.f32.mrf.mxu2 }
 0x2a7   : > { %v1641_v15 = vadd.f32 %v1640_v2, %v1546_v63 }
 0x2a8   : > { %v1816_v56 = vadd.f32 %v5358_v20, %v1802_v51  ;;  %v1896_v57 = vpack.c.bf16 %v1891_v55, %v1891_v55 }
 0x2aa   : > { %v1826_v44 = vmax.f32 %v1816_v56, 0.0  ;;  %v1898_v58 = vshll.u32 %v1896_v57, 16  ;;  %v1901_v54 = vshrl.u32 %v1896_v57, 16 }
 0x2ac   : > { %1837 = vst.msk [vmem:[#allocation5 + $0x28] sm:$0xff] %vm1831_vm4, %v1826_v44  ;;  %v1900_v61 = vrot.slane %v1898_v58, 5  ;;  %v1903_v62 = vrot.slane %v1901_v54, 4 }
 0x2ad   : > { %v1787_v0 = vpop.f32.mrf.mxu3 }
 0x2ae   : > { %v1803_v1 = vadd.f32 %v1787_v0, %v1639_v59  ;;  %v1904_v3 = vor.u32 %v1903_v62, %v1900_v61  ;;  %v1911_v4 = vsel %vm1909_vm15, %v1900_v61, %v1910_v60  ;;  %v1549_v17 = vpop.f32.mrf.mxu1  ;;  %vm5411_vm15 = vmand %vm1951_vm13, %vm1952_vm0 }
 0x2af   : > { %1912 = vst [vmem:[#allocation6] sm:$0x8] %v1911_v4  ;;  %v1644_v31 = vadd.f32 %v1643_v24, %v1549_v17 }
 0x2b0   : > { %v1817_v5 = vadd.f32 %v5358_v20, %v1803_v1  ;;  %v1905_v22 = vrot.slane %v1904_v3, 4 }
 0x2b2   : > { %v1827_v9 = vmax.f32 %v1817_v5, 0.0  ;;  %v1916_v13 = vsel %vm1914_vm7, %v1905_v22, %v1915_v7  ;;  %vm1980_vm7 = vcmask 518144  }
 0x2b3   : > { %v1864_v12 = vld [vmem:[#allocation5 + $0x1a] ss:$2 sm:$0xff]  ;;  %v1874_v14 = vld [vmem:[#allocation5 + $0x1b] ss:$2 sm:$0xff]  ;;  %1917 = vst [vmem:[#allocation6 + $0x4] sm:$0x3] %v1916_v13 }
 0x2b4   : > { %1838 = vst.msk [vmem:[#allocation5 + $0x30] sm:$0xff] %vm1831_vm4, %v1827_v9  ;;  %v1887_v53 = vmax.f32 %v1864_v12, %v1874_v14  ;;  %v1846_v42 = vld [vmem:[#allocation5 + $0x20] ss:$2 sm:$0xff]  ;;  %v1856_v46 = vld [vmem:[#allocation5 + $0x21] ss:$2 sm:$0xff] }
 0x2b5   : > { %v1789_v47 = vpop.f32.mrf.mxu3  ;;  %v1883_v44 = vmax.f32 %v1846_v42, %v1856_v46 }
 0x2b6   : > { %v1804_v11 = vadd.f32 %v1789_v47, %v1641_v15  ;;  %v1892_v27 = vmax.f32 %v1882_v23, %v1887_v53  ;;  %v1986_v18 = vld [vmem:[#allocation6] sm:$0xf]  ;;  %v1551_v41 = vpop.f32.mrf.mxu1  ;;  %v1954_v47 = vld [vmem:[#allocation6 + $0x8] sm:$0xe] }
 0x2b7   : > { %1991 = vst.msk [vmem:[#allocation7] sm:$0xf] %vm458_vm5, %v1986_v18  ;;  %v1996_v37 = vld [vmem:[#allocation6] sm:$0xf]  ;;  %v1646_v55 = vadd.f32 %v1645_v49, %v1551_v41 }
 0x2b8   : > { %v1818_v21 = vadd.f32 %v5358_v20, %v1804_v11  ;;  %v1918_v19 = vpack.c.bf16 %v1892_v27, %v1892_v27  ;;  %v2002_v34 = vshrl.u32 %v1996_v37, 16  ;;  %v2005_v39 = vshll.u32 %v1996_v37, 16  ;;  %v2072_v61 = vld [vmem:[#allocation6] sm:$0xe]  ;;  %v5415_v11 = vld [vmem:[#allocation6 + $0x10] sm:$0x7] }
 0x2b9   : > { %v3876_v7 = vrot.slane %v2072_v61, 9 }
 0x2ba   : > { %v1828_v26 = vmax.f32 %v1818_v21, 0.0  ;;  %v1920_v28 = vshrl.u32 %v1918_v19, 16  ;;  %v1923_v29 = vshll.u32 %v1918_v19, 16  ;;  %v2004_v56 = vrot.slane %v2002_v34, 4 }
 0x2bb   : > { %v2007_v57 = vrot.slane %v2005_v39, 5  ;;  %v2093_v21 = vrot.slane %v5415_v11, 5  ;;  %v2000_v39 = vld [vmem:[#allocation6 + $0x10] sm:$0x7] }
 0x2bc   : > { %1839 = vst.msk [vmem:[#allocation5 + $0x38] sm:$0xff] %vm1831_vm4, %v1828_v26  ;;  %v1922_v32 = vrot.slane %v1920_v28, 6  ;;  %v1925_v33 = vrot.slane %v1923_v29, 7  ;;  %v2041_v46 = vshll.u32 %v2000_v39, 16  ;;  %v4589_v11 = vld [vmem:[%s6206_s5 + $0x30] sm:$0xff] }
 0x2bd   : > { %v1792_v35 = vpop.f32.mrf.mxu3  ;;  %v2008_v63 = vor.u32 %v2007_v57, %v2004_v56 }
 0x2be   : > { %v1805_v30 = vadd.f32 %v1792_v35, %v1644_v31  ;;  %v1926_v16 = vor.u32 %v1925_v33, %v1922_v32  ;;  %v1927_v36 = vrot.slane %v1922_v32, 4  ;;  %v2095_v31 = vrot.slane %v2093_v21, 4 }
 0x2bf   : > { %v2009_v9 = vrot.slane %v2008_v63, 4 }
 0x2c0   : > { %v1819_v52 = vadd.f32 %v5358_v20, %v1805_v30  ;;  %v1933_v43 = vsel %vm1931_vm8, %v1926_v16, %v1932_v40  ;;  %v1938_v50 = vsel %vm1936_vm14, %v1927_v36, %v1937_v45  ;;  %v4606_v36 = vld [vmem:[%s6206_s5 + $0xb8] sm:$0xff]  ;;  %2105 = vst.msk [vmem:[#allocation7 + $0x24] sm:$0x3] %vm464_vm12, %v2095_v31  ;;  %vm1982_vm8 = vmand %vm1980_vm7, %vm1981_vm1 }
 0x2c1   : > { %1934 = vst [vmem:[#allocation6 + $0x4] sm:$0xc] %v1933_v43  ;;  %v4590_v45 = vld [vmem:[%s6206_s5 + $0x38] sm:$0xff]  ;;  %2285 = vmatpush.bf16.msrb.mxu2 %v4606_v36  ;;  %v4604_v36 = vld [vmem:[%s6206_s5 + $0xa8] sm:$0xff] }
 0x2c2   : > { %v1829_v48 = vmax.f32 %v1819_v52, 0.0  ;;  %1939 = vst [vmem:[#allocation6 + $0x8] sm:$0x1] %v1938_v50  ;;  %2386 = vmatpush.bf16.msrb.mxu3 %v4590_v45  ;;  %v4600_v45 = vld [vmem:[%s6206_s5 + $0x88] sm:$0xff] }
 0x2c3   : > { %v1866_v25 = vld [vmem:[#allocation5 + $0x2a] ss:$2 sm:$0xff]  ;;  %v1876_v51 = vld [vmem:[#allocation5 + $0x2b] ss:$2 sm:$0xff] }
 0x2c4   : > { %1840 = vst.msk [vmem:[#allocation5 + $0x40] sm:$0xff] %vm1831_vm4, %v1829_v48  ;;  %v1888_v58 = vmax.f32 %v1866_v25, %v1876_v51  ;;  %v1848_v27 = vld [vmem:[#allocation5 + $0x30] ss:$2 sm:$0xff]  ;;  %v1858_v17 = vld [vmem:[#allocation5 + $0x31] ss:$2 sm:$0xff]  ;;  %v2045_v48 = vshrl.u32 %v2000_v39, 16 }
 0x2c5   : > { %v1794_v54 = vpop.f32.mrf.mxu3  ;;  %v1884_v37 = vmax.f32 %v1848_v27, %v1858_v17  ;;  %2286 = vmatpush.bf16.msrb.mxu2 %v4605_v38  ;;  %v4586_v39 = vld [vmem:[%s6206_s5 + $0x18] sm:$0xff] }
 0x2c6   : > { %v1806_v59 = vadd.f32 %v1794_v54, %v1646_v55  ;;  %v1893_v60 = vmax.f32 %v1883_v44, %v1888_v58  ;;  %2387 = vmatpush.bf16.msrb.mxu3 %v4589_v11 }
 0x2c8   : > { %v1820_v62 = vadd.f32 %v5358_v20, %v1806_v59  ;;  %v1940_v0 = vpack.c.bf16 %v1893_v60, %v1893_v60  ;;  %v1997_v1 = vld [vmem:[#allocation6 + $0x4] sm:$0xf] }
 0x2c9   : > { %v1987_v2 = vld [vmem:[#allocation6 + $0x4] sm:$0xf]  ;;  %v2011_v5 = vshll.u32 %v1997_v1, 16  ;;  %v2015_v35 = vshrl.u32 %v1997_v1, 16  ;;  %v2043_v1 = vrot.slane %v2041_v46, 5  ;;  %2287 = vmatpush.bf16.msrb.mxu2 %v4604_v36 }
 0x2ca   : > { %v5395_v3 = vld [vmem:[#allocation6 + $0x4] sm:$0xf]  ;;  %v1830_v4 = vmax.f32 %v1820_v62, 0.0  ;;  %1992 = vst.msk [vmem:[#allocation7 + $0x8] sm:$0xf] %vm458_vm5, %v1987_v2  ;;  %v1942_v8 = vshrl.u32 %v1940_v0, 16 }
 0x2cb   : > { %v2084_v22 = vrot.slane %v5395_v3, 5  ;;  %v1945_v10 = vshll.u32 %v1940_v0, 16  ;;  %v5400_v12 = vrot.slane %v2011_v5, 5  ;;  %v1850_v24 = vld [vmem:[#allocation5 + $0x40] ss:$2 sm:$0x3] }
 0x2cc   : > { %1841 = vst.msk [vmem:[#allocation5 + $0x48] sm:$0xff] %vm1831_vm4, %v1830_v4  ;;  %v1944_v13 = vrot.slane %v1942_v8, 4  ;;  %v1860_v19 = vld [vmem:[#allocation5 + $0x41] ss:$2 sm:$0x3]  ;;  %v2017_v42 = vrot.slane %v2015_v35, 4 }
 0x2cd   : > { %v2085_v20 = vsel %vm5066_vm10, %v3876_v7, %v2084_v22  ;;  %v1947_v14 = vrot.slane %v1945_v10, 5  ;;  %v2014_v15 = vsel %vm4995_vm11, %v2009_v9, %v5400_v12  ;;  %v1885_v30 = vmax.f32 %v1850_v24, %v1860_v19  ;;  %v1983_v9 = vld [vmem:[#allocation6 + $0xc] sm:$0x7]  ;;  %v1990_v46 = vld [vmem:[#allocation6 + $0x10] sm:$0x3] }
 0x2ce   : > { %2101 = vst.msk [vmem:[#allocation7 + $0x4] sm:$0xf] %vm458_vm5, %v2085_v20  ;;  %2050 = vrot.lane.b32.xlu2 %v2014_v15, %s4818_s20  ;;  %v2018_v56 = vor.u32 %v2017_v42, %v5400_v12  ;;  %v2086_v62 = vrot.slane %v2084_v22, 4  ;;  %v2047_v2 = vrot.slane %v2045_v48, 4  ;;  %v4584_v48 = vld [vmem:[%s6206_s5 + $0x8] sm:$0xff] }
 0x2cf   : > { %v1948_v23 = vor.u32 %v1947_v14, %v1944_v13  ;;  %1995 = vst.msk [vmem:[#allocation7 + $0x20] sm:$0x3] %vm464_vm12, %v1990_v46 }
 0x2d0   : > { %v2019_v4 = vrot.slane %v2018_v56, 4  ;;  %v2048_v12 = vor.u32 %v2047_v2, %v2043_v1 }
 0x2d1   : > { %v1949_v18 = vrot.slane %v1948_v23, 4 }
 0x2d2   : > { %v2049_v15 = vrot.slane %v2048_v12, 4  ;;  %v4609_v12 = vld [vmem:[%s6206_s5 + $0xd0] sm:$0xff] }
 0x2d3   : > { %v1868_v26 = vld [vmem:[#allocation5 + $0x3a] ss:$2 sm:$0xff]  ;;  %v1870_v28 = vld [vmem:[#allocation5 + $0x4a] ss:$2 sm:$0x3]  ;;  %v1955_v29 = vsel %vm5411_vm15, %v1949_v18, %v1954_v47 }
 0x2d4   : > { %v1878_v32 = vld [vmem:[#allocation5 + $0x3b] ss:$2 sm:$0xff]  ;;  %v1880_v33 = vld [vmem:[#allocation5 + $0x4b] ss:$2 sm:$0x3] }
 0x2d5   : > { %v1889_v40 = vmax.f32 %v1868_v26, %v1878_v32  ;;  %v1890_v16 = vmax.f32 %v1870_v28, %v1880_v33  ;;  %1956 = vst [vmem:[#allocation6 + $0x8] sm:$0xe] %v1955_v29 }
 0x2d7   : > { %v1894_v52 = vmax.f32 %v1884_v37, %v1889_v40  ;;  %v1895_v34 = vmax.f32 %v1885_v30, %v1890_v16  ;;  %v4602_v16 = vld [vmem:[%s6206_s5 + $0x98] sm:$0xff] }
 0x2d8   : > { %2263 = vmatpush.bf16.msra.mxu1 %v4602_v16 }
 0x2d9   : > { %v1957_v41 = vpack.c.bf16 %v1894_v52, %v1894_v52  ;;  %v1958_v43 = vpack.c.bf16 %v1895_v34, %v1895_v34  ;;  %v4587_v52 = vld [vmem:[%s6206_s5 + $0x20] sm:$0xff] }
 0x2da   : > { %v4599_v34 = vld [vmem:[%s6206_s5 + $0x80] sm:$0xff] }
 0x2db   : > { %v1962_v50 = vshrl.u32 %v1957_v41, 16  ;;  %v1965_v49 = vshll.u32 %v1957_v41, 16  ;;  %v1971_v25 = vshrl.u32 %v1958_v43, 16  ;;  %v1974_v51 = vshll.u32 %v1958_v43, 16  ;;  %v4598_v41 = vld [vmem:[%s6206_s5 + $0x78] sm:$0xff]  ;;  %v4585_v43 = vld [vmem:[%s6206_s5 + $0x10] sm:$0xff] }
 0x2dc   : > { %v1998_v55 = vld [vmem:[#allocation6 + $0x8] sm:$0xf]  ;;  %2264 = vmatpush.bf16.msra.mxu1 %v4601_v6  ;;  %v4037_v6 = vld [vmem:[#allocation7 + $0x20] sm:$0x30] }
 0x2dd   : > { %v2074_v57 = vld [vmem:[#allocation6 + $0x8] sm:$0xf]  ;;  %v1964_v58 = vrot.slane %v1962_v50, 6  ;;  %v1967_v54 = vrot.slane %v1965_v49, 7  ;;  %v1973_v59 = vrot.slane %v1971_v25, 6  ;;  %v1976_v60 = vrot.slane %v1974_v51, 7 }
 0x2de   : > { %v1988_v44 = vld [vmem:[#allocation6 + $0x8] sm:$0xf]  ;;  %v2021_v61 = vshll.u32 %v1998_v55, 16  ;;  %v2087_v63 = vrot.slane %v2074_v57, 5  ;;  %v2025_v22 = vshrl.u32 %v1998_v55, 16  ;;  %v4597_v50 = vld [vmem:[%s6206_s5 + $0x70] sm:$0xff] }
 0x2df   : > { %1993 = vst.msk [vmem:[#allocation7 + $0x10] sm:$0xf] %vm458_vm5, %v1988_v44  ;;  %v1968_v0 = vor.u32 %v1967_v54, %v1964_v58  ;;  %v1977_v10 = vor.u32 %v1976_v60, %v1973_v59  ;;  %v4583_v49 = vld [vmem:[%s6206_s5] sm:$0xff]  ;;  %v4596_v51 = vld [vmem:[%s6206_s5 + $0x68] sm:$0xff]  ;;  %v4618_v57 = vld [vmem:[%s6206_s5 + $0x118] sm:$0xff] }
 0x2e0   : > { %v2023_v5 = vrot.slane %v2021_v61, 5  ;;  %v2088_v7 = vsel %vm5066_vm10, %v2086_v62, %v2087_v63  ;;  %v2027_v14 = vrot.slane %v2025_v22, 4  ;;  %v2089_v24 = vrot.slane %v2087_v63, 4  ;;  %2265 = vmatpush.bf16.msra.mxu1 %v4600_v45  ;;  %v4603_v25 = vld [vmem:[%s6206_s5 + $0xa0] sm:$0xff]  ;;  %v4614_v44 = vld [vmem:[%s6206_s5 + $0xf8] sm:$0xff]  ;;  %v4617_v58 = vld [vmem:[%s6206_s5 + $0x110] sm:$0xff] }
 0x2e1   : > { %v1969_v8 = vrot.slane %v1968_v0, 4  ;;  %2102 = vst.msk [vmem:[#allocation7 + $0xc] sm:$0xf] %vm458_vm5, %v2088_v7  ;;  %2288 = vmatpush.bf16.msrb.mxu2 %v4603_v25  ;;  %v4595_v55 = vld [vmem:[%s6206_s5 + $0x60] sm:$0xff]  ;;  %v4594_v59 = vld [vmem:[%s6206_s5 + $0x58] sm:$0xff]  ;;  %v4613_v60 = vld [vmem:[%s6206_s5 + $0xf0] sm:$0xff] }
 0x2e2   : > { %v2024_v3 = vsel %vm4995_vm11, %v2019_v4, %v2023_v5  ;;  %v2028_v23 = vor.u32 %v2027_v14, %v2023_v5  ;;  %v4616_v61 = vld [vmem:[%s6206_s5 + $0x108] sm:$0xff]  ;;  %v4615_v0 = vld [vmem:[%s6206_s5 + $0x100] sm:$0xff] }
 0x2e3   : > { %2052 = vrot.lane.b32.xlu0 %v2024_v3, %s4818_s20  ;;  %v1978_v20 = vsel %vm1960_vm3, %v1969_v8, %v1977_v10  ;;  %v4612_v62 = vld [vmem:[%s6206_s5 + $0xe8] sm:$0xff]  ;;  %v4611_v7 = vld [vmem:[%s6206_s5 + $0xe0] sm:$0xff]  ;;  %v4593_v10 = vld [vmem:[%s6206_s5 + $0x50] sm:$0xff] }
 0x2e4   : > { %v1984_v13 = vsel %vm1982_vm8, %v1978_v20, %v1983_v9  ;;  %v2029_v26 = vrot.slane %v2028_v23, 4  ;;  %2266 = vmatpush.bf16.msra.mxu1 %v4599_v34  ;;  %v4610_v3 = vld [vmem:[%s6206_s5 + $0xd8] sm:$0xff]  ;;  %v4592_v22 = vld [vmem:[%s6206_s5 + $0x48] sm:$0xff] }
 0x2e5   : > { %1985 = vst [vmem:[#allocation6 + $0xc] sm:$0x7] %v1984_v13  ;;  %2553 = vmatpush.bf16.msra.mxu2 %v4614_v44  ;;  %v4591_v13 = vld [vmem:[%s6206_s5 + $0x40] sm:$0xff]  ;;  %v4608_v23 = vld [vmem:[%s6206_s5 + $0xc8] sm:$0xff] }
 0x2e8   : > { %2267 = vmatpush.bf16.msra.mxu1 %v4598_v41  ;;  %v4619_v45 = vld [vmem:[#allocation7 + $0xc] sm:$0xc] }
 0x2e9   : > { %2554 = vmatpush.bf16.msra.mxu2 %v4613_v60 }
 0x2eb   : > { %2058 = vrot.lane.b32.xlu0 %v2049_v15, %s4818_s20 }
 0x2ec   : > { %v1999_v53 = vld [vmem:[#allocation6 + $0xc] sm:$0xf]  ;;  %2268 = vmatpush.bf16.msra.mxu1 %v4597_v50 }
 0x2ed   : > { %v1989_v47 = vld [vmem:[#allocation6 + $0xc] sm:$0xf]  ;;  %v2031_v17 = vshll.u32 %v1999_v53, 16  ;;  %v2035_v18 = vshrl.u32 %v1999_v53, 16  ;;  %2555 = vmatpush.bf16.msra.mxu2 %v4612_v62 }
 0x2ee   : > { %v2075_v27 = vld [vmem:[#allocation6 + $0xc] sm:$0xf]  ;;  %1994 = vst.msk [vmem:[#allocation7 + $0x18] sm:$0xf] %vm458_vm5, %v1989_v47 }
 0x2ef   : > { %v2090_v19 = vrot.slane %v2075_v27, 5  ;;  %v2033_v28 = vrot.slane %v2031_v17, 5  ;;  %v2037_v29 = vrot.slane %v2035_v18, 4 }
 0x2f0   : > { %2269 = vmatpush.bf16.msra.mxu1 %v4596_v51 }
 0x2f1   : > { %v2091_v31 = vsel %vm5066_vm10, %v2089_v24, %v2090_v19  ;;  %v2092_v32 = vrot.slane %v2090_v19, 4  ;;  %v2034_v33 = vsel %vm4995_vm11, %v2029_v26, %v2033_v28  ;;  %v2038_v35 = vor.u32 %v2037_v29, %v2033_v28  ;;  %2556 = vmatpush.bf16.msra.mxu2 %v4611_v7  ;;  %v4607_v29 = vld [vmem:[%s6206_s5 + $0xc0] sm:$0xff] }
 0x2f2   : > { %2103 = vst.msk [vmem:[#allocation7 + $0x14] sm:$0xf] %vm458_vm5, %v2091_v31  ;;  %2054 = vrot.lane.b32.xlu1 %v2034_v33, %s4818_s20 }
 0x2f3   : > { %v2094_v37 = vsel %vm5066_vm10, %v2092_v32, %v2093_v21  ;;  %v2039_v30 = vrot.slane %v2038_v35, 4  ;;  %v4588_v21 = vld [vmem:[%s6206_s5 + $0x28] sm:$0xff]  ;;  %vm2070_vm10 = vcmask 1041920  }
 0x2f4   : > { %2104 = vst.msk [vmem:[#allocation7 + $0x1c] sm:$0xf] %vm458_vm5, %v2094_v37  ;;  %2388 = vmatpush.bf16.msrb.mxu3 %v4588_v21  ;;  %2270 = vmatpush.bf16.msra.mxu1 %v4595_v55  ;;  %vm2176_vm5 = vcmask 1044480  }
 0x2f5   : > { %v2044_v40 = vsel %vm4995_vm11, %v2039_v30, %v2043_v1  ;;  %vm2065_vm11 = vcmask 1043968   ;;  %2557 = vmatpush.bf16.msra.mxu2 %v4610_v3 }
 0x2f6   : > { %2056 = vrot.lane.b32.xlu2 %v2044_v40, %s4818_s20 }
 0x2f8   : > { %2389 = vmatpush.bf16.msrb.mxu3 %v4587_v52  ;;  %2408 = vmatpush.bf16.msrb.mxu1 %v4594_v59  ;;  %v4407_v59 = vld [vmem:[%s6210_s9 + $0x1f8] sm:$0xf0] }
 0x2f9   : > { %2558 = vmatpush.bf16.msra.mxu2 %v4609_v12  ;;  %v4029_v21 = vld [vmem:[#allocation7 + $0x10] sm:$0xf0]  ;;  %v4638_v12 = vld [vmem:[%s6208_s7 + $0x74] sm:$0xf0] }
 0x2fa   : > { %v4032_v52 = vor.u32 %v4619_v45, %v4029_v21  ;;  %v4125_v45 = vld [vmem:[%s6208_s7 + $0x40] sm:$0xf] }
 0x2fb   : > { %v4621_v38 = vld [vmem:[#allocation7 + $0x1c] sm:$0xf] }
 0x2fc   : > { %2390 = vmatpush.bf16.msrb.mxu3 %v4586_v39  ;;  %2409 = vmatpush.bf16.msrb.mxu1 %v4593_v10  ;;  %v4040_v36 = vor.u32 %v4621_v38, %v4037_v6  ;;  %v2470_v39 = vrot.slane %v4032_v52, 2  ;;  %v4135_v38 = vld [vmem:[%s6208_s7 + $0x58] sm:$0xf0]  ;;  %v4632_v52 = vld [vmem:[%s6208_s7 + $0x44] sm:$0xf0] }
 0x2fd   : > { %2559 = vmatpush.bf16.msra.mxu2 %v4608_v23 }
 0x2fe   : > { %v2471_v34 = vrot.slane %v4040_v36, 2 }
 0x300   : > { %2391 = vmatpush.bf16.msrb.mxu3 %v4585_v43  ;;  %2410 = vmatpush.bf16.msrb.mxu1 %v4592_v22  ;;  %v4149_v22 = vld [vmem:[%s6208_s7 + $0x70] sm:$0xf] }
 0x301   : > { %2560 = vmatpush.bf16.msra.mxu2 %v4607_v29  ;;  %v5626_v29 = vld [vmem:[%s6207_s6] ss:$0 sm:$0xff] }
 0x304   : > { %2392 = vmatpush.bf16.msrb.mxu3 %v4584_v48  ;;  %2411 = vmatpush.bf16.msrb.mxu1 %v4591_v13  ;;  %v4150_v13 = vor.u32 %v4638_v12, %v4149_v22 }
 0x308   : > { %2393 = vmatpush.bf16.msrb.mxu3 %v4583_v49 }
 0x30c   : > { %2575 = vmatpush.bf16.msra.mxu3 %v4618_v57 }
 0x310   : > { %2576 = vmatpush.bf16.msra.mxu3 %v4617_v58 }
 0x314   : > { %2577 = vmatpush.bf16.msra.mxu3 %v4616_v61 }
 0x318   : > { %2578 = vmatpush.bf16.msra.mxu3 %v4615_v0 }
 0x328   : > { %v2051_v42 = vpop.permute.xlu2 %2050 }
 0x329   : > { %2066 = vst.msk [vmem:[#allocation7] sm:$0xf] %vm2065_vm11, %v2051_v42  ;;  %v2472_v42 = vsel %vm1700_vm6, %v2470_v39, %v2471_v34 }
 0x330   : > { %v5537_v63 = vld [vmem:[#allocation7] sm:$0xff] }
 0x331   : > { %v2300_v5 = vunpack.c.l.b16 %v5537_v63  ;;  %v2158_v20 = vld [vmem:[#allocation7] sm:$0x88]  ;;  %v2301_v51 = vunpack.c.h.b16 %v5537_v63 }
 0x332   : > { %v2164_v53 = vunpack.c.l.b16 %v2158_v20  ;;  %v2165_v47 = vunpack.c.h.b16 %v2158_v20  ;;  %v4637_v20 = vld [vmem:[%s6208_s7 + $0x74] sm:$0xf] }
 0x350   : > { %v2057_v56 = vpop.permute.xlu2 %2056 }
 0x351   : > { %2069 = vst.msk [vmem:[#allocation7 + $0x18] sm:$0xf] %vm2065_vm11, %v2057_v56 }
 0x355   : > { %v2053_v54 = vpop.permute.xlu0 %2052 }
 0x356   : > { %2067 = vst.msk [vmem:[#allocation7 + $0x8] sm:$0xf] %vm2065_vm11, %v2053_v54  ;;  %v4700_v54 = vld [vmem:[%s6210_s9 + $0x1ec] sm:$0xf] }
 0x357   : > { %v4410_v60 = vor.u32 %v4700_v54, %v4407_v59  ;;  %v4375_v54 = vld [vmem:[%s6210_s9 + $0x1b8] sm:$0xf0] }
 0x358   : > { %v2159_v15 = vld [vmem:[#allocation7 + $0x18] sm:$0x77] }
 0x359   : > { %v2170_v17 = vunpack.c.l.b16 %v2159_v15  ;;  %v2171_v18 = vunpack.c.h.b16 %v2159_v15  ;;  %v4035_v50 = vld [vmem:[#allocation7 + $0x18] sm:$0xf]  ;;  %3241 = vmatpush.bf16.msrb.mxu0 %v4410_v60 }
 0x35d   : > { %v2059_v1 = vpop.permute.xlu0 %2058  ;;  %v5542_v2 = vld [vmem:[#allocation7 + $0x8] sm:$0xff] }
 0x35e   : > { %2071 = vst.msk [vmem:[#allocation7 + $0x20] sm:$0x3] %vm2070_vm10, %v2059_v1  ;;  %v2166_v4 = vunpack.c.l.b16 %v5542_v2  ;;  %v2167_v14 = vunpack.c.h.b16 %v5542_v2  ;;  %v4027_v43 = vld [vmem:[#allocation7 + $0x8] sm:$0xc] }
 0x360   : > { %v2302_v8 = vpack.c.b16 %v2166_v4, %v2300_v5  ;;  %v2172_v24 = vpack.c.b16 %v2166_v4, %v2164_v53  ;;  %v2173_v28 = vpack.c.b16 %v2167_v14, %v2165_v47  ;;  %v2303_v56 = vpack.c.b16 %v2167_v14, %v2301_v51  ;;  %v4151_v14 = vld [vmem:[%s6208_s7 + $0x78] sm:$0xf0]  ;;  %v4141_v47 = vld [vmem:[%s6208_s7 + $0x60] sm:$0xf] }
 0x361   : > { %v4154_v23 = vor.u32 %v4637_v20, %v4151_v14  ;;  %v4119_v51 = vld [vmem:[%s6208_s7 + $0x38] sm:$0xf0] }
 0x362   : > { %2394 = vmatmul.bf16.vlgmr.msrb.gmra.mxu3 %v2302_v8  ;;  %v2177_v37 = vrot.slane %v2172_v24, 3  ;;  %v2180_v30 = vrot.slane %v2173_v28, 3  ;;  %v4143_v24 = vld [vmem:[%s6208_s7 + $0x68] sm:$0xf0] }
 0x364   : > { %v2055_v9 = vpop.permute.xlu1 %2054 }
 0x365   : > { %2068 = vst.msk [vmem:[#allocation7 + $0x10] sm:$0xf] %vm2065_vm11, %v2055_v9  ;;  %v4622_v46 = vld [vmem:[#allocation7 + $0x1c] sm:$0x30] }
 0x366   : > { %v4036_v49 = vor.u32 %v4622_v46, %v4035_v50  ;;  %v4630_v50 = vld [vmem:[%s6208_s7 + $0x34] sm:$0xf0] }
 0x368   : > { %v2468_v55 = vrot.slane %v4036_v49, 2 }
 0x36c   : > { %v2132_v27 = vld [vmem:[#allocation7 + $0x10] sm:$0xff] }
 0x36d   : > { %v2168_v19 = vunpack.c.l.b16 %v2132_v27  ;;  %v2169_v26 = vunpack.c.h.b16 %v2132_v27  ;;  %v4620_v41 = vld [vmem:[#allocation7 + $0xc] sm:$0xf0]  ;;  %v4636_v27 = vld [vmem:[%s6208_s7 + $0x64] sm:$0xf0] }
 0x36e   : > { %v4028_v48 = vor.u32 %v4620_v41, %v4027_v43  ;;  %v4126_v41 = vor.u32 %v4632_v52, %v4125_v45  ;;  %v4127_v43 = vld [vmem:[%s6208_s7 + $0x48] sm:$0xf0]  ;;  %v4253_v52 = vld [vmem:[%s6210_s9 + $0xc0] sm:$0xf] }
 0x36f   : > { %v2174_v31 = vpack.c.b16 %v2170_v17, %v2168_v19  ;;  %v2175_v32 = vpack.c.b16 %v2171_v18, %v2169_v26  ;;  %v2304_v33 = vpack.c.b16 %v2168_v19, %v2168_v19  ;;  %v2305_v44 = vpack.c.b16 %v2169_v26, %v2169_v26  ;;  %v4635_v17 = vld [vmem:[%s6208_s7 + $0x64] sm:$0xf] }
 0x370   : > { %v2467_v25 = vrot.slane %v4028_v48, 2  ;;  %v4142_v18 = vor.u32 %v4636_v27, %v4141_v47  ;;  %v4146_v26 = vor.u32 %v4635_v17, %v4143_v24  ;;  %v4117_v48 = vld [vmem:[%s6208_s7 + $0x30] sm:$0xf]  ;;  %v4093_v17 = vld [vmem:[%s6208_s7] sm:$0xf] }
 0x371   : > { %v2178_v35 = vrot.slane %v2174_v31, 3  ;;  %v2181_v40 = vrot.slane %v2175_v32, 3  ;;  %v4133_v32 = vld [vmem:[%s6208_s7 + $0x50] sm:$0xf] }
 0x372   : > { %2399 = vmatmul.bf16.gmra.mxu3 %v2304_v33  ;;  %v2469_v57 = vsel %vm1700_vm6, %v2467_v25, %v2468_v55  ;;  %v4634_v33 = vld [vmem:[%s6208_s7 + $0x54] sm:$0xf0]  ;;  %v4629_v25 = vld [vmem:[%s6208_s7 + $0x34] sm:$0xf] }
 0x373   : > { %v2179_v16 = vsel %vm2176_vm5, %v2177_v37, %v2178_v35  ;;  %v2182_v11 = vsel %vm2176_vm5, %v2180_v30, %v2181_v40  ;;  %v4122_v60 = vor.u32 %v4629_v25, %v4119_v51  ;;  %v4271_v25 = vld [vmem:[%s6210_s9 + $0xf0] sm:$0xf0] }
 0x374   : > { %2271 = vmatmul.bf16.vlgmr.msra.gmra.mxu1 %v2179_v16  ;;  %3949 = vmatmul.msk.bf16.vlgmr.msrb.gmra.mxu2 %vm1831_vm4, %v2182_v11  ;;  %v4391_v16 = vld [vmem:[%s6210_s9 + $0x1d8] sm:$0xf0]  ;;  %v4134_v11 = vor.u32 %v4634_v33, %v4133_v32 }
 0x375   : > { %2726 = vmatpush.bf16.msra.mxu1 %v4150_v13  ;;  %2739 = vmatpush.bf16.msrb.mxu2 %v4154_v23  ;;  %v4626_v13 = vld [vmem:[%s6208_s7 + $0x14] sm:$0xf0] }
 0x379   : > { %2727 = vmatpush.bf16.msra.mxu1 %v4142_v18  ;;  %2740 = vmatpush.bf16.msrb.mxu2 %v4146_v26  ;;  %v4624_v18 = vld [vmem:[%s6208_s7 + $0x4] sm:$0xf0] }
 0x37a   : > { %v4094_v33 = vor.u32 %v4624_v18, %v4093_v17  ;;  %v4349_v17 = vld [vmem:[%s6210_s9 + $0x180] sm:$0xf]  ;;  %v4689_v18 = vld [vmem:[%s6210_s9 + $0x18c] sm:$0xf0] }
 0x37d   : > { %2728 = vmatpush.bf16.msra.mxu1 %v4134_v11  ;;  %v4684_v11 = vld [vmem:[%s6210_s9 + $0x16c] sm:$0xf] }
 0x381   : > { %2729 = vmatpush.bf16.msra.mxu1 %v4126_v41  ;;  %v4680_v41 = vld [vmem:[%s6210_s9 + $0x14c] sm:$0xf] }
 0x382   : > { %4089 = vmatmul.msk.bf16.vlgmr.msra.gmra.mxu3 %vm1831_vm4, %v2472_v42 }
 0x384   : > { %2276 = vmatmul.bf16.gmra.mxu1 %v2178_v35  ;;  %3950 = vmatmul.msk.bf16.gmra.mxu2 %vm1831_vm4, %v2181_v40  ;;  %v4633_v35 = vld [vmem:[%s6208_s7 + $0x54] sm:$0xf]  ;;  %v4696_v40 = vld [vmem:[%s6210_s9 + $0x1cc] sm:$0xf] }
 0x385   : > { %v4394_v21 = vor.u32 %v4696_v40, %v4391_v16  ;;  %v4138_v36 = vor.u32 %v4633_v35, %v4135_v38  ;;  %v4359_v16 = vld [vmem:[%s6210_s9 + $0x198] sm:$0xf0] }
 0x387   : > { %3242 = vmatpush.bf16.msrb.mxu0 %v4394_v21  ;;  %2741 = vmatpush.bf16.msrb.mxu2 %v4138_v36  ;;  %v4669_v21 = vld [vmem:[%s6210_s9 + $0xec] sm:$0xf0] }
 0x392   : > { %4090 = vmatmul.msk.bf16.gmra.mxu3 %vm1831_vm4, %v2471_v34  ;;  %v4631_v34 = vld [vmem:[%s6208_s7 + $0x44] sm:$0xf] }
 0x393   : > { %v4130_v46 = vor.u32 %v4631_v34, %v4127_v43  ;;  %v4665_v34 = vld [vmem:[%s6210_s9 + $0xcc] sm:$0xf0]  ;;  %v4327_v43 = vld [vmem:[%s6210_s9 + $0x158] sm:$0xf0] }
 0x394   : > { %3999 = vmatmul.msk.bf16.vlgmr.msrb.gmra.mxu1 %vm1831_vm4, %v2303_v56  ;;  %2561 = vmatmul.bf16.vlgmr.msra.gmra.mxu2 %v2469_v57  ;;  %v4692_v56 = vld [vmem:[%s6210_s9 + $0x1ac] sm:$0xf] }
 0x395   : > { %2742 = vmatpush.bf16.msrb.mxu2 %v4130_v46  ;;  %v4254_v46 = vor.u32 %v4665_v34, %v4253_v52  ;;  %v4317_v52 = vld [vmem:[%s6210_s9 + $0x140] sm:$0xf]  ;;  %v4681_v34 = vld [vmem:[%s6210_s9 + $0x14c] sm:$0xf0] }
 0x399   : > { %2743 = vmatpush.bf16.msrb.mxu2 %v4122_v60 }
 0x3a4   : > { %4000 = vmatmul.msk.bf16.gmra.mxu1 %vm1831_vm4, %v2305_v44  ;;  %2566 = vmatmul.bf16.gmra.mxu2 %v2468_v55 }
 0x3e5   : > { %v2395_v58 = vpop.f32.mrf.mxu3 }
 0x3ed   : > { %v5587_v61 = vpop.f32.mrf.mxu3 }
 0x3f1   : > { %v2272_v62 = vpop.f32.mrf.mxu1 }
 0x3f5   : > { %v5589_v63 = vpop.f32.mrf.mxu3 }
 0x3f7   : > { %v2290_v0 = vpop.f32.mrf.mxu2 }
 0x3f8   : > { %v2291_v53 = vadd.f32 %v2290_v0, %v2272_v62  ;;  %v4109_v62 = vld [vmem:[%s6208_s7 + $0x20] sm:$0xf]  ;;  %v4628_v0 = vld [vmem:[%s6208_s7 + $0x24] sm:$0xf0] }
 0x3f9   : > { %v2274_v1 = vpop.f32.mrf.mxu1  ;;  %v4110_v12 = vor.u32 %v4628_v0, %v4109_v62  ;;  %v4701_v62 = vld [vmem:[%s6210_s9 + $0x1ec] sm:$0xf0] }
 0x3fa   : > { %v2396_v28 = vadd.f32 %v2395_v58, %v2291_v53  ;;  %v4118_v58 = vor.u32 %v4630_v50, %v4117_v48  ;;  %v4237_v48 = vld [vmem:[%s6210_s9 + $0xa0] sm:$0xf]  ;;  %v4661_v50 = vld [vmem:[%s6210_s9 + $0xac] sm:$0xf0] }
 0x3fb   : > { %v4238_v60 = vor.u32 %v4661_v50, %v4237_v48  ;;  %v4175_v48 = vld [vmem:[%s6210_s9 + $0x30] sm:$0xf0]  ;;  %v4699_v50 = vld [vmem:[%s6210_s9 + $0x1e4] sm:$0xf] }
 0x3fc   : > { %2730 = vmatpush.bf16.msra.mxu1 %v4118_v58 }
 0x3fd   : > { %v2402_v2 = vpop.f32.mrf.mxu3 }
 0x3ff   : > { %v2292_v4 = vpop.f32.mrf.mxu2 }
 0x400   : > { %v2293_v39 = vadd.f32 %v2292_v4, %v2274_v1  ;;  %v4378_v1 = vor.u32 %v4692_v56, %v4375_v54  ;;  %v4627_v4 = vld [vmem:[%s6208_s7 + $0x24] sm:$0xf]  ;;  %2731 = vmatpush.bf16.msra.mxu1 %v4110_v12  ;;  %v4255_v56 = vld [vmem:[%s6210_s9 + $0xd0] sm:$0xf0] }
 0x401   : > { %v5591_v5 = vpop.f32.mrf.mxu1 }
 0x402   : > { %v2398_v44 = vadd.f32 %v5587_v61, %v2293_v39  ;;  %3243 = vmatpush.bf16.msrb.mxu0 %v4378_v1  ;;  %v4221_v1 = vld [vmem:[%s6210_s9 + $0x80] sm:$0xf] }
 0x405   : > { %v2580_v7 = vpop.f32.mrf.mxu3 }
 0x407   : > { %v5593_v8 = vpop.f32.mrf.mxu2 }
 0x409   : > { %v2279_v10 = vpop.f32.mrf.mxu1 }
 0x40d   : > { %v5595_v9 = vpop.f32.mrf.mxu3 }
 0x40f   : > { %v2297_v3 = vpop.f32.mrf.mxu2 }
 0x410   : > { %v2296_v3 = vadd.f32 %v5593_v8, %v5591_v5  ;;  %v4103_v5 = vld [vmem:[%s6208_s7 + $0x18] sm:$0xf0] }
 0x411   : > { %v2413_v15 = vpop.f32.mrf.mxu1 }
 0x412   : > { %v2414_v37 = vadd.f32 %v2413_v15, %v2396_v28  ;;  %v4625_v15 = vld [vmem:[%s6208_s7 + $0x14] sm:$0xf]  ;;  %v2401_v23 = vadd.f32 %v5589_v63, %v2296_v3  ;;  %v4623_v63 = vld [vmem:[%s6208_s7 + $0x4] sm:$0xf]  ;;  %v4095_v28 = vld [vmem:[%s6208_s7 + $0x8] sm:$0xf0] }
 0x413   : > { %v4106_v27 = vor.u32 %v4625_v15, %v4103_v5  ;;  %v4098_v35 = vor.u32 %v4623_v63, %v4095_v28  ;;  %v4381_v3 = vld [vmem:[%s6210_s9 + $0x1c0] sm:$0xf]  ;;  %v4649_v28 = vld [vmem:[%s6210_s9 + $0x4c] sm:$0xf0] }
 0x414   : > { %v4205_v5 = vld [vmem:[%s6210_s9 + $0x60] sm:$0xf] }
 0x415   : > { %v5621_v19 = vpop.f32.mrf.mxu3 }
 0x417   : > { %v2562_v31 = vpop.f32.mrf.mxu2 }
 0x418   : > { %v2581_v30 = vadd.f32 %v2580_v7, %v2562_v31  ;;  %v4111_v7 = vld [vmem:[%s6208_s7 + $0x28] sm:$0xf0] }
 0x419   : > { %v2415_v6 = vpop.f32.mrf.mxu1  ;;  %v4114_v20 = vor.u32 %v4627_v4, %v4111_v7  ;;  %v4659_v7 = vld [vmem:[%s6210_s9 + $0xa4] sm:$0xf] }
 0x41a   : > { %v2589_v42 = vadd.f32 %v2581_v30, %v2414_v37  ;;  %v2416_v61 = vadd.f32 %v2415_v6, %v2398_v44  ;;  %v4269_v6 = vld [vmem:[%s6210_s9 + $0xe0] sm:$0xf] }
 0x41b   : > { %2744 = vmatpush.bf16.msrb.mxu2 %v4114_v20  ;;  %v4270_v45 = vor.u32 %v4669_v21, %v4269_v6  ;;  %v4647_v6 = vld [vmem:[%s6210_s9 + $0x44] sm:$0xf]  ;;  %v4191_v21 = vld [vmem:[%s6210_s9 + $0x50] sm:$0xf0] }
 0x41c   : > { %v2596_v49 = vadd.f32 %v5626_v29, %v2589_v42 }
 0x41d   : > { %v2587_v55 = vpop.f32.mrf.mxu3  ;;  %3150 = vmatpush.bf16.msrb.mxu3 %v4270_v45 }
 0x41e   : > { %v2599_v57 = vmax.f32 %v2596_v49, 0.0  ;;  %v4667_v49 = vld [vmem:[%s6210_s9 + $0xe4] sm:$0xf] }
 0x41f   : > { %v2564_v59 = vpop.f32.mrf.mxu2  ;;  %2745 = vmatpush.bf16.msrb.mxu2 %v4106_v27  ;;  %v4274_v51 = vor.u32 %v4667_v49, %v4271_v25  ;;  %v4663_v55 = vld [vmem:[%s6210_s9 + $0xc4] sm:$0xf]  ;;  %v4399_v49 = vld [vmem:[%s6210_s9 + $0x1f0] sm:$0xf0]  ;;  %v4318_v25 = vor.u32 %v4681_v34, %v4317_v52 }
 0x420   : > { %2602 = vst [vmem:[#allocation8] sm:$0xff] %v2599_v57  ;;  %v2583_v2 = vadd.f32 %v5595_v9, %v2564_v59  ;;  %v4101_v9 = vld [vmem:[%s6208_s7 + $0x10] sm:$0xf]  ;;  %v4397_v57 = vld [vmem:[%s6210_s9 + $0x1e0] sm:$0xf]  ;;  %v4330_v59 = vor.u32 %v4680_v41, %v4327_v43  ;;  %v4194_v41 = vor.u32 %v4647_v6, %v4191_v21 }
 0x421   : > { %v2418_v10 = vpop.f32.mrf.mxu1  ;;  %v4102_v53 = vor.u32 %v4626_v13, %v4101_v9  ;;  %3151 = vmatpush.bf16.msrb.mxu3 %v4254_v46  ;;  %v4398_v4 = vor.u32 %v4701_v62, %v4397_v57  ;;  %v4365_v9 = vld [vmem:[%s6210_s9 + $0x1a0] sm:$0xf]  ;;  %v4693_v13 = vld [vmem:[%s6210_s9 + $0x1ac] sm:$0xf0]  ;;  %v4643_v46 = vld [vmem:[%s6210_s9 + $0x24] sm:$0xf] }
 0x422   : > { %v2590_v22 = vadd.f32 %v2583_v2, %v2416_v61  ;;  %v2419_v24 = vadd.f32 %v2418_v10, %v2401_v23  ;;  %v4657_v61 = vld [vmem:[%s6210_s9 + $0x8c] sm:$0xf0]  ;;  %v4258_v2 = vor.u32 %v4663_v55, %v4255_v56  ;;  %v4239_v10 = vld [vmem:[%s6210_s9 + $0xb0] sm:$0xf0]  ;;  %v4366_v27 = vor.u32 %v4693_v13, %v4365_v9  ;;  %v4695_v57 = vld [vmem:[%s6210_s9 + $0x1c4] sm:$0xf] }
 0x423   : > { %2732 = vmatpush.bf16.msra.mxu1 %v4102_v53  ;;  %2746 = vmatpush.bf16.msrb.mxu2 %v4098_v35  ;;  %v4222_v15 = vor.u32 %v4657_v61, %v4221_v1  ;;  %v4653_v23 = vld [vmem:[%s6210_s9 + $0x6c] sm:$0xf0]  ;;  %v4655_v53 = vld [vmem:[%s6210_s9 + $0x84] sm:$0xf]  ;;  %v4333_v35 = vld [vmem:[%s6210_s9 + $0x160] sm:$0xf] }
 0x424   : > { %v2597_v14 = vadd.f32 %v5626_v29, %v2590_v22  ;;  %v4697_v22 = vld [vmem:[%s6210_s9 + $0x1cc] sm:$0xf0]  ;;  %v4702_v1 = vld [vmem:[%s6210_s9 + $0x1f4] sm:$0xf0]  ;;  %v4367_v9 = vld [vmem:[%s6210_s9 + $0x1b0] sm:$0xf0] }
 0x425   : > { %v4382_v20 = vor.u32 %v4697_v22, %v4381_v3  ;;  %3152 = vmatpush.bf16.msrb.mxu3 %v4238_v60  ;;  %v4641_v43 = vld [vmem:[%s6210_s9 + $0xc] sm:$0xf0]  ;;  %v4159_v60 = vld [vmem:[%s6210_s9 + $0x10] sm:$0xf0]  ;;  %v4670_v3 = vld [vmem:[%s6210_s9 + $0xf4] sm:$0xf0] }
 0x426   : > { %v2600_v8 = vmax.f32 %v2597_v14, 0.0  ;;  %v4677_v55 = vld [vmem:[%s6210_s9 + $0x12c] sm:$0xf0]  ;;  %v4389_v13 = vld [vmem:[%s6210_s9 + $0x1c8] sm:$0xf] }
 0x427   : > { %v2567_v47 = vpop.f32.mrf.mxu2  ;;  %2733 = vmatpush.bf16.msra.mxu1 %v4094_v33  ;;  %3176 = vmatpush.bf16.msra.mxu2 %v4274_v51  ;;  %v4350_v33 = vor.u32 %v4689_v18, %v4349_v17  ;;  %v4301_v51 = vld [vmem:[%s6210_s9 + $0x120] sm:$0xf]  ;;  %v4683_v17 = vld [vmem:[%s6210_s9 + $0x164] sm:$0xf]  ;;  %v4335_v18 = vld [vmem:[%s6210_s9 + $0x170] sm:$0xf0] }
 0x428   : > { %2603 = vst [vmem:[#allocation8 + $0x8] sm:$0xff] %v2600_v8  ;;  %v2586_v26 = vadd.f32 %v5621_v19, %v2567_v47  ;;  %v4688_v19 = vld [vmem:[%s6210_s9 + $0x18c] sm:$0xf]  ;;  %v4242_v8 = vor.u32 %v4659_v7, %v4239_v10  ;;  %v4223_v47 = vld [vmem:[%s6210_s9 + $0x90] sm:$0xf0]  ;;  %v4302_v61 = vor.u32 %v4677_v55, %v4301_v51 }
 0x429   : > { %v2420_v31 = vpop.f32.mrf.mxu1  ;;  %v4362_v38 = vor.u32 %v4688_v19, %v4359_v16  ;;  %3153 = vmatpush.bf16.msrb.mxu3 %v4222_v15  ;;  %v4226_v63 = vor.u32 %v4655_v53, %v4223_v47  ;;  %v4173_v16 = vld [vmem:[%s6210_s9 + $0x20] sm:$0xf]  ;;  %v4277_v10 = vld [vmem:[%s6210_s9 + $0xe8] sm:$0xf]  ;;  %v4687_v53 = vld [vmem:[%s6210_s9 + $0x184] sm:$0xf] }
 0x42a   : > { %v2591_v32 = vadd.f32 %v2586_v26, %v2419_v24  ;;  %v4206_v24 = vor.u32 %v4653_v23, %v4205_v5  ;;  %v4189_v26 = vld [vmem:[%s6210_s9 + $0x40] sm:$0xf]  ;;  %v4651_v31 = vld [vmem:[%s6210_s9 + $0x64] sm:$0xf]  ;;  %v4278_v5 = vor.u32 %v4670_v3, %v4277_v10  ;;  %v4351_v47 = vld [vmem:[%s6210_s9 + $0x190] sm:$0xf0] }
 0x42b   : > { %3244 = vmatpush.bf16.msrb.mxu0 %v4362_v38  ;;  %3163 = vmatpush.bf16.msrb.mxu1 %v4398_v4  ;;  %v4190_v19 = vor.u32 %v4649_v28, %v4189_v26  ;;  %v4673_v4 = vld [vmem:[%s6210_s9 + $0x10c] sm:$0xf0]  ;;  %v4679_v26 = vld [vmem:[%s6210_s9 + $0x144] sm:$0xf]  ;;  %v4245_v6 = vld [vmem:[%s6210_s9 + $0xa8] sm:$0xf] }
 0x42c   : > { %v2598_v37 = vadd.f32 %v5626_v29, %v2591_v32  ;;  %v4343_v29 = vld [vmem:[%s6210_s9 + $0x178] sm:$0xf0]  ;;  %3177 = vmatpush.bf16.msra.mxu2 %v4258_v2  ;;  %v4207_v32 = vld [vmem:[%s6210_s9 + $0x70] sm:$0xf0]  ;;  %v4285_v2 = vld [vmem:[%s6210_s9 + $0x100] sm:$0xf] }
 0x42d   : > { %v4346_v42 = vor.u32 %v4684_v11, %v4343_v29  ;;  %3154 = vmatpush.bf16.msrb.mxu3 %v4206_v24  ;;  %v4210_v11 = vor.u32 %v4651_v31, %v4207_v32  ;;  %v4645_v29 = vld [vmem:[%s6210_s9 + $0x2c] sm:$0xf0]  ;;  %v4286_v15 = vor.u32 %v4673_v4, %v4285_v2  ;;  %v4338_v24 = vor.u32 %v4683_v17, %v4335_v18  ;;  %v4373_v31 = vld [vmem:[%s6210_s9 + $0x1a8] sm:$0xf]  ;;  %v4694_v32 = vld [vmem:[%s6210_s9 + $0x1b4] sm:$0xf0] }
 0x42e   : > { %v2601_v30 = vmax.f32 %v2598_v37, 0.0  ;;  %v4685_v37 = vld [vmem:[%s6210_s9 + $0x16c] sm:$0xf0]  ;;  %v4662_v21 = vld [vmem:[%s6210_s9 + $0xb4] sm:$0xf0] }
 0x42f   : > { %v2569_v40 = vpop.f32.mrf.mxu2  ;;  %v2605_v36 = vld [vmem:[#allocation8] ss:$2 sm:$0xff]  ;;  %v2607_v39 = vld [vmem:[#allocation8 + $0x1] ss:$2 sm:$0xff]  ;;  %3245 = vmatpush.bf16.msrb.mxu0 %v4346_v42  ;;  %3164 = vmatpush.bf16.msrb.mxu1 %v4382_v20  ;;  %v4334_v45 = vor.u32 %v4685_v37, %v4333_v35  ;;  %v4157_v42 = vld [vmem:[%s6210_s9] sm:$0xf] }
 0x430   : > { %2604 = vst [vmem:[#allocation8 + $0x10] sm:$0xff] %v2601_v30  ;;  %v2612_v44 = vmax.f32 %v2605_v36, %v2607_v39  ;;  %3178 = vmatpush.bf16.msra.mxu2 %v4242_v8  ;;  %v4676_v30 = vld [vmem:[%s6210_s9 + $0x12c] sm:$0xf]  ;;  %v4311_v40 = vld [vmem:[%s6210_s9 + $0x138] sm:$0xf0]  ;;  %v4174_v39 = vor.u32 %v4645_v29, %v4173_v16  ;;  %v4158_v56 = vor.u32 %v4641_v43, %v4157_v42 }
 0x431   : > { %v4314_v38 = vor.u32 %v4676_v30, %v4311_v40  ;;  %3155 = vmatpush.bf16.msrb.mxu3 %v4190_v19  ;;  %v4261_v35 = vld [vmem:[%s6210_s9 + $0xc8] sm:$0xf]  ;;  %v4666_v37 = vld [vmem:[%s6210_s9 + $0xd4] sm:$0xf0]  ;;  %v4675_v40 = vld [vmem:[%s6210_s9 + $0x124] sm:$0xf] }
 0x432   : > { %v4262_v30 = vor.u32 %v4666_v37, %v4261_v35  ;;  %v4303_v19 = vld [vmem:[%s6210_s9 + $0x130] sm:$0xf0]  ;;  %v4686_v42 = vld [vmem:[%s6210_s9 + $0x174] sm:$0xf0]  ;;  %v4229_v43 = vld [vmem:[%s6210_s9 + $0x88] sm:$0xf] }
 0x433   : > { %3246 = vmatpush.bf16.msrb.mxu0 %v4330_v59  ;;  %3165 = vmatpush.bf16.msrb.mxu1 %v4366_v27  ;;  %v4639_v59 = vld [vmem:[%s6210_s9 + $0x4] sm:$0xf]  ;;  %v4354_v27 = vor.u32 %v4687_v53, %v4351_v47  ;;  %v4306_v16 = vor.u32 %v4675_v40, %v4303_v19  ;;  %v4287_v52 = vld [vmem:[%s6210_s9 + $0x110] sm:$0xf0]  ;;  %v4325_v51 = vld [vmem:[%s6210_s9 + $0x148] sm:$0xf] }
 0x434   : > { %3179 = vmatpush.bf16.msra.mxu2 %v4226_v63  ;;  %v4162_v7 = vor.u32 %v4639_v59, %v4159_v60  ;;  %v4319_v63 = vld [vmem:[%s6210_s9 + $0x150] sm:$0xf0]  ;;  %v4682_v55 = vld [vmem:[%s6210_s9 + $0x154] sm:$0xf0]  ;;  %v4664_v17 = vld [vmem:[%s6210_s9 + $0xcc] sm:$0xf] }
 0x435   : > { %3156 = vmatpush.bf16.msrb.mxu3 %v4174_v39  ;;  %v4322_v28 = vor.u32 %v4679_v26, %v4319_v63  ;;  %v4341_v39 = vld [vmem:[%s6210_s9 + $0x168] sm:$0xf]  ;;  %v4678_v59 = vld [vmem:[%s6210_s9 + $0x134] sm:$0xf0]  ;;  %v4263_v18 = vld [vmem:[%s6210_s9 + $0xd8] sm:$0xf0] }
 0x436   : > { %v4674_v2 = vld [vmem:[%s6210_s9 + $0x114] sm:$0xf0]  ;;  %v4247_v35 = vld [vmem:[%s6210_s9 + $0xb8] sm:$0xf0] }
 0x437   : > { %v2609_v58 = vld [vmem:[#allocation8 + $0x6] ss:$2 sm:$0xff]  ;;  %v2611_v54 = vld [vmem:[#allocation8 + $0x7] ss:$2 sm:$0xff]  ;;  %3166 = vmatpush.bf16.msrb.mxu1 %v4350_v33  ;;  %3247 = vmatpush.bf16.msrb.mxu0 %v4314_v38  ;;  %v4374_v33 = vor.u32 %v4694_v32, %v4373_v31 }
 0x438   : > { %v2613_v0 = vmax.f32 %v2609_v58, %v2611_v54  ;;  %3180 = vmatpush.bf16.msra.mxu2 %v4210_v11  ;;  %v4402_v58 = vor.u32 %v4699_v50, %v4399_v49  ;;  %v4383_v54 = vld [vmem:[%s6210_s9 + $0x1d0] sm:$0xf0]  ;;  %v4357_v11 = vld [vmem:[%s6210_s9 + $0x188] sm:$0xf]  ;;  %v4690_v38 = vld [vmem:[%s6210_s9 + $0x194] sm:$0xf0] }
 0x439   : > { %3157 = vmatpush.bf16.msrb.mxu3 %v4158_v56  ;;  %v4386_v22 = vor.u32 %v4695_v57, %v4383_v54  ;;  %v4358_v29 = vor.u32 %v4690_v38, %v4357_v11  ;;  %v4295_v49 = vld [vmem:[%s6210_s9 + $0x118] sm:$0xf0]  ;;  %v4326_v56 = vor.u32 %v4682_v55, %v4325_v51  ;;  %v4213_v57 = vld [vmem:[%s6210_s9 + $0x68] sm:$0xf]  ;;  %v4646_v10 = vld [vmem:[%s6210_s9 + $0x34] sm:$0xf0] }
 0x43a   : > { %v2614_v12 = vmax.f32 %v2612_v44, %v2613_v0  ;;  %v4178_v44 = vor.u32 %v4643_v46, %v4175_v48  ;;  %v4405_v0 = vld [vmem:[%s6210_s9 + $0x1e8] sm:$0xf]  ;;  %v4658_v46 = vld [vmem:[%s6210_s9 + $0x94] sm:$0xf0]  ;;  %v4672_v48 = vld [vmem:[%s6210_s9 + $0x10c] sm:$0xf] }
 0x43b   : > { %3167 = vmatpush.bf16.msrb.mxu1 %v4334_v45  ;;  %v4406_v20 = vor.u32 %v4702_v1, %v4405_v0  ;;  %v4671_v45 = vld [vmem:[%s6210_s9 + $0x104] sm:$0xf]  ;;  %v4230_v50 = vor.u32 %v4658_v46, %v4229_v43  ;;  %v4309_v54 = vld [vmem:[%s6210_s9 + $0x128] sm:$0xf]  ;;  %v4650_v0 = vld [vmem:[%s6210_s9 + $0x54] sm:$0xf0] }
 0x43c   : > { %v2615_v14 = vpack.c.bf16 %v2614_v12, %v2614_v12  ;;  %3181 = vmatpush.bf16.msra.mxu2 %v4194_v41  ;;  %v4691_v12 = vld [vmem:[%s6210_s9 + $0x1a4] sm:$0xf]  ;;  %v4290_v34 = vor.u32 %v4671_v45, %v4287_v52  ;;  %v4342_v41 = vor.u32 %v4686_v42, %v4341_v39  ;;  %v4310_v60 = vor.u32 %v4678_v59, %v4309_v54  ;;  %v4293_v1 = vld [vmem:[%s6210_s9 + $0x108] sm:$0xf]  ;;  %v4718_v31 = vld [vmem:[%s6212_s11 + $0x78] sm:$0xff] }
 0x43d   : > { %3189 = vmatpush.bf16.msra.mxu3 %v4402_v58  ;;  %v4370_v8 = vor.u32 %v4691_v12, %v4367_v9  ;;  %v4294_v4 = vor.u32 %v4674_v2, %v4293_v1  ;;  %v4642_v12 = vld [vmem:[%s6210_s9 + $0x14] sm:$0xf0]  ;;  %v2640_v9 = vld [vmem:[%s6209_s8] sm:$0x3]  ;;  %v4231_v11 = vld [vmem:[%s6210_s9 + $0x98] sm:$0xf0] }
 0x43e   : > { %2616 = vst [vmem:[#allocation9] sm:$0x1] %v2615_v14  ;;  %v2643_v53 = vperm.slane %v2640_v9, 1  ;;  %v4710_v37 = vld [vmem:[%s6212_s11 + $0x38] sm:$0xff]  ;;  %v4708_v45 = vld [vmem:[%s6212_s11 + $0x28] sm:$0xff]  ;;  %v4707_v42 = vld [vmem:[%s6212_s11 + $0x20] sm:$0xff] }
 0x43f   : > { %2618 = vst.sshfl [vmem:[#allocation1] sm:$0xff pattern:$0x75643120] %v2615_v14  ;;  %3168 = vmatpush.bf16.msrb.mxu1 %v4318_v25  ;;  %v4698_v14 = vld [vmem:[%s6210_s9 + $0x1d4] sm:$0xf0]  ;;  %v4298_v25 = vor.u32 %v4672_v48, %v4295_v49  ;;  %v4705_v51 = vld [vmem:[%s6212_s11 + $0x10] sm:$0xff] }
 0x440   : > { %3182 = vmatpush.bf16.msra.mxu2 %v4178_v44  ;;  %v4390_v23 = vor.u32 %v4698_v14, %v4389_v13  ;;  %v4654_v44 = vld [vmem:[%s6210_s9 + $0x74] sm:$0xf0]  ;;  %v2642_v13 = vperm.slane %v2640_v9, 0  ;;  %v4199_v39 = vld [vmem:[%s6210_s9 + $0x58] sm:$0xf0]  ;;  %v4724_v54 = vld [vmem:[%s6212_s11 + $0xa8] sm:$0xff] }
 0x441   : > { %3190 = vmatpush.bf16.msra.mxu3 %v4386_v22  ;;  %3248 = vmatpush.bf16.msrb.mxu0 %v4298_v25  ;;  %v4214_v58 = vor.u32 %v4654_v44, %v4213_v57  ;;  %v4165_v22 = vld [vmem:[%s6210_s9 + $0x8] sm:$0xf]  ;;  %v4644_v43 = vld [vmem:[%s6210_s9 + $0x2c] sm:$0xf]  ;;  %v4183_v46 = vld [vmem:[%s6210_s9 + $0x38] sm:$0xf0] }
 0x442   : > { %v4706_v48 = vld [vmem:[%s6212_s11 + $0x18] sm:$0xff]  ;;  %v4640_v49 = vld [vmem:[%s6210_s9 + $0xc] sm:$0xf]  ;;  %v4725_v57 = vld [vmem:[%s6212_s11 + $0xb0] sm:$0xff] }
 0x443   : > { %3169 = vmatpush.bf16.msrb.mxu1 %v4302_v61  ;;  %v4167_v25 = vld [vmem:[%s6210_s9 + $0x18] sm:$0xf0]  ;;  %v4716_v44 = vld [vmem:[%s6212_s11 + $0x68] sm:$0xff]  ;;  %v4715_v59 = vld [vmem:[%s6212_s11 + $0x60] sm:$0xff] }
 0x444   : > { %3183 = vmatpush.bf16.msra.mxu2 %v4162_v7  ;;  %v4181_v7 = vld [vmem:[%s6210_s9 + $0x28] sm:$0xf]  ;;  %v4170_v55 = vor.u32 %v4640_v49, %v4167_v25  ;;  %v4722_v1 = vld [vmem:[%s6212_s11 + $0x98] sm:$0xff]  ;;  %v4713_v2 = vld [vmem:[%s6212_s11 + $0x50] sm:$0xff] }
 0x445   : > { %3191 = vmatpush.bf16.msra.mxu3 %v4370_v8  ;;  %v4182_v3 = vor.u32 %v4646_v10, %v4181_v7  ;;  %v4279_v8 = vld [vmem:[%s6210_s9 + $0xf8] sm:$0xf0]  ;;  %v4721_v7 = vld [vmem:[%s6212_s11 + $0x90] sm:$0xff]  ;;  %v4712_v10 = vld [vmem:[%s6212_s11 + $0x48] sm:$0xff] }
 0x446   : > { %v2620_v36 = vld [vmem:[#allocation1 + $0x1] ss:$2 sm:$0xff] }
 0x447   : > { %2622 = vst [vmem:[#allocation9] sm:$0x2] %v2620_v36  ;;  %3170 = vmatpush.bf16.msrb.mxu1 %v4286_v15  ;;  %v4246_v36 = vor.u32 %v4662_v21, %v4245_v6  ;;  %v4652_v21 = vld [vmem:[%s6210_s9 + $0x6c] sm:$0xf]  ;;  %v4731_v9 = vld [vmem:[%s6212_s11 + $0xe0] sm:$0xff] }
 0x449   : > { %3192 = vmatpush.bf16.msra.mxu3 %v4354_v27 }
 0x44d   : > { %3193 = vmatpush.bf16.msra.mxu3 %v4338_v24 }
 0x44e   : > { %v2623_v62 = vld [vmem:[#allocation9] sm:$0x3] }
 0x44f   : > { %2734 = vmatmul.bf16.vlgmr.msra.gmra.mxu1 %v2623_v62  ;;  %2747 = vmatmul.bf16.vlgmr.msrb.gmra.mxu2 %v2623_v62  ;;  %v4197_v62 = vld [vmem:[%s6210_s9 + $0x48] sm:$0xf] }
 0x450   : > { %3215 = vmatpush.bf16.msrb.mxu2 %v4406_v20  ;;  %3202 = vmatpush.bf16.msra.mxu1 %v4278_v5  ;;  %v4198_v61 = vor.u32 %v4650_v0, %v4197_v62  ;;  %v4166_v20 = vor.u32 %v4642_v12, %v4165_v22  ;;  %v4668_v5 = vld [vmem:[%s6210_s9 + $0xec] sm:$0xf]  ;;  %v4723_v62 = vld [vmem:[%s6212_s11 + $0xa0] sm:$0xff]  ;;  %v4714_v0 = vld [vmem:[%s6212_s11 + $0x58] sm:$0xff] }
 0x451   : > { %3194 = vmatpush.bf16.msra.mxu3 %v4322_v28  ;;  %v4282_v47 = vor.u32 %v4668_v5, %v4279_v8  ;;  %v4266_v28 = vor.u32 %v4664_v17, %v4263_v18  ;;  %v4732_v22 = vld [vmem:[%s6212_s11 + $0xe8] sm:$0xff]  ;;  %v4711_v12 = vld [vmem:[%s6212_s11 + $0x40] sm:$0xff] }
 0x452   : > { %v4728_v17 = vld [vmem:[%s6212_s11 + $0xc8] sm:$0xff] }
 0x454   : > { %3216 = vmatpush.bf16.msrb.mxu2 %v4390_v23  ;;  %3203 = vmatpush.bf16.msra.mxu1 %v4262_v30  ;;  %v4717_v30 = vld [vmem:[%s6212_s11 + $0x70] sm:$0xff] }
 0x455   : > { %3195 = vmatpush.bf16.msra.mxu3 %v4306_v16  ;;  %v4656_v16 = vld [vmem:[%s6210_s9 + $0x8c] sm:$0xf] }
 0x456   : > { %v4234_v6 = vor.u32 %v4656_v16, %v4231_v11 }
 0x458   : > { %3217 = vmatpush.bf16.msrb.mxu2 %v4374_v33  ;;  %3204 = vmatpush.bf16.msra.mxu1 %v4246_v36  ;;  %v4660_v33 = vld [vmem:[%s6210_s9 + $0xac] sm:$0xf]  ;;  %v4215_v36 = vld [vmem:[%s6210_s9 + $0x78] sm:$0xf0] }
 0x459   : > { %3196 = vmatpush.bf16.msra.mxu3 %v4290_v34  ;;  %v4250_v19 = vor.u32 %v4660_v33, %v4247_v35  ;;  %v4218_v52 = vor.u32 %v4652_v21, %v4215_v36  ;;  %v4648_v34 = vld [vmem:[%s6210_s9 + $0x4c] sm:$0xf] }
 0x45c   : > { %3218 = vmatpush.bf16.msrb.mxu2 %v4358_v29  ;;  %3205 = vmatpush.bf16.msra.mxu1 %v4230_v50  ;;  %v4709_v29 = vld [vmem:[%s6212_s11 + $0x30] sm:$0xff]  ;;  %v4186_v50 = vor.u32 %v4644_v43, %v4183_v46 }
 0x460   : > { %3219 = vmatpush.bf16.msrb.mxu2 %v4342_v41  ;;  %3206 = vmatpush.bf16.msra.mxu1 %v4214_v58  ;;  %v4202_v41 = vor.u32 %v4648_v34, %v4199_v39  ;;  %v4704_v58 = vld [vmem:[%s6212_s11 + $0x8] sm:$0xff] }
 0x464   : > { %3220 = vmatpush.bf16.msrb.mxu2 %v4326_v56  ;;  %3207 = vmatpush.bf16.msra.mxu1 %v4198_v61  ;;  %v4726_v56 = vld [vmem:[%s6212_s11 + $0xb8] sm:$0xff] }
 0x465   : > { %v4734_v61 = vld [vmem:[%s6212_s11 + $0xf8] sm:$0xff] }
 0x466   : > { %3561 = vmatpush.bf16.msra.mxu0 %v4734_v61 }
 0x468   : > { %3221 = vmatpush.bf16.msrb.mxu2 %v4310_v60  ;;  %3208 = vmatpush.bf16.msra.mxu1 %v4182_v3  ;;  %v4703_v60 = vld [vmem:[%s6212_s11] sm:$0xff]  ;;  %v4720_v3 = vld [vmem:[%s6212_s11 + $0x88] sm:$0xff] }
 0x46c   : > { %3222 = vmatpush.bf16.msrb.mxu2 %v4294_v4  ;;  %3209 = vmatpush.bf16.msra.mxu1 %v4166_v20  ;;  %v4733_v4 = vld [vmem:[%s6212_s11 + $0xf0] sm:$0xff]  ;;  %v4719_v20 = vld [vmem:[%s6212_s11 + $0x80] sm:$0xff] }
 0x46d   : > { %3562 = vmatpush.bf16.msra.mxu0 %v4733_v4 }
 0x471   : > { %3563 = vmatpush.bf16.msra.mxu0 %v4732_v22 }
 0x475   : > { %3564 = vmatpush.bf16.msra.mxu0 %v4731_v9 }
 0x4cc   : > { %v2735_v14 = vpop.f32.mrf.mxu1 }
 0x4cd   : > { %v2736_v15 = vadd.f32 %v2735_v14, %v2642_v13  ;;  %v4730_v13 = vld [vmem:[%s6212_s11 + $0xd8] sm:$0xff]  ;;  %v2820_v14 = vld [vmem:[%s6211_s10] sm:$0xf] }
 0x4ce   : > { %3565 = vmatpush.bf16.msra.mxu0 %v4730_v13  ;;  %v2822_v5 = vperm.slane %v2820_v14, 0  ;;  %v2823_v35 = vperm.slane %v2820_v14, 1 }
 0x4cf   : > { %v2752_v23 = vmax.f32 %v2736_v15, 0.0  ;;  %v4729_v15 = vld [vmem:[%s6212_s11 + $0xd0] sm:$0xff] }
 0x4d1   : > { %v2754_v27 = vpack.c.bf16 %v2752_v23, %v2752_v23 }
 0x4d2   : > { %v2748_v24 = vpop.f32.mrf.mxu2  ;;  %3566 = vmatpush.bf16.msra.mxu0 %v4729_v15 }
 0x4d3   : > { %v2749_v26 = vadd.f32 %v2748_v24, %v2643_v53  ;;  %3158 = vmatmul.bf16.vlgmr.msrb.gmra.mxu3 %v2754_v27  ;;  %3184 = vmatmul.bf16.vlgmr.msra.gmra.mxu2 %v2754_v27 }
 0x4d4   : > { %v2737_v63 = vpop.f32.mrf.mxu1  ;;  %3228 = vmatpush.bf16.msrb.mxu3 %v4282_v47  ;;  %3535 = vmatpush.bf16.msra.mxu2 %v4718_v31 }
 0x4d5   : > { %v2753_v32 = vmax.f32 %v2749_v26, 0.0  ;;  %v4727_v26 = vld [vmem:[%s6212_s11 + $0xc0] sm:$0xff] }
 0x4d6   : > { %3567 = vmatpush.bf16.msra.mxu0 %v4728_v17 }
 0x4d7   : > { %v2755_v40 = vpack.c.bf16 %v2753_v32, %v2753_v32 }
 0x4d8   : > { %3229 = vmatpush.bf16.msrb.mxu3 %v4266_v28  ;;  %3536 = vmatpush.bf16.msra.mxu2 %v4717_v30 }
 0x4d9   : > { %3171 = vmatmul.bf16.vlgmr.msrb.gmra.mxu1 %v2755_v40  ;;  %3249 = vmatmul.bf16.vlgmr.msrb.gmra.mxu0 %v2755_v40 }
 0x4da   : > { %v2750_v38 = vpop.f32.mrf.mxu2  ;;  %3522 = vmatpush.bf16.msrb.mxu1 %v4710_v37  ;;  %3568 = vmatpush.bf16.msra.mxu0 %v4727_v26  ;;  %v2824_v37 = vperm.slane %v2820_v14, 2 }
 0x4dc   : > { %3230 = vmatpush.bf16.msrb.mxu3 %v4250_v19  ;;  %3537 = vmatpush.bf16.msra.mxu2 %v4716_v44 }
 0x4de   : > { %3523 = vmatpush.bf16.msrb.mxu1 %v4709_v29 }
 0x4e0   : > { %3231 = vmatpush.bf16.msrb.mxu3 %v4234_v6  ;;  %3538 = vmatpush.bf16.msra.mxu2 %v4715_v59 }
 0x4e2   : > { %3524 = vmatpush.bf16.msrb.mxu1 %v4708_v45 }
 0x4e3   : > { %3197 = vmatmul.bf16.vlgmr.msra.gmra.mxu3 %v2755_v40  ;;  %3223 = vmatmul.bf16.vlgmr.msrb.gmra.mxu2 %v2755_v40 }
 0x4e4   : > { %3232 = vmatpush.bf16.msrb.mxu3 %v4218_v52  ;;  %3539 = vmatpush.bf16.msra.mxu2 %v4714_v0 }
 0x4e6   : > { %3525 = vmatpush.bf16.msrb.mxu1 %v4707_v42  ;;  %v2825_v42 = vperm.slane %v2820_v14, 3 }
 0x4e8   : > { %3233 = vmatpush.bf16.msrb.mxu3 %v4202_v41  ;;  %3540 = vmatpush.bf16.msra.mxu2 %v4713_v2 }
 0x4e9   : > { %3210 = vmatmul.bf16.vlgmr.msra.gmra.mxu1 %v2754_v27 }
 0x4ea   : > { %3526 = vmatpush.bf16.msrb.mxu1 %v4706_v48 }
 0x4ec   : > { %3234 = vmatpush.bf16.msrb.mxu3 %v4186_v50  ;;  %3541 = vmatpush.bf16.msra.mxu2 %v4712_v10 }
 0x4ee   : > { %3527 = vmatpush.bf16.msrb.mxu1 %v4705_v51 }
 0x4f0   : > { %3235 = vmatpush.bf16.msrb.mxu3 %v4170_v55  ;;  %3542 = vmatpush.bf16.msra.mxu2 %v4711_v12 }
 0x4f2   : > { %3528 = vmatpush.bf16.msrb.mxu1 %v4704_v58 }
 0x4f3   : > { %3236 = vmatmul.bf16.vlgmr.msrb.gmra.mxu3 %v2754_v27 }
 0x4f4   : > { %3548 = vmatpush.bf16.msra.mxu3 %v4726_v56  ;;  %v4803_v56 = vld [vmem:[%s6213_s12] ss:$0 sm:$0xff] }
 0x4f6   : > { %3529 = vmatpush.bf16.msrb.mxu1 %v4703_v60 }
 0x4f8   : > { %3549 = vmatpush.bf16.msra.mxu3 %v4725_v57 }
 0x4fc   : > { %3550 = vmatpush.bf16.msra.mxu3 %v4724_v54 }
 0x500   : > { %3551 = vmatpush.bf16.msra.mxu3 %v4723_v62 }
 0x504   : > { %3552 = vmatpush.bf16.msra.mxu3 %v4722_v1 }
 0x508   : > { %3553 = vmatpush.bf16.msra.mxu3 %v4721_v7 }
 0x50c   : > { %3554 = vmatpush.bf16.msra.mxu3 %v4720_v3 }
 0x510   : > { %3555 = vmatpush.bf16.msra.mxu3 %v4719_v20 }
 0x556   : > { %v3159_v8 = vpop.f32.mrf.mxu3  ;;  %v3172_v23 = vpop.f32.mrf.mxu1 }
 0x557   : > { %v3160_v53 = vadd.f32 %v3159_v8, %v2822_v5  ;;  %v3185_v47 = vpop.f32.mrf.mxu2  ;;  %v3250_v27 = vpop.f32.mrf.mxu0 }
 0x558   : > { %v3186_v30 = vadd.f32 %v3185_v47, %v2823_v35 }
 0x559   : > { %v3173_v18 = vadd.f32 %v3172_v23, %v3160_v53 }
 0x55b   : > { %v3254_v24 = vmax.f32 %v3173_v18, 0.0 }
 0x55d   : > { %v3258_v63 = vpack.c.bf16 %v3254_v24, %v3254_v24 }
 0x55e   : > { %v3161_v28 = vpop.f32.mrf.mxu3  ;;  %v3174_v31 = vpop.f32.mrf.mxu1 }
 0x55f   : > { %v3187_v32 = vpop.f32.mrf.mxu2  ;;  %v3252_v33 = vpop.f32.mrf.mxu0  ;;  %3530 = vmatmul.bf16.vlgmr.msrb.gmra.mxu1 %v3258_v63 }
 0x566   : > { %v3198_v40 = vpop.f32.mrf.mxu3  ;;  %v3211_v19 = vpop.f32.mrf.mxu1 }
 0x567   : > { %v3199_v16 = vadd.f32 %v3198_v40, %v3186_v30  ;;  %v3212_v11 = vadd.f32 %v3211_v19, %v2824_v37  ;;  %v3224_v38 = vpop.f32.mrf.mxu2 }
 0x569   : > { %v3255_v29 = vmax.f32 %v3199_v16, 0.0  ;;  %v3225_v6 = vadd.f32 %v3224_v38, %v3212_v11 }
 0x56b   : > { %v3259_v21 = vpack.c.bf16 %v3255_v29, %v3255_v29  ;;  %v3256_v36 = vmax.f32 %v3225_v6, 0.0 }
 0x56d   : > { %v3260_v45 = vpack.c.bf16 %v3256_v36, %v3256_v36  ;;  %3543 = vmatmul.bf16.vlgmr.msra.gmra.mxu2 %v3259_v21 }
 0x56e   : > { %v3200_v52 = vpop.f32.mrf.mxu3  ;;  %v3213_v34 = vpop.f32.mrf.mxu1 }
 0x56f   : > { %v3226_v39 = vpop.f32.mrf.mxu2  ;;  %3556 = vmatmul.bf16.vlgmr.msra.gmra.mxu3 %v3260_v45 }
 0x576   : > { %v3237_v41 = vpop.f32.mrf.mxu3 }
 0x577   : > { %v3238_v43 = vadd.f32 %v3237_v41, %v2825_v42 }
 0x579   : > { %v3251_v46 = vadd.f32 %v3250_v27, %v3238_v43 }
 0x57b   : > { %v3257_v48 = vmax.f32 %v3251_v46, 0.0 }
 0x57d   : > { %v3261_v50 = vpack.c.bf16 %v3257_v48, %v3257_v48 }
 0x57e   : > { %v3239_v49 = vpop.f32.mrf.mxu3 }
 0x57f   : > { %3569 = vmatmul.bf16.vlgmr.msra.gmra.mxu0 %v3261_v50 }
 0x5dc   : > { %v3531_v25 = vpop.f32.mrf.mxu1 }
 0x5dd   : > { %v3532_v44 = vadd.f32 %v4803_v56, %v3531_v25 }
 0x5e4   : > { %v3533_v51 = vpop.f32.mrf.mxu1 }
 0x5f0   : > { %v3544_v55 = vpop.f32.mrf.mxu2 }
 0x5f1   : > { %v3545_v58 = vadd.f32 %v3544_v55, %v3532_v44 }
 0x5f2   : > { %v3557_v57 = vpop.f32.mrf.mxu3 }
 0x5f3   : > { %v3558_v60 = vadd.f32 %v3557_v57, %v3545_v58 }
 0x5f8   : > { %v3546_v54 = vpop.f32.mrf.mxu2 }
 0x5fa   : > { %v3559_v59 = vpop.f32.mrf.mxu3 }
 0x5fc   : > { %v3570_v62 = vpop.f32.mrf.mxu0 }
 0x5fd   : > { %v3571_v0 = vadd.f32 %v3570_v62, %v3558_v60 }
 0x5ff   : > { %v4539_v1 = vmul.f32 -1.442695, %v3571_v0 }
 0x601   : > { %4804 = vpow2.f32 %v4539_v1 }
 0x604   : > { %v3572_v61 = vpop.f32.mrf.mxu0 }
 0x607   : > { %v4805_v2 = vpop.eup %4804 }
 0x608   : > { %v3577_v4 = vadd.f32 1.0, %v4805_v2 }
 0x60a   : > { %4806 = vrcp.f32 %v3577_v4  ;;  %v3589_v22 = vand.u32 2147483648, %v3577_v4  ;;  %v3587_v20 = vand.u32 2147483647, %v3577_v4  ;;  %vm3583_vm4 = vweird.f32 %v3577_v4 }
 0x60c   : > { %v3590_v13 = vor.u32 1.1754944e-38, %v3589_v22  ;;  %vm3588_vm13 = vcmp.eq.f32.partialorder %v3587_v20, 8.507059e+37 }
 0x610   : > { %v4807_v7 = vpop.eup %4806 }
 0x611   : > { %v3579_v10 = vmul.f32 %v4807_v7, %v3577_v4  ;;  %vm3584_vm6 = vweird.f32 %v4807_v7 }
 0x612   : > { %vm3585_vm14 = vmor %vm3583_vm4, %vm3584_vm6 }
 0x613   : > { %v3580_v3 = vsub.f32 1.0, %v3579_v10 }
 0x615   : > { %v3581_v12 = vmul.f32 %v4807_v7, %v3580_v3 }
 0x617   : > { %v3582_v9 = vadd.f32 %v4807_v7, %v3581_v12 }
 0x619   : > { %v3586_v14 = vsel %vm3585_vm14, %v4807_v7, %v3582_v9 }
 0x61a   : > { %v3591_v15 = vsel %vm3588_vm13, %v3590_v13, %v3586_v14 }
 0x61b   : > { %v3593_v5 = vpack.c.bf16 %v3591_v15, %v3591_v15 }
 0x61d   : > { %3594 = vst.msk [vmem:[%s440_s21] sm:$0x3] %vm464_vm12, %v3593_v5 }
 0x61e PF: > { %s23_s25 = sadd.s32 1, %s4814_s25  }
 0x61f   : > { %p20_p5 = scmp.ge.s32.totalorder %s23_s25, 4  }
 0x621   :  { %22 = sbr.rel (!%p20_p5) target bundleno = 1 (0x1), region = 160 }

</bundles_post_ra>
